<compile_context>
chip_gen: v6e
topology: v6e:2x2x1
jax: 0.10.0
libtpu: 0.0.40
codegen_flags: <defaults>
</compile_context>

<pallas_src>
import functools
import math

import jax
import jax.numpy as jnp
from jax.experimental import pallas as pl
from jax.experimental.pallas import tpu as pltpu

# ----------------------------- config ---------------------------------------
VOCAB = 100
TYPE_VOCAB = 2
MAX_POS = 16
HIDDEN = 128          # bert-base uses 768; scaled down (hidden comes from model_config)
NUM_HEADS = 4
HEAD_DIM = HIDDEN // NUM_HEADS
FFN = 256
NUM_LAYERS = 2
NUM_LABELS = 2
LN_EPS = 1e-12
LANE_PAD = 128        # lane-dense padding for the (HIDDEN, 2) classification head


def _gelu(x):
    # TODO(synk): HF BERT uses erf-GELU; tanh approximation differs at ~1e-3 level.
    c = math.sqrt(2.0 / math.pi)
    return 0.5 * x * (1.0 + jnp.tanh(c * (x + 0.044715 * x * x * x)))


# ----------------------------- fused kernel ----------------------------------
def _bert_encoder_kernel(
        x_ref, mask_ref, emb_g_ref, emb_b_ref,
        qkv_w_ref, qkv_b_ref, o_w_ref, o_b_ref,
        aln_g_ref, aln_b_ref,
        ff1_w_ref, ff1_b_ref, ff2_w_ref, ff2_b_ref,
        fln_g_ref, fln_b_ref,
        pool_w_ref, pool_b_ref, head_w_ref, head_b_ref,
        out_ref, *, batch, seq):

    def ln(x, g, b):                       # f32 LayerNorm over last dim
        mu = jnp.mean(x, axis=-1, keepdims=True)
        d = x - mu
        var = jnp.mean(d * d, axis=-1, keepdims=True)
        return d * jax.lax.rsqrt(var + LN_EPS) * g + b

    def mm(x_f32, w_bf16, b_f32):          # bf16 operands, f32 MXU accumulation
        return jnp.dot(x_f32.astype(jnp.bfloat16), w_bf16,
                       preferred_element_type=jnp.float32) + b_f32

    # --- embedding LayerNorm (no residual) ---
    x = ln(x_ref[...], emb_g_ref[...], emb_b_ref[...])         # (B*S, H) f32
    mask_hb = mask_ref[...]                                     # (NH*B, 1, S) additive, hoisted

    # --- transformer encoder layers (static unroll) ---
    for l in range(NUM_LAYERS):
        # fused QKV projection: one MXU pass with N = 3*H.
        # 1/sqrt(HEAD_DIM) is already folded into the Q columns of qkv_w/qkv_b.
        qkv = mm(x, qkv_w_ref[l], qkv_b_ref[l])                 # (B*S, 3H) f32

        # assemble head-major batched layout (NH*B, S, D); single bf16 cast per tensor
        def split_heads(off):
            return jnp.concatenate(
                [qkv[:, off + h * HEAD_DIM: off + (h + 1) * HEAD_DIM]
                 .reshape(batch, seq, HEAD_DIM) for h in range(NUM_HEADS)],
                axis=0).astype(jnp.bfloat16)                    # (NH*B, S, D)

        qh = split_heads(0)
        kh = split_heads(HIDDEN)
        vh = split_heads(2 * HIDDEN)

        # one batched QK^T over all (head, batch) pairs
        s = jax.lax.dot_general(
            qh, kh, dimension_numbers=(((2,), (2,)), ((0,), (0,))),
            preferred_element_type=jnp.float32)                 # (NH*B, S, S) f32
        s = s + mask_hb
        m = jnp.max(s, axis=-1, keepdims=True)
        p = jnp.exp(s - m)
        p = p * pl.reciprocal(jnp.sum(p, axis=-1, keepdims=True), approx=True)

        # one batched P @ V
        ctx_hb = jax.lax.dot_general(
            p.astype(jnp.bfloat16), vh,
            dimension_numbers=(((2,), (1,)), ((0,), (0,))),
            preferred_element_type=jnp.float32)                 # (NH*B, S, D) f32

        # merge heads back onto the lane axis -> (B*S, H)
        ctx = jnp.concatenate(
            [ctx_hb[h * batch:(h + 1) * batch].reshape(batch * seq, HEAD_DIM)
             for h in range(NUM_HEADS)], axis=-1)

        attn_out = mm(ctx, o_w_ref[l], o_b_ref[l])
        x = ln(attn_out + x, aln_g_ref[l], aln_b_ref[l])

        hdn = _gelu(mm(x, ff1_w_ref[l], ff1_b_ref[l]))
        ff_out = mm(hdn, ff2_w_ref[l], ff2_b_ref[l])
        x = ln(ff_out + x, fln_g_ref[l], fln_b_ref[l])

    # --- BERT pooler: tanh(W * CLS + b)  (output_1 of self.l1) ---
    # CLS rows via reshape-slice (no per-row sublane concat)
    cls = x.reshape(batch, seq, HIDDEN)[:, 0:1, :].reshape(batch, HIDDEN)   # (B, H)
    pooled = jnp.tanh(mm(cls, pool_w_ref[...], pool_b_ref[...]))

    # --- self.l2 Dropout(0.3): eval-mode identity ---
    # TODO(synk): training-mode dropout RNG not reproduced (inference semantics).

    # --- self.l3 Linear(hidden, 2) + self.tan ; lane-padded to 128 for a dense store ---
    out_ref[...] = jnp.tanh(mm(pooled, head_w_ref[...], head_b_ref[...]))


def _full_block(shape):
    nd = len(shape)
    return pl.BlockSpec(shape, lambda *_: (0,) * nd)


# ----------------------------- parameters ------------------------------------
def init_params(key):
    # TODO(synk): pretrained bert-base-uncased weights not loadable in-script;
    # deterministic synthetic init is used instead.
    kiter = iter(jax.random.split(key, 64))

    def nrm(shape):
        return 0.02 * jax.random.normal(next(kiter), shape, jnp.float32)

    def zeros(shape):
        return jnp.zeros(shape, jnp.float32)

    def ones(shape):
        return jnp.ones(shape, jnp.float32)

    # fused QKV weights: (L, H, 3H) with (q | k | v) along the lane axis.
    # Fold the attention 1/sqrt(HEAD_DIM) scale into the Q columns at init time
    # (removes a full-width VPU multiply + an extra bf16 cast per layer).
    scale = 1.0 / math.sqrt(HEAD_DIM)
    qkv_w = nrm((NUM_LAYERS, HIDDEN, 3 * HIDDEN))
    qkv_b = zeros((NUM_LAYERS, 1, 3 * HIDDEN))
    qkv_w = qkv_w.at[:, :, :HIDDEN].multiply(scale)
    qkv_b = qkv_b.at[:, :, :HIDDEN].multiply(scale)

    params = dict(
        word_emb=nrm((VOCAB, HIDDEN)),
        pos_emb=nrm((MAX_POS, HIDDEN)),
        type_emb=nrm((TYPE_VOCAB, HIDDEN)),
        emb_ln_g=ones((1, HIDDEN)), emb_ln_b=zeros((1, HIDDEN)),
        qkv_w=qkv_w.astype(jnp.bfloat16),
        qkv_b=qkv_b,
        o_w=nrm((NUM_LAYERS, HIDDEN, HIDDEN)).astype(jnp.bfloat16),
        o_b=zeros((NUM_LAYERS, 1, HIDDEN)),
        attn_ln_g=ones((NUM_LAYERS, 1, HIDDEN)),
        attn_ln_b=zeros((NUM_LAYERS, 1, HIDDEN)),
        ff1_w=nrm((NUM_LAYERS, HIDDEN, FFN)).astype(jnp.bfloat16),
        ff1_b=zeros((NUM_LAYERS, 1, FFN)),
        ff2_w=nrm((NUM_LAYERS, FFN, HIDDEN)).astype(jnp.bfloat16),
        ff2_b=zeros((NUM_LAYERS, 1, HIDDEN)),
        ffn_ln_g=ones((NUM_LAYERS, 1, HIDDEN)),
        ffn_ln_b=zeros((NUM_LAYERS, 1, HIDDEN)),
        pool_w=nrm((HIDDEN, HIDDEN)).astype(jnp.bfloat16),
        pool_b=zeros((1, HIDDEN)),
    )
    # classification head Linear(HIDDEN, 2), lane-padded to 128 columns
    head_w = nrm((HIDDEN, NUM_LABELS))
    head_b = zeros((1, NUM_LABELS))
    params["head_w_pad"] = (jnp.zeros((HIDDEN, LANE_PAD), jnp.float32)
                            .at[:, :NUM_LABELS].set(head_w)
                            .astype(jnp.bfloat16))
    params["head_b_pad"] = (jnp.zeros((1, LANE_PAD), jnp.float32)
                            .at[:, :NUM_LABELS].set(head_b))
    return params


# ----------------------------- forward pass -----------------------------------
def bert_class_forward(params, ids, mask, token_type_ids):
    B, S = ids.shape

    # --- embeddings (table gathers are glue in plain JAX) ---
    pos = jnp.arange(S)
    x = (params["word_emb"][ids]
         + params["pos_emb"][pos][None, :, :]
         + params["type_emb"][token_type_ids])                  # (B, S, H)
    x = x.reshape(B * S, HIDDEN).astype(jnp.float32)

    # additive attention mask, pre-broadcast to the kernel's head-major batched
    # layout (NH*B, 1, S): row h*B + b carries batch b's mask.
    add_mask = (1.0 - mask.astype(jnp.float32)) * -10000.0      # (B, S)
    mask_hb = jnp.tile(add_mask, (NUM_HEADS, 1)).reshape(NUM_HEADS * B, 1, S)

    inputs = [
        x, mask_hb,
        params["emb_ln_g"], params["emb_ln_b"],
        params["qkv_w"], params["qkv_b"],
        params["o_w"], params["o_b"],
        params["attn_ln_g"], params["attn_ln_b"],
        params["ff1_w"], params["ff1_b"],
        params["ff2_w"], params["ff2_b"],
        params["ffn_ln_g"], params["ffn_ln_b"],
        params["pool_w"], params["pool_b"],
        params["head_w_pad"], params["head_b_pad"],
    ]

    # TODO(synk): for v7x / bert-base scale, add a parallel B*S row-tile grid axis
    # and an "arbitrary" layer axis with BlockSpec-streamed (Buffered(2)) weights.
    out_pad = pl.pallas_call(
        functools.partial(_bert_encoder_kernel, batch=B, seq=S),
        out_shape=jax.ShapeDtypeStruct((B, LANE_PAD), jnp.float32),
        in_specs=[_full_block(a.shape) for a in inputs],
        out_specs=_full_block((B, LANE_PAD)),
        compiler_params=pltpu.CompilerParams(
            vmem_limit_bytes=32 * 1024 * 1024),
    )(*inputs)

    return out_pad[:, :NUM_LABELS]                              # (B, 2)


# ----------------------------- driver -----------------------------------------
if __name__ == "__main__":
    key = jax.random.PRNGKey(0)
    pkey, ikey, tkey = jax.random.split(key, 3)
    params = init_params(pkey)

    B, S = 2, 8
    ids = jax.random.randint(ikey, (B, S), 0, VOCAB, dtype=jnp.int32)
    token_type_ids = jax.random.randint(tkey, (B, S), 0, TYPE_VOCAB, dtype=jnp.int32)
    mask = jnp.ones((B, S), jnp.int32).at[:, 6:].set(0)        # last two tokens padded

    out = bert_class_forward(params, ids, mask, token_type_ids)
    out = jax.block_until_ready(out)

    assert out.shape == (B, NUM_LABELS)
    assert bool(jnp.all(jnp.isfinite(out)))
    assert bool(jnp.all(jnp.abs(out) <= 1.0))                  # tanh range
    print("KERNEL_OK")
</pallas_src>

<mosaic_0001>
module attributes {stable_mosaic.version = 11 : i64} {
  func.func @_bert_encoder_kernel(%arg0: memref<16x128xf32, #tpu.memory_space<vmem>>, %arg1: memref<8x1x8xf32, #tpu.memory_space<vmem>>, %arg2: memref<1x128xf32, #tpu.memory_space<vmem>>, %arg3: memref<1x128xf32, #tpu.memory_space<vmem>>, %arg4: memref<2x128x384xbf16, #tpu.memory_space<vmem>>, %arg5: memref<2x1x384xf32, #tpu.memory_space<vmem>>, %arg6: memref<2x128x128xbf16, #tpu.memory_space<vmem>>, %arg7: memref<2x1x128xf32, #tpu.memory_space<vmem>>, %arg8: memref<2x1x128xf32, #tpu.memory_space<vmem>>, %arg9: memref<2x1x128xf32, #tpu.memory_space<vmem>>, %arg10: memref<2x128x256xbf16, #tpu.memory_space<vmem>>, %arg11: memref<2x1x256xf32, #tpu.memory_space<vmem>>, %arg12: memref<2x256x128xbf16, #tpu.memory_space<vmem>>, %arg13: memref<2x1x128xf32, #tpu.memory_space<vmem>>, %arg14: memref<2x1x128xf32, #tpu.memory_space<vmem>>, %arg15: memref<2x1x128xf32, #tpu.memory_space<vmem>>, %arg16: memref<128x128xbf16, #tpu.memory_space<vmem>>, %arg17: memref<1x128xf32, #tpu.memory_space<vmem>>, %arg18: memref<128x128xbf16, #tpu.memory_space<vmem>>, %arg19: memref<1x128xf32, #tpu.memory_space<vmem>>, %arg20: memref<2x128xf32, #tpu.memory_space<vmem>>) attributes {dimension_semantics = [], scalar_prefetch = 0 : i64, scratch_operands = 0 : i64, tpu.core_type = #tpu.core_type<tc>} {
    %c0 = arith.constant 0 : index
    %c0_0 = arith.constant 0 : index
    %0 = vector.load %arg0[%c0, %c0_0] : memref<16x128xf32, #tpu.memory_space<vmem>>, vector<16x128xf32>
    %c0_1 = arith.constant 0 : index
    %c0_2 = arith.constant 0 : index
    %1 = vector.load %arg2[%c0_1, %c0_2] : memref<1x128xf32, #tpu.memory_space<vmem>>, vector<1x128xf32>
    %c0_3 = arith.constant 0 : index
    %c0_4 = arith.constant 0 : index
    %2 = vector.load %arg3[%c0_3, %c0_4] : memref<1x128xf32, #tpu.memory_space<vmem>>, vector<1x128xf32>
    %cst = arith.constant dense<0.000000e+00> : vector<16xf32>
    %3 = vector.multi_reduction <add>, %0, %cst [1] : vector<16x128xf32> to vector<16xf32>
    %4 = vector.shape_cast %3 : vector<16xf32> to vector<16x1xf32>
    %cst_5 = arith.constant 1.280000e+02 : f32
    %5 = vector.broadcast %cst_5 : f32 to vector<16x1xf32>
    %6 = arith.divf %4, %5 : vector<16x1xf32>
    %7 = vector.broadcast %6 : vector<16x1xf32> to vector<16x128xf32>
    %8 = arith.subf %0, %7 : vector<16x128xf32>
    %9 = arith.mulf %8, %8 : vector<16x128xf32>
    %cst_6 = arith.constant dense<0.000000e+00> : vector<16xf32>
    %10 = vector.multi_reduction <add>, %9, %cst_6 [1] : vector<16x128xf32> to vector<16xf32>
    %11 = vector.shape_cast %10 : vector<16xf32> to vector<16x1xf32>
    %cst_7 = arith.constant 1.280000e+02 : f32
    %12 = vector.broadcast %cst_7 : f32 to vector<16x1xf32>
    %13 = arith.divf %11, %12 : vector<16x1xf32>
    %cst_8 = arith.constant 9.99999996E-13 : f32
    %14 = vector.broadcast %cst_8 : f32 to vector<16x1xf32>
    %15 = arith.addf %13, %14 : vector<16x1xf32>
    %16 = math.rsqrt %15 : vector<16x1xf32>
    %17 = vector.broadcast %16 : vector<16x1xf32> to vector<16x128xf32>
    %18 = arith.mulf %8, %17 : vector<16x128xf32>
    %19 = vector.broadcast %1 : vector<1x128xf32> to vector<16x128xf32>
    %20 = arith.mulf %18, %19 : vector<16x128xf32>
    %21 = vector.broadcast %2 : vector<1x128xf32> to vector<16x128xf32>
    %22 = arith.addf %20, %21 : vector<16x128xf32>
    %c0_9 = arith.constant 0 : index
    %c0_10 = arith.constant 0 : index
    %c0_11 = arith.constant 0 : index
    %23 = vector.load %arg1[%c0_9, %c0_10, %c0_11] : memref<8x1x8xf32, #tpu.memory_space<vmem>>, vector<8x1x8xf32>
    %c0_12 = arith.constant 0 : index
    %c0_13 = arith.constant 0 : index
    %c0_14 = arith.constant 0 : index
    %24 = vector.load %arg4[%c0_12, %c0_13, %c0_14] : memref<2x128x384xbf16, #tpu.memory_space<vmem>>, vector<1x128x384xbf16>
    %25 = vector.shape_cast %24 : vector<1x128x384xbf16> to vector<128x384xbf16>
    %c0_15 = arith.constant 0 : index
    %c0_16 = arith.constant 0 : index
    %c0_17 = arith.constant 0 : index
    %26 = vector.load %arg5[%c0_15, %c0_16, %c0_17] : memref<2x1x384xf32, #tpu.memory_space<vmem>>, vector<1x1x384xf32>
    %27 = vector.shape_cast %26 : vector<1x1x384xf32> to vector<1x384xf32>
    %28 = arith.truncf %22 : vector<16x128xf32> to vector<16x128xbf16>
    %cst_18 = arith.constant dense<0.000000e+00> : vector<16x384xf32>
    %29 = tpu.matmul %28, %25, %cst_18 {dimension_numbers = #tpu.dot_dimension_numbers<[1], [0], [0], [1], [0, 0, 1, 1], [], []>} : vector<16x128xbf16>, vector<128x384xbf16>, vector<16x384xf32> -> vector<16x384xf32>
    %30 = vector.broadcast %27 : vector<1x384xf32> to vector<16x384xf32>
    %31 = arith.addf %29, %30 : vector<16x384xf32>
    %32 = vector.extract_strided_slice %31 {offsets = [0, 0], sizes = [16, 32], strides = [1, 1]} : vector<16x384xf32> to vector<16x32xf32>
    %33 = vector.shape_cast %32 : vector<16x32xf32> to vector<2x8x32xf32>
    %34 = vector.extract_strided_slice %31 {offsets = [0, 32], sizes = [16, 32], strides = [1, 1]} : vector<16x384xf32> to vector<16x32xf32>
    %35 = vector.shape_cast %34 : vector<16x32xf32> to vector<2x8x32xf32>
    %36 = vector.extract_strided_slice %31 {offsets = [0, 64], sizes = [16, 32], strides = [1, 1]} : vector<16x384xf32> to vector<16x32xf32>
    %37 = vector.shape_cast %36 : vector<16x32xf32> to vector<2x8x32xf32>
    %38 = vector.extract_strided_slice %31 {offsets = [0, 96], sizes = [16, 32], strides = [1, 1]} : vector<16x384xf32> to vector<16x32xf32>
    %39 = vector.shape_cast %38 : vector<16x32xf32> to vector<2x8x32xf32>
    %40 = tpu.concatenate %33, %35, %37, %39 in 0 : vector<2x8x32xf32>, vector<2x8x32xf32>, vector<2x8x32xf32>, vector<2x8x32xf32> -> vector<8x8x32xf32>
    %41 = arith.truncf %40 : vector<8x8x32xf32> to vector<8x8x32xbf16>
    %42 = vector.extract_strided_slice %31 {offsets = [0, 128], sizes = [16, 32], strides = [1, 1]} : vector<16x384xf32> to vector<16x32xf32>
    %43 = vector.shape_cast %42 : vector<16x32xf32> to vector<2x8x32xf32>
    %44 = vector.extract_strided_slice %31 {offsets = [0, 160], sizes = [16, 32], strides = [1, 1]} : vector<16x384xf32> to vector<16x32xf32>
    %45 = vector.shape_cast %44 : vector<16x32xf32> to vector<2x8x32xf32>
    %46 = vector.extract_strided_slice %31 {offsets = [0, 192], sizes = [16, 32], strides = [1, 1]} : vector<16x384xf32> to vector<16x32xf32>
    %47 = vector.shape_cast %46 : vector<16x32xf32> to vector<2x8x32xf32>
    %48 = vector.extract_strided_slice %31 {offsets = [0, 224], sizes = [16, 32], strides = [1, 1]} : vector<16x384xf32> to vector<16x32xf32>
    %49 = vector.shape_cast %48 : vector<16x32xf32> to vector<2x8x32xf32>
    %50 = tpu.concatenate %43, %45, %47, %49 in 0 : vector<2x8x32xf32>, vector<2x8x32xf32>, vector<2x8x32xf32>, vector<2x8x32xf32> -> vector<8x8x32xf32>
    %51 = arith.truncf %50 : vector<8x8x32xf32> to vector<8x8x32xbf16>
    %52 = vector.extract_strided_slice %31 {offsets = [0, 256], sizes = [16, 32], strides = [1, 1]} : vector<16x384xf32> to vector<16x32xf32>
    %53 = vector.shape_cast %52 : vector<16x32xf32> to vector<2x8x32xf32>
    %54 = vector.extract_strided_slice %31 {offsets = [0, 288], sizes = [16, 32], strides = [1, 1]} : vector<16x384xf32> to vector<16x32xf32>
    %55 = vector.shape_cast %54 : vector<16x32xf32> to vector<2x8x32xf32>
    %56 = vector.extract_strided_slice %31 {offsets = [0, 320], sizes = [16, 32], strides = [1, 1]} : vector<16x384xf32> to vector<16x32xf32>
    %57 = vector.shape_cast %56 : vector<16x32xf32> to vector<2x8x32xf32>
    %58 = vector.extract_strided_slice %31 {offsets = [0, 352], sizes = [16, 32], strides = [1, 1]} : vector<16x384xf32> to vector<16x32xf32>
    %59 = vector.shape_cast %58 : vector<16x32xf32> to vector<2x8x32xf32>
    %60 = tpu.concatenate %53, %55, %57, %59 in 0 : vector<2x8x32xf32>, vector<2x8x32xf32>, vector<2x8x32xf32>, vector<2x8x32xf32> -> vector<8x8x32xf32>
    %61 = arith.truncf %60 : vector<8x8x32xf32> to vector<8x8x32xbf16>
    %cst_19 = arith.constant dense<0.000000e+00> : vector<8x8x8xf32>
    %62 = tpu.matmul %41, %51, %cst_19 {dimension_numbers = #tpu.dot_dimension_numbers<[2], [2], [1], [1], [0, 0, 0, 1, 1, 1], [0], [0]>} : vector<8x8x32xbf16>, vector<8x8x32xbf16>, vector<8x8x8xf32> -> vector<8x8x8xf32>
    %63 = vector.broadcast %23 : vector<8x1x8xf32> to vector<8x8x8xf32>
    %64 = arith.addf %62, %63 : vector<8x8x8xf32>
    %cst_20 = arith.constant dense<0xFF800000> : vector<8x8xf32>
    %65 = vector.multi_reduction <maximumf>, %64, %cst_20 [2] : vector<8x8x8xf32> to vector<8x8xf32>
    %66 = vector.shape_cast %65 : vector<8x8xf32> to vector<8x8x1xf32>
    %67 = vector.broadcast %66 : vector<8x8x1xf32> to vector<8x8x8xf32>
    %68 = arith.subf %64, %67 : vector<8x8x8xf32>
    %69 = math.exp %68 : vector<8x8x8xf32>
    %cst_21 = arith.constant dense<0.000000e+00> : vector<8x8xf32>
    %70 = vector.multi_reduction <add>, %69, %cst_21 [2] : vector<8x8x8xf32> to vector<8x8xf32>
    %71 = vector.shape_cast %70 : vector<8x8xf32> to vector<8x8x1xf32>
    %72 = tpu.reciprocal %71 {approx = true} : vector<8x8x1xf32> -> vector<8x8x1xf32>
    %73 = vector.broadcast %72 : vector<8x8x1xf32> to vector<8x8x8xf32>
    %74 = arith.mulf %69, %73 : vector<8x8x8xf32>
    %75 = arith.truncf %74 : vector<8x8x8xf32> to vector<8x8x8xbf16>
    %cst_22 = arith.constant dense<0.000000e+00> : vector<8x8x32xf32>
    %76 = tpu.matmul %75, %61, %cst_22 {dimension_numbers = #tpu.dot_dimension_numbers<[2], [1], [1], [2], [0, 0, 0, 1, 1, 2], [0], [0]>} : vector<8x8x8xbf16>, vector<8x8x32xbf16>, vector<8x8x32xf32> -> vector<8x8x32xf32>
    %77 = vector.extract_strided_slice %76 {offsets = [0, 0, 0], sizes = [2, 8, 32], strides = [1, 1, 1]} : vector<8x8x32xf32> to vector<2x8x32xf32>
    %78 = vector.shape_cast %77 : vector<2x8x32xf32> to vector<16x32xf32>
    %79 = vector.extract_strided_slice %76 {offsets = [2, 0, 0], sizes = [2, 8, 32], strides = [1, 1, 1]} : vector<8x8x32xf32> to vector<2x8x32xf32>
    %80 = vector.shape_cast %79 : vector<2x8x32xf32> to vector<16x32xf32>
    %81 = vector.extract_strided_slice %76 {offsets = [4, 0, 0], sizes = [2, 8, 32], strides = [1, 1, 1]} : vector<8x8x32xf32> to vector<2x8x32xf32>
    %82 = vector.shape_cast %81 : vector<2x8x32xf32> to vector<16x32xf32>
    %83 = vector.extract_strided_slice %76 {offsets = [6, 0, 0], sizes = [2, 8, 32], strides = [1, 1, 1]} : vector<8x8x32xf32> to vector<2x8x32xf32>
    %84 = vector.shape_cast %83 : vector<2x8x32xf32> to vector<16x32xf32>
    %85 = tpu.concatenate %78, %80, %82, %84 in 1 : vector<16x32xf32>, vector<16x32xf32>, vector<16x32xf32>, vector<16x32xf32> -> vector<16x128xf32>
    %c0_23 = arith.constant 0 : index
    %c0_24 = arith.constant 0 : index
    %c0_25 = arith.constant 0 : index
    %86 = vector.load %arg6[%c0_23, %c0_24, %c0_25] : memref<2x128x128xbf16, #tpu.memory_space<vmem>>, vector<1x128x128xbf16>
    %87 = vector.shape_cast %86 : vector<1x128x128xbf16> to vector<128x128xbf16>
    %c0_26 = arith.constant 0 : index
    %c0_27 = arith.constant 0 : index
    %c0_28 = arith.constant 0 : index
    %88 = vector.load %arg7[%c0_26, %c0_27, %c0_28] : memref<2x1x128xf32, #tpu.memory_space<vmem>>, vector<1x1x128xf32>
    %89 = vector.shape_cast %88 : vector<1x1x128xf32> to vector<1x128xf32>
    %90 = arith.truncf %85 : vector<16x128xf32> to vector<16x128xbf16>
    %cst_29 = arith.constant dense<0.000000e+00> : vector<16x128xf32>
    %91 = tpu.matmul %90, %87, %cst_29 {dimension_numbers = #tpu.dot_dimension_numbers<[1], [0], [0], [1], [0, 0, 1, 1], [], []>} : vector<16x128xbf16>, vector<128x128xbf16>, vector<16x128xf32> -> vector<16x128xf32>
    %92 = vector.broadcast %89 : vector<1x128xf32> to vector<16x128xf32>
    %93 = arith.addf %91, %92 : vector<16x128xf32>
    %94 = arith.addf %93, %22 : vector<16x128xf32>
    %c0_30 = arith.constant 0 : index
    %c0_31 = arith.constant 0 : index
    %c0_32 = arith.constant 0 : index
    %95 = vector.load %arg8[%c0_30, %c0_31, %c0_32] : memref<2x1x128xf32, #tpu.memory_space<vmem>>, vector<1x1x128xf32>
    %96 = vector.shape_cast %95 : vector<1x1x128xf32> to vector<1x128xf32>
    %c0_33 = arith.constant 0 : index
    %c0_34 = arith.constant 0 : index
    %c0_35 = arith.constant 0 : index
    %97 = vector.load %arg9[%c0_33, %c0_34, %c0_35] : memref<2x1x128xf32, #tpu.memory_space<vmem>>, vector<1x1x128xf32>
    %98 = vector.shape_cast %97 : vector<1x1x128xf32> to vector<1x128xf32>
    %cst_36 = arith.constant dense<0.000000e+00> : vector<16xf32>
    %99 = vector.multi_reduction <add>, %94, %cst_36 [1] : vector<16x128xf32> to vector<16xf32>
    %100 = vector.shape_cast %99 : vector<16xf32> to vector<16x1xf32>
    %cst_37 = arith.constant 1.280000e+02 : f32
    %101 = vector.broadcast %cst_37 : f32 to vector<16x1xf32>
    %102 = arith.divf %100, %101 : vector<16x1xf32>
    %103 = vector.broadcast %102 : vector<16x1xf32> to vector<16x128xf32>
    %104 = arith.subf %94, %103 : vector<16x128xf32>
    %105 = arith.mulf %104, %104 : vector<16x128xf32>
    %cst_38 = arith.constant dense<0.000000e+00> : vector<16xf32>
    %106 = vector.multi_reduction <add>, %105, %cst_38 [1] : vector<16x128xf32> to vector<16xf32>
    %107 = vector.shape_cast %106 : vector<16xf32> to vector<16x1xf32>
    %cst_39 = arith.constant 1.280000e+02 : f32
    %108 = vector.broadcast %cst_39 : f32 to vector<16x1xf32>
    %109 = arith.divf %107, %108 : vector<16x1xf32>
    %cst_40 = arith.constant 9.99999996E-13 : f32
    %110 = vector.broadcast %cst_40 : f32 to vector<16x1xf32>
    %111 = arith.addf %109, %110 : vector<16x1xf32>
    %112 = math.rsqrt %111 : vector<16x1xf32>
    %113 = vector.broadcast %112 : vector<16x1xf32> to vector<16x128xf32>
    %114 = arith.mulf %104, %113 : vector<16x128xf32>
    %115 = vector.broadcast %96 : vector<1x128xf32> to vector<16x128xf32>
    %116 = arith.mulf %114, %115 : vector<16x128xf32>
    %117 = vector.broadcast %98 : vector<1x128xf32> to vector<16x128xf32>
    %118 = arith.addf %116, %117 : vector<16x128xf32>
    %c0_41 = arith.constant 0 : index
    %c0_42 = arith.constant 0 : index
    %c0_43 = arith.constant 0 : index
    %119 = vector.load %arg10[%c0_41, %c0_42, %c0_43] : memref<2x128x256xbf16, #tpu.memory_space<vmem>>, vector<1x128x256xbf16>
    %120 = vector.shape_cast %119 : vector<1x128x256xbf16> to vector<128x256xbf16>
    %c0_44 = arith.constant 0 : index
    %c0_45 = arith.constant 0 : index
    %c0_46 = arith.constant 0 : index
    %121 = vector.load %arg11[%c0_44, %c0_45, %c0_46] : memref<2x1x256xf32, #tpu.memory_space<vmem>>, vector<1x1x256xf32>
    %122 = vector.shape_cast %121 : vector<1x1x256xf32> to vector<1x256xf32>
    %123 = arith.truncf %118 : vector<16x128xf32> to vector<16x128xbf16>
    %cst_47 = arith.constant dense<0.000000e+00> : vector<16x256xf32>
    %124 = tpu.matmul %123, %120, %cst_47 {dimension_numbers = #tpu.dot_dimension_numbers<[1], [0], [0], [1], [0, 0, 1, 1], [], []>} : vector<16x128xbf16>, vector<128x256xbf16>, vector<16x256xf32> -> vector<16x256xf32>
    %125 = vector.broadcast %122 : vector<1x256xf32> to vector<16x256xf32>
    %126 = arith.addf %124, %125 : vector<16x256xf32>
    %cst_48 = arith.constant 5.000000e-01 : f32
    %127 = vector.broadcast %cst_48 : f32 to vector<16x256xf32>
    %128 = arith.mulf %127, %126 : vector<16x256xf32>
    %cst_49 = arith.constant 4.471500e-02 : f32
    %129 = vector.broadcast %cst_49 : f32 to vector<16x256xf32>
    %130 = arith.mulf %129, %126 : vector<16x256xf32>
    %131 = arith.mulf %130, %126 : vector<16x256xf32>
    %132 = arith.mulf %131, %126 : vector<16x256xf32>
    %133 = arith.addf %126, %132 : vector<16x256xf32>
    %cst_50 = arith.constant 0.797884583 : f32
    %134 = vector.broadcast %cst_50 : f32 to vector<16x256xf32>
    %135 = arith.mulf %134, %133 : vector<16x256xf32>
    %136 = math.tanh %135 : vector<16x256xf32>
    %cst_51 = arith.constant 1.000000e+00 : f32
    %137 = vector.broadcast %cst_51 : f32 to vector<16x256xf32>
    %138 = arith.addf %137, %136 : vector<16x256xf32>
    %139 = arith.mulf %128, %138 : vector<16x256xf32>
    %c0_52 = arith.constant 0 : index
    %c0_53 = arith.constant 0 : index
    %c0_54 = arith.constant 0 : index
    %140 = vector.load %arg12[%c0_52, %c0_53, %c0_54] : memref<2x256x128xbf16, #tpu.memory_space<vmem>>, vector<1x256x128xbf16>
    %141 = vector.shape_cast %140 : vector<1x256x128xbf16> to vector<256x128xbf16>
    %c0_55 = arith.constant 0 : index
    %c0_56 = arith.constant 0 : index
    %c0_57 = arith.constant 0 : index
    %142 = vector.load %arg13[%c0_55, %c0_56, %c0_57] : memref<2x1x128xf32, #tpu.memory_space<vmem>>, vector<1x1x128xf32>
    %143 = vector.shape_cast %142 : vector<1x1x128xf32> to vector<1x128xf32>
    %144 = arith.truncf %139 : vector<16x256xf32> to vector<16x256xbf16>
    %cst_58 = arith.constant dense<0.000000e+00> : vector<16x128xf32>
    %145 = tpu.matmul %144, %141, %cst_58 {dimension_numbers = #tpu.dot_dimension_numbers<[1], [0], [0], [1], [0, 0, 1, 1], [], []>} : vector<16x256xbf16>, vector<256x128xbf16>, vector<16x128xf32> -> vector<16x128xf32>
    %146 = vector.broadcast %143 : vector<1x128xf32> to vector<16x128xf32>
    %147 = arith.addf %145, %146 : vector<16x128xf32>
    %148 = arith.addf %147, %118 : vector<16x128xf32>
    %c0_59 = arith.constant 0 : index
    %c0_60 = arith.constant 0 : index
    %c0_61 = arith.constant 0 : index
    %149 = vector.load %arg14[%c0_59, %c0_60, %c0_61] : memref<2x1x128xf32, #tpu.memory_space<vmem>>, vector<1x1x128xf32>
    %150 = vector.shape_cast %149 : vector<1x1x128xf32> to vector<1x128xf32>
    %c0_62 = arith.constant 0 : index
    %c0_63 = arith.constant 0 : index
    %c0_64 = arith.constant 0 : index
    %151 = vector.load %arg15[%c0_62, %c0_63, %c0_64] : memref<2x1x128xf32, #tpu.memory_space<vmem>>, vector<1x1x128xf32>
    %152 = vector.shape_cast %151 : vector<1x1x128xf32> to vector<1x128xf32>
    %cst_65 = arith.constant dense<0.000000e+00> : vector<16xf32>
    %153 = vector.multi_reduction <add>, %148, %cst_65 [1] : vector<16x128xf32> to vector<16xf32>
    %154 = vector.shape_cast %153 : vector<16xf32> to vector<16x1xf32>
    %cst_66 = arith.constant 1.280000e+02 : f32
    %155 = vector.broadcast %cst_66 : f32 to vector<16x1xf32>
    %156 = arith.divf %154, %155 : vector<16x1xf32>
    %157 = vector.broadcast %156 : vector<16x1xf32> to vector<16x128xf32>
    %158 = arith.subf %148, %157 : vector<16x128xf32>
    %159 = arith.mulf %158, %158 : vector<16x128xf32>
    %cst_67 = arith.constant dense<0.000000e+00> : vector<16xf32>
    %160 = vector.multi_reduction <add>, %159, %cst_67 [1] : vector<16x128xf32> to vector<16xf32>
    %161 = vector.shape_cast %160 : vector<16xf32> to vector<16x1xf32>
    %cst_68 = arith.constant 1.280000e+02 : f32
    %162 = vector.broadcast %cst_68 : f32 to vector<16x1xf32>
    %163 = arith.divf %161, %162 : vector<16x1xf32>
    %cst_69 = arith.constant 9.99999996E-13 : f32
    %164 = vector.broadcast %cst_69 : f32 to vector<16x1xf32>
    %165 = arith.addf %163, %164 : vector<16x1xf32>
    %166 = math.rsqrt %165 : vector<16x1xf32>
    %167 = vector.broadcast %166 : vector<16x1xf32> to vector<16x128xf32>
    %168 = arith.mulf %158, %167 : vector<16x128xf32>
    %169 = vector.broadcast %150 : vector<1x128xf32> to vector<16x128xf32>
    %170 = arith.mulf %168, %169 : vector<16x128xf32>
    %171 = vector.broadcast %152 : vector<1x128xf32> to vector<16x128xf32>
    %172 = arith.addf %170, %171 : vector<16x128xf32>
    %c1 = arith.constant 1 : index
    %c0_70 = arith.constant 0 : index
    %c0_71 = arith.constant 0 : index
    %173 = vector.load %arg4[%c1, %c0_70, %c0_71] : memref<2x128x384xbf16, #tpu.memory_space<vmem>>, vector<1x128x384xbf16>
    %174 = vector.shape_cast %173 : vector<1x128x384xbf16> to vector<128x384xbf16>
    %c1_72 = arith.constant 1 : index
    %c0_73 = arith.constant 0 : index
    %c0_74 = arith.constant 0 : index
    %175 = vector.load %arg5[%c1_72, %c0_73, %c0_74] : memref<2x1x384xf32, #tpu.memory_space<vmem>>, vector<1x1x384xf32>
    %176 = vector.shape_cast %175 : vector<1x1x384xf32> to vector<1x384xf32>
    %177 = arith.truncf %172 : vector<16x128xf32> to vector<16x128xbf16>
    %cst_75 = arith.constant dense<0.000000e+00> : vector<16x384xf32>
    %178 = tpu.matmul %177, %174, %cst_75 {dimension_numbers = #tpu.dot_dimension_numbers<[1], [0], [0], [1], [0, 0, 1, 1], [], []>} : vector<16x128xbf16>, vector<128x384xbf16>, vector<16x384xf32> -> vector<16x384xf32>
    %179 = vector.broadcast %176 : vector<1x384xf32> to vector<16x384xf32>
    %180 = arith.addf %178, %179 : vector<16x384xf32>
    %181 = vector.extract_strided_slice %180 {offsets = [0, 0], sizes = [16, 32], strides = [1, 1]} : vector<16x384xf32> to vector<16x32xf32>
    %182 = vector.shape_cast %181 : vector<16x32xf32> to vector<2x8x32xf32>
    %183 = vector.extract_strided_slice %180 {offsets = [0, 32], sizes = [16, 32], strides = [1, 1]} : vector<16x384xf32> to vector<16x32xf32>
    %184 = vector.shape_cast %183 : vector<16x32xf32> to vector<2x8x32xf32>
    %185 = vector.extract_strided_slice %180 {offsets = [0, 64], sizes = [16, 32], strides = [1, 1]} : vector<16x384xf32> to vector<16x32xf32>
    %186 = vector.shape_cast %185 : vector<16x32xf32> to vector<2x8x32xf32>
    %187 = vector.extract_strided_slice %180 {offsets = [0, 96], sizes = [16, 32], strides = [1, 1]} : vector<16x384xf32> to vector<16x32xf32>
    %188 = vector.shape_cast %187 : vector<16x32xf32> to vector<2x8x32xf32>
    %189 = tpu.concatenate %182, %184, %186, %188 in 0 : vector<2x8x32xf32>, vector<2x8x32xf32>, vector<2x8x32xf32>, vector<2x8x32xf32> -> vector<8x8x32xf32>
    %190 = arith.truncf %189 : vector<8x8x32xf32> to vector<8x8x32xbf16>
    %191 = vector.extract_strided_slice %180 {offsets = [0, 128], sizes = [16, 32], strides = [1, 1]} : vector<16x384xf32> to vector<16x32xf32>
    %192 = vector.shape_cast %191 : vector<16x32xf32> to vector<2x8x32xf32>
    %193 = vector.extract_strided_slice %180 {offsets = [0, 160], sizes = [16, 32], strides = [1, 1]} : vector<16x384xf32> to vector<16x32xf32>
    %194 = vector.shape_cast %193 : vector<16x32xf32> to vector<2x8x32xf32>
    %195 = vector.extract_strided_slice %180 {offsets = [0, 192], sizes = [16, 32], strides = [1, 1]} : vector<16x384xf32> to vector<16x32xf32>
    %196 = vector.shape_cast %195 : vector<16x32xf32> to vector<2x8x32xf32>
    %197 = vector.extract_strided_slice %180 {offsets = [0, 224], sizes = [16, 32], strides = [1, 1]} : vector<16x384xf32> to vector<16x32xf32>
    %198 = vector.shape_cast %197 : vector<16x32xf32> to vector<2x8x32xf32>
    %199 = tpu.concatenate %192, %194, %196, %198 in 0 : vector<2x8x32xf32>, vector<2x8x32xf32>, vector<2x8x32xf32>, vector<2x8x32xf32> -> vector<8x8x32xf32>
    %200 = arith.truncf %199 : vector<8x8x32xf32> to vector<8x8x32xbf16>
    %201 = vector.extract_strided_slice %180 {offsets = [0, 256], sizes = [16, 32], strides = [1, 1]} : vector<16x384xf32> to vector<16x32xf32>
    %202 = vector.shape_cast %201 : vector<16x32xf32> to vector<2x8x32xf32>
    %203 = vector.extract_strided_slice %180 {offsets = [0, 288], sizes = [16, 32], strides = [1, 1]} : vector<16x384xf32> to vector<16x32xf32>
    %204 = vector.shape_cast %203 : vector<16x32xf32> to vector<2x8x32xf32>
    %205 = vector.extract_strided_slice %180 {offsets = [0, 320], sizes = [16, 32], strides = [1, 1]} : vector<16x384xf32> to vector<16x32xf32>
    %206 = vector.shape_cast %205 : vector<16x32xf32> to vector<2x8x32xf32>
    %207 = vector.extract_strided_slice %180 {offsets = [0, 352], sizes = [16, 32], strides = [1, 1]} : vector<16x384xf32> to vector<16x32xf32>
    %208 = vector.shape_cast %207 : vector<16x32xf32> to vector<2x8x32xf32>
    %209 = tpu.concatenate %202, %204, %206, %208 in 0 : vector<2x8x32xf32>, vector<2x8x32xf32>, vector<2x8x32xf32>, vector<2x8x32xf32> -> vector<8x8x32xf32>
    %210 = arith.truncf %209 : vector<8x8x32xf32> to vector<8x8x32xbf16>
    %cst_76 = arith.constant dense<0.000000e+00> : vector<8x8x8xf32>
    %211 = tpu.matmul %190, %200, %cst_76 {dimension_numbers = #tpu.dot_dimension_numbers<[2], [2], [1], [1], [0, 0, 0, 1, 1, 1], [0], [0]>} : vector<8x8x32xbf16>, vector<8x8x32xbf16>, vector<8x8x8xf32> -> vector<8x8x8xf32>
    %212 = vector.broadcast %23 : vector<8x1x8xf32> to vector<8x8x8xf32>
    %213 = arith.addf %211, %212 : vector<8x8x8xf32>
    %cst_77 = arith.constant dense<0xFF800000> : vector<8x8xf32>
    %214 = vector.multi_reduction <maximumf>, %213, %cst_77 [2] : vector<8x8x8xf32> to vector<8x8xf32>
    %215 = vector.shape_cast %214 : vector<8x8xf32> to vector<8x8x1xf32>
    %216 = vector.broadcast %215 : vector<8x8x1xf32> to vector<8x8x8xf32>
    %217 = arith.subf %213, %216 : vector<8x8x8xf32>
    %218 = math.exp %217 : vector<8x8x8xf32>
    %cst_78 = arith.constant dense<0.000000e+00> : vector<8x8xf32>
    %219 = vector.multi_reduction <add>, %218, %cst_78 [2] : vector<8x8x8xf32> to vector<8x8xf32>
    %220 = vector.shape_cast %219 : vector<8x8xf32> to vector<8x8x1xf32>
    %221 = tpu.reciprocal %220 {approx = true} : vector<8x8x1xf32> -> vector<8x8x1xf32>
    %222 = vector.broadcast %221 : vector<8x8x1xf32> to vector<8x8x8xf32>
    %223 = arith.mulf %218, %222 : vector<8x8x8xf32>
    %224 = arith.truncf %223 : vector<8x8x8xf32> to vector<8x8x8xbf16>
    %cst_79 = arith.constant dense<0.000000e+00> : vector<8x8x32xf32>
    %225 = tpu.matmul %224, %210, %cst_79 {dimension_numbers = #tpu.dot_dimension_numbers<[2], [1], [1], [2], [0, 0, 0, 1, 1, 2], [0], [0]>} : vector<8x8x8xbf16>, vector<8x8x32xbf16>, vector<8x8x32xf32> -> vector<8x8x32xf32>
    %226 = vector.extract_strided_slice %225 {offsets = [0, 0, 0], sizes = [2, 8, 32], strides = [1, 1, 1]} : vector<8x8x32xf32> to vector<2x8x32xf32>
    %227 = vector.shape_cast %226 : vector<2x8x32xf32> to vector<16x32xf32>
    %228 = vector.extract_strided_slice %225 {offsets = [2, 0, 0], sizes = [2, 8, 32], strides = [1, 1, 1]} : vector<8x8x32xf32> to vector<2x8x32xf32>
    %229 = vector.shape_cast %228 : vector<2x8x32xf32> to vector<16x32xf32>
    %230 = vector.extract_strided_slice %225 {offsets = [4, 0, 0], sizes = [2, 8, 32], strides = [1, 1, 1]} : vector<8x8x32xf32> to vector<2x8x32xf32>
    %231 = vector.shape_cast %230 : vector<2x8x32xf32> to vector<16x32xf32>
    %232 = vector.extract_strided_slice %225 {offsets = [6, 0, 0], sizes = [2, 8, 32], strides = [1, 1, 1]} : vector<8x8x32xf32> to vector<2x8x32xf32>
    %233 = vector.shape_cast %232 : vector<2x8x32xf32> to vector<16x32xf32>
    %234 = tpu.concatenate %227, %229, %231, %233 in 1 : vector<16x32xf32>, vector<16x32xf32>, vector<16x32xf32>, vector<16x32xf32> -> vector<16x128xf32>
    %c1_80 = arith.constant 1 : index
    %c0_81 = arith.constant 0 : index
    %c0_82 = arith.constant 0 : index
    %235 = vector.load %arg6[%c1_80, %c0_81, %c0_82] : memref<2x128x128xbf16, #tpu.memory_space<vmem>>, vector<1x128x128xbf16>
    %236 = vector.shape_cast %235 : vector<1x128x128xbf16> to vector<128x128xbf16>
    %c1_83 = arith.constant 1 : index
    %c0_84 = arith.constant 0 : index
    %c0_85 = arith.constant 0 : index
    %237 = vector.load %arg7[%c1_83, %c0_84, %c0_85] : memref<2x1x128xf32, #tpu.memory_space<vmem>>, vector<1x1x128xf32>
    %238 = vector.shape_cast %237 : vector<1x1x128xf32> to vector<1x128xf32>
    %239 = arith.truncf %234 : vector<16x128xf32> to vector<16x128xbf16>
    %cst_86 = arith.constant dense<0.000000e+00> : vector<16x128xf32>
    %240 = tpu.matmul %239, %236, %cst_86 {dimension_numbers = #tpu.dot_dimension_numbers<[1], [0], [0], [1], [0, 0, 1, 1], [], []>} : vector<16x128xbf16>, vector<128x128xbf16>, vector<16x128xf32> -> vector<16x128xf32>
    %241 = vector.broadcast %238 : vector<1x128xf32> to vector<16x128xf32>
    %242 = arith.addf %240, %241 : vector<16x128xf32>
    %243 = arith.addf %242, %172 : vector<16x128xf32>
    %c1_87 = arith.constant 1 : index
    %c0_88 = arith.constant 0 : index
    %c0_89 = arith.constant 0 : index
    %244 = vector.load %arg8[%c1_87, %c0_88, %c0_89] : memref<2x1x128xf32, #tpu.memory_space<vmem>>, vector<1x1x128xf32>
    %245 = vector.shape_cast %244 : vector<1x1x128xf32> to vector<1x128xf32>
    %c1_90 = arith.constant 1 : index
    %c0_91 = arith.constant 0 : index
    %c0_92 = arith.constant 0 : index
    %246 = vector.load %arg9[%c1_90, %c0_91, %c0_92] : memref<2x1x128xf32, #tpu.memory_space<vmem>>, vector<1x1x128xf32>
    %247 = vector.shape_cast %246 : vector<1x1x128xf32> to vector<1x128xf32>
    %cst_93 = arith.constant dense<0.000000e+00> : vector<16xf32>
    %248 = vector.multi_reduction <add>, %243, %cst_93 [1] : vector<16x128xf32> to vector<16xf32>
    %249 = vector.shape_cast %248 : vector<16xf32> to vector<16x1xf32>
    %cst_94 = arith.constant 1.280000e+02 : f32
    %250 = vector.broadcast %cst_94 : f32 to vector<16x1xf32>
    %251 = arith.divf %249, %250 : vector<16x1xf32>
    %252 = vector.broadcast %251 : vector<16x1xf32> to vector<16x128xf32>
    %253 = arith.subf %243, %252 : vector<16x128xf32>
    %254 = arith.mulf %253, %253 : vector<16x128xf32>
    %cst_95 = arith.constant dense<0.000000e+00> : vector<16xf32>
    %255 = vector.multi_reduction <add>, %254, %cst_95 [1] : vector<16x128xf32> to vector<16xf32>
    %256 = vector.shape_cast %255 : vector<16xf32> to vector<16x1xf32>
    %cst_96 = arith.constant 1.280000e+02 : f32
    %257 = vector.broadcast %cst_96 : f32 to vector<16x1xf32>
    %258 = arith.divf %256, %257 : vector<16x1xf32>
    %cst_97 = arith.constant 9.99999996E-13 : f32
    %259 = vector.broadcast %cst_97 : f32 to vector<16x1xf32>
    %260 = arith.addf %258, %259 : vector<16x1xf32>
    %261 = math.rsqrt %260 : vector<16x1xf32>
    %262 = vector.broadcast %261 : vector<16x1xf32> to vector<16x128xf32>
    %263 = arith.mulf %253, %262 : vector<16x128xf32>
    %264 = vector.broadcast %245 : vector<1x128xf32> to vector<16x128xf32>
    %265 = arith.mulf %263, %264 : vector<16x128xf32>
    %266 = vector.broadcast %247 : vector<1x128xf32> to vector<16x128xf32>
    %267 = arith.addf %265, %266 : vector<16x128xf32>
    %c1_98 = arith.constant 1 : index
    %c0_99 = arith.constant 0 : index
    %c0_100 = arith.constant 0 : index
    %268 = vector.load %arg10[%c1_98, %c0_99, %c0_100] : memref<2x128x256xbf16, #tpu.memory_space<vmem>>, vector<1x128x256xbf16>
    %269 = vector.shape_cast %268 : vector<1x128x256xbf16> to vector<128x256xbf16>
    %c1_101 = arith.constant 1 : index
    %c0_102 = arith.constant 0 : index
    %c0_103 = arith.constant 0 : index
    %270 = vector.load %arg11[%c1_101, %c0_102, %c0_103] : memref<2x1x256xf32, #tpu.memory_space<vmem>>, vector<1x1x256xf32>
    %271 = vector.shape_cast %270 : vector<1x1x256xf32> to vector<1x256xf32>
    %272 = arith.truncf %267 : vector<16x128xf32> to vector<16x128xbf16>
    %cst_104 = arith.constant dense<0.000000e+00> : vector<16x256xf32>
    %273 = tpu.matmul %272, %269, %cst_104 {dimension_numbers = #tpu.dot_dimension_numbers<[1], [0], [0], [1], [0, 0, 1, 1], [], []>} : vector<16x128xbf16>, vector<128x256xbf16>, vector<16x256xf32> -> vector<16x256xf32>
    %274 = vector.broadcast %271 : vector<1x256xf32> to vector<16x256xf32>
    %275 = arith.addf %273, %274 : vector<16x256xf32>
    %cst_105 = arith.constant 5.000000e-01 : f32
    %276 = vector.broadcast %cst_105 : f32 to vector<16x256xf32>
    %277 = arith.mulf %276, %275 : vector<16x256xf32>
    %cst_106 = arith.constant 4.471500e-02 : f32
    %278 = vector.broadcast %cst_106 : f32 to vector<16x256xf32>
    %279 = arith.mulf %278, %275 : vector<16x256xf32>
    %280 = arith.mulf %279, %275 : vector<16x256xf32>
    %281 = arith.mulf %280, %275 : vector<16x256xf32>
    %282 = arith.addf %275, %281 : vector<16x256xf32>
    %cst_107 = arith.constant 0.797884583 : f32
    %283 = vector.broadcast %cst_107 : f32 to vector<16x256xf32>
    %284 = arith.mulf %283, %282 : vector<16x256xf32>
    %285 = math.tanh %284 : vector<16x256xf32>
    %cst_108 = arith.constant 1.000000e+00 : f32
    %286 = vector.broadcast %cst_108 : f32 to vector<16x256xf32>
    %287 = arith.addf %286, %285 : vector<16x256xf32>
    %288 = arith.mulf %277, %287 : vector<16x256xf32>
    %c1_109 = arith.constant 1 : index
    %c0_110 = arith.constant 0 : index
    %c0_111 = arith.constant 0 : index
    %289 = vector.load %arg12[%c1_109, %c0_110, %c0_111] : memref<2x256x128xbf16, #tpu.memory_space<vmem>>, vector<1x256x128xbf16>
    %290 = vector.shape_cast %289 : vector<1x256x128xbf16> to vector<256x128xbf16>
    %c1_112 = arith.constant 1 : index
    %c0_113 = arith.constant 0 : index
    %c0_114 = arith.constant 0 : index
    %291 = vector.load %arg13[%c1_112, %c0_113, %c0_114] : memref<2x1x128xf32, #tpu.memory_space<vmem>>, vector<1x1x128xf32>
    %292 = vector.shape_cast %291 : vector<1x1x128xf32> to vector<1x128xf32>
    %293 = arith.truncf %288 : vector<16x256xf32> to vector<16x256xbf16>
    %cst_115 = arith.constant dense<0.000000e+00> : vector<16x128xf32>
    %294 = tpu.matmul %293, %290, %cst_115 {dimension_numbers = #tpu.dot_dimension_numbers<[1], [0], [0], [1], [0, 0, 1, 1], [], []>} : vector<16x256xbf16>, vector<256x128xbf16>, vector<16x128xf32> -> vector<16x128xf32>
    %295 = vector.broadcast %292 : vector<1x128xf32> to vector<16x128xf32>
    %296 = arith.addf %294, %295 : vector<16x128xf32>
    %297 = arith.addf %296, %267 : vector<16x128xf32>
    %c1_116 = arith.constant 1 : index
    %c0_117 = arith.constant 0 : index
    %c0_118 = arith.constant 0 : index
    %298 = vector.load %arg14[%c1_116, %c0_117, %c0_118] : memref<2x1x128xf32, #tpu.memory_space<vmem>>, vector<1x1x128xf32>
    %299 = vector.shape_cast %298 : vector<1x1x128xf32> to vector<1x128xf32>
    %c1_119 = arith.constant 1 : index
    %c0_120 = arith.constant 0 : index
    %c0_121 = arith.constant 0 : index
    %300 = vector.load %arg15[%c1_119, %c0_120, %c0_121] : memref<2x1x128xf32, #tpu.memory_space<vmem>>, vector<1x1x128xf32>
    %301 = vector.shape_cast %300 : vector<1x1x128xf32> to vector<1x128xf32>
    %cst_122 = arith.constant dense<0.000000e+00> : vector<16xf32>
    %302 = vector.multi_reduction <add>, %297, %cst_122 [1] : vector<16x128xf32> to vector<16xf32>
    %303 = vector.shape_cast %302 : vector<16xf32> to vector<16x1xf32>
    %cst_123 = arith.constant 1.280000e+02 : f32
    %304 = vector.broadcast %cst_123 : f32 to vector<16x1xf32>
    %305 = arith.divf %303, %304 : vector<16x1xf32>
    %306 = vector.broadcast %305 : vector<16x1xf32> to vector<16x128xf32>
    %307 = arith.subf %297, %306 : vector<16x128xf32>
    %308 = arith.mulf %307, %307 : vector<16x128xf32>
    %cst_124 = arith.constant dense<0.000000e+00> : vector<16xf32>
    %309 = vector.multi_reduction <add>, %308, %cst_124 [1] : vector<16x128xf32> to vector<16xf32>
    %310 = vector.shape_cast %309 : vector<16xf32> to vector<16x1xf32>
    %cst_125 = arith.constant 1.280000e+02 : f32
    %311 = vector.broadcast %cst_125 : f32 to vector<16x1xf32>
    %312 = arith.divf %310, %311 : vector<16x1xf32>
    %cst_126 = arith.constant 9.99999996E-13 : f32
    %313 = vector.broadcast %cst_126 : f32 to vector<16x1xf32>
    %314 = arith.addf %312, %313 : vector<16x1xf32>
    %315 = math.rsqrt %314 : vector<16x1xf32>
    %316 = vector.broadcast %315 : vector<16x1xf32> to vector<16x128xf32>
    %317 = arith.mulf %307, %316 : vector<16x128xf32>
    %318 = vector.broadcast %299 : vector<1x128xf32> to vector<16x128xf32>
    %319 = arith.mulf %317, %318 : vector<16x128xf32>
    %320 = vector.broadcast %301 : vector<1x128xf32> to vector<16x128xf32>
    %321 = arith.addf %319, %320 : vector<16x128xf32>
    %322 = vector.shape_cast %321 : vector<16x128xf32> to vector<2x8x128xf32>
    %323 = vector.extract_strided_slice %322 {offsets = [0, 0, 0], sizes = [2, 1, 128], strides = [1, 1, 1]} : vector<2x8x128xf32> to vector<2x1x128xf32>
    %324 = vector.shape_cast %323 : vector<2x1x128xf32> to vector<2x128xf32>
    %c0_127 = arith.constant 0 : index
    %c0_128 = arith.constant 0 : index
    %325 = vector.load %arg16[%c0_127, %c0_128] : memref<128x128xbf16, #tpu.memory_space<vmem>>, vector<128x128xbf16>
    %c0_129 = arith.constant 0 : index
    %c0_130 = arith.constant 0 : index
    %326 = vector.load %arg17[%c0_129, %c0_130] : memref<1x128xf32, #tpu.memory_space<vmem>>, vector<1x128xf32>
    %327 = arith.truncf %324 : vector<2x128xf32> to vector<2x128xbf16>
    %cst_131 = arith.constant dense<0.000000e+00> : vector<2x128xf32>
    %328 = tpu.matmul %327, %325, %cst_131 {dimension_numbers = #tpu.dot_dimension_numbers<[1], [0], [0], [1], [0, 0, 1, 1], [], []>} : vector<2x128xbf16>, vector<128x128xbf16>, vector<2x128xf32> -> vector<2x128xf32>
    %329 = vector.broadcast %326 : vector<1x128xf32> to vector<2x128xf32>
    %330 = arith.addf %328, %329 : vector<2x128xf32>
    %331 = math.tanh %330 : vector<2x128xf32>
    %c0_132 = arith.constant 0 : index
    %c0_133 = arith.constant 0 : index
    %332 = vector.load %arg18[%c0_132, %c0_133] : memref<128x128xbf16, #tpu.memory_space<vmem>>, vector<128x128xbf16>
    %c0_134 = arith.constant 0 : index
    %c0_135 = arith.constant 0 : index
    %333 = vector.load %arg19[%c0_134, %c0_135] : memref<1x128xf32, #tpu.memory_space<vmem>>, vector<1x128xf32>
    %334 = arith.truncf %331 : vector<2x128xf32> to vector<2x128xbf16>
    %cst_136 = arith.constant dense<0.000000e+00> : vector<2x128xf32>
    %335 = tpu.matmul %334, %332, %cst_136 {dimension_numbers = #tpu.dot_dimension_numbers<[1], [0], [0], [1], [0, 0, 1, 1], [], []>} : vector<2x128xbf16>, vector<128x128xbf16>, vector<2x128xf32> -> vector<2x128xf32>
    %336 = vector.broadcast %333 : vector<1x128xf32> to vector<2x128xf32>
    %337 = arith.addf %335, %336 : vector<2x128xf32>
    %338 = math.tanh %337 : vector<2x128xf32>
    %c0_137 = arith.constant 0 : index
    %c0_138 = arith.constant 0 : index
    %339 = vector.load %arg20[%c0_137, %c0_138] : memref<2x128xf32, #tpu.memory_space<vmem>>, vector<2x128xf32>
    tpu.vector_store %arg20[%c0_137, %c0_138], %338 {strides = array<i32>} : memref<2x128xf32, #tpu.memory_space<vmem>>, vector<2x128xf32>,
    return
  }
}

</mosaic_0001>

<bundles_post_ra>
// kernel: tpu_custom_call.1
= control target key start
LH: loop header
LB: loop body
LE: loop exit
PB: predicated region body
PF: predicated region fallthrough
CT: control target
= control target key end

     0   :  { %s6148_s0 = inlined_call_operand.hbm [shape: f32[16,128], index: 0, kind: input, shape index: {}]   ;;  %s6149_s1 = inlined_call_operand.hbm [shape: f32[8,1,8], index: 1, kind: input, shape index: {}]   ;;  %s6150_s2 = inlined_call_operand.hbm [shape: f32[1,128], index: 2, kind: input, shape index: {}]   ;;  %s6151_s3 = inlined_call_operand.hbm [shape: f32[1,128], index: 3, kind: input, shape index: {}]   ;;  %s6152_s4 = inlined_call_operand.hbm [shape: bf16[2,128,384], index: 4, kind: input, shape index: {}]   ;;  %s6153_s5 = inlined_call_operand.vmem [shape: f32[2,1,384], index: 5, kind: input, shape index: {}]   ;;  %s6154_s6 = inlined_call_operand.hbm [shape: bf16[2,128,128], index: 6, kind: input, shape index: {}]   ;;  %s6155_s7 = inlined_call_operand.vmem [shape: f32[2,1,128], index: 7, kind: input, shape index: {}]   ;;  %s6156_s8 = inlined_call_operand.vmem [shape: f32[2,1,128], index: 8, kind: input, shape index: {}]   ;;  %s6157_s9 = inlined_call_operand.vmem [shape: f32[2,1,128], index: 9, kind: input, shape index: {}]   ;;  %s6158_s10 = inlined_call_operand.hbm [shape: bf16[2,128,256], index: 10, kind: input, shape index: {}]   ;;  %s6159_s11 = inlined_call_operand.vmem [shape: f32[2,1,256], index: 11, kind: input, shape index: {}]   ;;  %s6160_s12 = inlined_call_operand.hbm [shape: bf16[2,256,128], index: 12, kind: input, shape index: {}]   ;;  %s6161_s13 = inlined_call_operand.vmem [shape: f32[2,1,128], index: 13, kind: input, shape index: {}]   ;;  %s6162_s14 = inlined_call_operand.vmem [shape: f32[2,1,128], index: 14, kind: input, shape index: {}]   ;;  %s6163_s15 = inlined_call_operand.vmem [shape: f32[2,1,128], index: 15, kind: input, shape index: {}]   ;;  %s6164_s16 = inlined_call_operand.hbm [shape: bf16[128,128], index: 16, kind: input, shape index: {}]   ;;  %s6165_s17 = inlined_call_operand.vmem [shape: f32[1,128], index: 17, kind: input, shape index: {}]   ;;  %s6166_s18 = inlined_call_operand.hbm [shape: bf16[128,128], index: 18, kind: input, shape index: {}]   ;;  %s6167_s19 = inlined_call_operand.vmem [shape: f32[1,128], index: 19, kind: input, shape index: {}]   ;;  %s6168_s20 = inlined_call_operand.hbm [shape: f32[2,128], index: 20, kind: output, shape index: {}]  }
   0x1   :  { %6171 = sst [smem:[#allocation27_spill]] %s6148_s0 }
   0x2   :  { %6172 = sst [smem:[#allocation28_spill]] %s6149_s1 }
   0x3   :  { %6173 = sst [smem:[#allocation29_spill]] %s6150_s2 }
   0x4   :  { %6174 = sst [smem:[#allocation30_spill]] %s6151_s3 }
   0x5   :  { %6175 = sst [smem:[#allocation31_spill]] %s6152_s4 }
   0x6   :  { %25 = vsyncpa [#allocation3], 0 }
   0x7   :  { %26 = vsyncpa [#allocation6], 0 }
   0x8   :  { %27 = vsyncpa [#allocation9], 0 }
   0x9   :  { %28 = vsyncpa [#allocation12], 0 }
   0xa   :  { %29 = vsyncpa [#allocation15], 0 }
   0xb   :  { %30 = vsyncpa [#allocation18], 0 }
   0xc   :  { %31 = vsyncpa [#allocation4], 0  ;;  %s5452_s1 = smov [#allocation5]  }
   0xd   :  { %s49_s22 = sshll.u32 %s5452_s1, 4  ;;  %s50_s22 = int_to_ptr.vmem [resolvable:$true] %s49_s22 }
   0xe   :  { %s5226_s23 = scalar_lea.vmem %s50_s22, 128  ;;  %p5231_p1 = scmp.lt.s32.totalorder %s50_s22, %s50_s22 }
   0xf   :  { %p5227_p0 = scmp.ne.s32.totalorder %s50_s22, %s5226_s23  ;;  %p5232_p2 = scmp.lt.s32.totalorder %s5226_s23, %s5226_s23 }
  0x11   :  { %p5233_p3 = por %p5232_p2, %p5231_p1 }
  0x13   :  { %p5234_p4 = pnand %p5233_p3, %p5227_p0 }
  0x15   :  { %5237 = shalt.err (!%p5234_p4)
}
  0x16   :  { %s5453_s24 = smov 16   ;;  %s5454_s2 = smov 1  }
  0x17   :  { %s6176_s26 = sld [smem:[#allocation28_spill]]  ;;  %s5455_s27 = smov [#allocation8]  }
  0x18   :  { %s72_s28 = sshll.u32 %s5455_s27, 4  ;;  %s5456_s4 = smov [#allocation11]   ;;  %s73_s28 = int_to_ptr.vmem [resolvable:$true] %s72_s28 }
  0x19   :  { %s95_s29 = sshll.u32 %s5456_s4, 4  ;;  %s5246_s30 = scalar_lea.vmem %s73_s28, 16  ;;  %s96_s29 = int_to_ptr.vmem [resolvable:$true] %s95_s29 }
  0x1a   :  { %p5247_p5 = scmp.ne.s32.totalorder %s73_s28, %s5246_s30  ;;  %s5250_s0 = scalar_lea.vmem %s73_s28, 32 }
  0x1b   :  { %p5251_p6 = scmp.lt.s32.totalorder %s73_s28, %s73_s28  ;;  %p5252_p7 = scmp.lt.s32.totalorder %s5250_s0, %s5246_s30 }
  0x1d   :  { %55 = dma.hbm_to_vmem [thread:$0]  %s6176_s26, 128, %s50_s22, [#allocation6], %s5453_s24, %s5453_s24, %s5454_s2  }
  0x1e   :  { %p5253_p8 = por %p5252_p7, %p5251_p6 }
  0x20   :  { %p5254_p9 = pnand %p5253_p8, %p5247_p5 }
  0x22   :  { %5257 = shalt.err (!%p5254_p9)
}
  0x23   :  { %s6177_s23 = sld [smem:[#allocation30_spill]]  ;;  %s5266_s25 = scalar_lea.vmem %s96_s29, 2048 }
  0x24   :  { %p5267_p10 = scmp.ne.s32.totalorder %s96_s29, %s5266_s25  ;;  %p5271_p11 = scmp.lt.s32.totalorder %s96_s29, %s96_s29 }
  0x25   :  { %p5272_p12 = scmp.lt.s32.totalorder %s5266_s25, %s5266_s25 }
  0x27   :  { %p5273_p13 = por %p5272_p12, %p5271_p11 }
  0x29   :  { %75 = dma.hbm_to_vmem [thread:$0]  %s6177_s23, 16, %s73_s28, [#allocation9]  }
  0x2a   :  { %p5274_p0 = pnand %p5273_p13, %p5267_p10 }
  0x2c   :  { %5277 = shalt.err (!%p5274_p0)
}
  0x2d   :  { %s6169_s22 = smov 64   ;;  %s5458_s24 = smov 4  }
  0x2e   :  { %101 = dma.hbm_to_vmem [thread:$0]  %s6154_s6, 2048, %s96_s29, [#allocation12], %s6169_s22, %s6169_s22, %s5458_s24  }
  0x2f   :  { %s5459_s26 = smov [#allocation14]   ;;  %s5460_s28 = smov [#allocation2]  }
  0x30   :  { %s127_s27 = sshll.u32 %s5459_s26, 4  ;;  %s37_s4 = sshll.u32 %s5460_s28, 4  ;;  %s128_s27 = int_to_ptr.vmem [resolvable:$true] %s127_s27  ;;  %s38_s4 = int_to_ptr.vmem [resolvable:$true] %s37_s4 }
  0x31   :  { %s5286_s30 = scalar_lea.vmem %s128_s27, 4096  ;;  %p5291_p2 = scmp.lt.s32.totalorder %s128_s27, %s128_s27 }
  0x32   :  { %p5287_p1 = scmp.ne.s32.totalorder %s128_s27, %s5286_s30  ;;  %p5292_p3 = scmp.lt.s32.totalorder %s5286_s30, %s5286_s30 }
  0x34   :  { %p5293_p4 = por %p5292_p3, %p5291_p2 }
  0x36   :  { %p5294_p5 = pnand %p5293_p4, %p5287_p1 }
  0x38   :  { %5297 = shalt.err (!%p5294_p5)
}
  0x39   :  { %133 = dma.hbm_to_vmem [thread:$0]  %s6160_s12, 4096, %s128_s27, [#allocation15], %s6169_s22, %s6169_s22, %s5458_s24  }
  0x3a   :  { %s5306_s6 = scalar_lea.vmem %s38_s4, 256  ;;  %p5311_p7 = scmp.lt.s32.totalorder %s38_s4, %s38_s4 }
  0x3b   :  { %p5307_p6 = scmp.ne.s32.totalorder %s38_s4, %s5306_s6  ;;  %p5312_p8 = scmp.lt.s32.totalorder %s5306_s6, %s5306_s6 }
  0x3d   :  { %p5313_p9 = por %p5312_p8, %p5311_p7 }
  0x3f   :  { %p5314_p10 = pnand %p5313_p9, %p5307_p6 }
  0x41   :  { %5317 = shalt.err (!%p5314_p10)
}
  0x42   :  { %s5461_s29 = smov 128   ;;  %s5462_s1 = smov 8  }
  0x43   :  { %s6178_s2 = sld [smem:[#allocation27_spill]]  ;;  %s5463_s3 = smov [#allocation7]  }
  0x44   :  { %s62_s26 = sshll.u32 %s5463_s3, 4  ;;  %s5464_s12 = smov [#allocation10]   ;;  %s63_s26 = int_to_ptr.vmem [resolvable:$true] %s62_s26 }
  0x45   :  { %s81_s27 = sshll.u32 %s5464_s12, 4  ;;  %s5326_s28 = scalar_lea.vmem %s63_s26, 16  ;;  %s82_s27 = int_to_ptr.vmem [resolvable:$true] %s81_s27 }
  0x46   :  { %p5327_p11 = scmp.ne.s32.totalorder %s63_s26, %s5326_s28  ;;  %s5330_s30 = scalar_lea.vmem %s63_s26, 32 }
  0x47   :  { %p5331_p12 = scmp.lt.s32.totalorder %s63_s26, %s63_s26  ;;  %p5332_p13 = scmp.lt.s32.totalorder %s5330_s30, %s5326_s28 }
  0x49   :  { %43 = dma.hbm_to_vmem [thread:$0]  %s6178_s2, 256, %s38_s4, [#allocation3], %s5461_s29, %s5461_s29, %s5462_s1  }
  0x4a   :  { %p5333_p0 = por %p5332_p13, %p5331_p12 }
  0x4c   :  { %p5334_p1 = pnand %p5333_p0, %p5327_p11 }
  0x4e   :  { %5337 = shalt.err (!%p5334_p1)
}
  0x4f   :  { %s6179_s6 = sld [smem:[#allocation29_spill]]  ;;  %s5346_s23 = scalar_lea.vmem %s82_s27, 6144 }
  0x50   :  { %p5347_p2 = scmp.ne.s32.totalorder %s82_s27, %s5346_s23  ;;  %p5351_p3 = scmp.lt.s32.totalorder %s82_s27, %s82_s27 }
  0x51   :  { %p5352_p4 = scmp.lt.s32.totalorder %s5346_s23, %s5346_s23 }
  0x53   :  { %p5353_p5 = por %p5352_p4, %p5351_p3 }
  0x55   :  { %65 = dma.hbm_to_vmem [thread:$0]  %s6179_s6, 16, %s63_s26, [#allocation6]  }
  0x56   :  { %p5354_p6 = pnand %p5353_p5, %p5347_p2 }
  0x58   :  { %5357 = shalt.err (!%p5354_p6)
}
  0x59   :  { %s5465_s4 = smov 192   ;;  %s5466_s25 = smov 12  }
  0x5a   :  { %s6180_s12 = sld [smem:[#allocation31_spill]]  ;;  %s5467_s28 = smov [#allocation13]  }
  0x5b   :  { %s113_s30 = sshll.u32 %s5467_s28, 4  ;;  %s5468_s22 = smov [#allocation16]   ;;  %s114_s30 = int_to_ptr.vmem [resolvable:$true] %s113_s30 }
  0x5c   :  { %s145_s0 = sshll.u32 %s5468_s22, 4  ;;  %s5366_s26 = scalar_lea.vmem %s114_s30, 4096  ;;  %s146_s0 = int_to_ptr.vmem [resolvable:$true] %s145_s0 }
  0x5d   :  { %p5367_p7 = scmp.ne.s32.totalorder %s114_s30, %s5366_s26  ;;  %p5371_p8 = scmp.lt.s32.totalorder %s114_s30, %s114_s30 }
  0x5e   :  { %p5372_p9 = scmp.lt.s32.totalorder %s5366_s26, %s5366_s26 }
  0x60   :  { %87 = dma.hbm_to_vmem [thread:$0]  %s6180_s12, 6144, %s82_s27, [#allocation9], %s5465_s4, %s5465_s4, %s5466_s25  }
  0x61   :  { %p5373_p10 = por %p5372_p9, %p5371_p8 }
  0x63   :  { %p5374_p11 = pnand %p5373_p10, %p5367_p7 }
  0x65   :  { %5377 = shalt.err (!%p5374_p11)
}
  0x66   :  { %119 = dma.hbm_to_vmem [thread:$0]  %s6158_s10, 4096, %s114_s30, [#allocation12], %s5461_s29, %s5461_s29, %s5462_s1  }
  0x67   :  { %s5386_s27 = scalar_lea.vmem %s146_s0, 1024  ;;  %p5391_p13 = scmp.lt.s32.totalorder %s146_s0, %s146_s0 }
  0x68   :  { %p5387_p12 = scmp.ne.s32.totalorder %s146_s0, %s5386_s27  ;;  %p5392_p0 = scmp.lt.s32.totalorder %s5386_s27, %s5386_s27 }
  0x6a   :  { %p5393_p1 = por %p5392_p0, %p5391_p13 }
  0x6c   :  { %p5394_p2 = pnand %p5393_p1, %p5387_p12 }
  0x6e   :  { %5397 = shalt.err (!%p5394_p2)
}
  0x6f   :  { %s6181_s22 = smov 64   ;;  %s5469_s25 = smov [#allocation17]  }
  0x70   :  { %151 = dma.hbm_to_vmem [thread:$0]  %s6164_s16, 1024, %s146_s0, [#allocation15], %s6181_s22, %s6181_s22, %s5458_s24  }
  0x71   :  { %s159_s2 = sshll.u32 %s5469_s25, 4  ;;  %s160_s2 = int_to_ptr.vmem [resolvable:$true] %s159_s2 }
  0x72   :  { %s5406_s3 = scalar_lea.vmem %s160_s2, 1024  ;;  %p5411_p4 = scmp.lt.s32.totalorder %s160_s2, %s160_s2 }
  0x73   :  { %p5407_p3 = scmp.ne.s32.totalorder %s160_s2, %s5406_s3  ;;  %p5412_p5 = scmp.lt.s32.totalorder %s5406_s3, %s5406_s3 }
  0x75   :  { %p5413_p6 = por %p5412_p5, %p5411_p4 }
  0x77   :  { %p5414_p7 = pnand %p5413_p6, %p5407_p3 }
  0x79   :  { %5417 = shalt.err (!%p5414_p7)
}
  0x7a   :  { %165 = dma.hbm_to_vmem [thread:$0]  %s6166_s18, 1024, %s160_s2, [#allocation18], %s6181_s22, %s6181_s22, %s5458_s24  }
  0x7b   :  { %5438 = dma.done.wait [#allocation3], 256  }
  0x7c   :  { %5439 = vsyncadd [#allocation3], 4294967040 }
  0x7d   :  { %5440 = dma.done.wait [#allocation6], 144  }
  0x7e   :  { %5441 = vsyncadd [#allocation6], 4294967152 }
  0x7f   :  { %5442 = dma.done.wait [#allocation9], 6160  }
  0x80   :  { %5443 = vsyncadd [#allocation9], 4294961136 }
  0x81   :  { %5444 = dma.done.wait [#allocation12], 6144  }
  0x82   :  { %5445 = vsyncadd [#allocation12], 4294961152 }
  0x83   :  { %5446 = dma.done.wait [#allocation15], 5120  }
  0x84   :  { %5447 = vsyncadd [#allocation15], 4294962176 }
  0x85   :  { %5448 = dma.done.wait [#allocation18], 1024  }
  0x86   :  { %5449 = vsyncadd [#allocation18], 4294966272  ;;  %v199_v0 = vld [vmem:[#allocation2] sm:$0xff]  ;;  %v200_v1 = vld [vmem:[#allocation2 + $0x8] sm:$0xff]  ;;  %v5470_v4 = vmov 0.0   ;;  %v5471_v27 = vmov 0   ;;  %v285_v53 = vlaneseq }
  0x87   :  { %203 = vadd.xlane.f32.xlu0 %v199_v0  ;;  %v4930_v2 = vld [vmem:[#allocation10 + $0xac] ss:$12 sps:$4 sm:$0xff]   ;;  %v4932_v3 = vld [vmem:[#allocation10 + $0xa8] ss:$12 sps:$4 sm:$0xff]   ;;  %4484 = vmatprep.subr.bf16.mxu1 %v5470_v4  ;;  %v4933_v5 = vld [vmem:[#allocation10 + $0xb0] ss:$12 sps:$4 sm:$0xff]  }
  0x88   :  { %428 = vmatprep.subr.bf16.mxu0 %v4930_v2  ;;  %4485 = vmatpush3.bf16.msra.mxu1 %v4933_v5  ;;  %v4934_v14 = vld [vmem:[#allocation10 + $0x94] ss:$12 sps:$4 sm:$0xff]   ;;  %v4936_v15 = vld [vmem:[#allocation10 + $0x90] ss:$12 sps:$4 sm:$0xff]   ;;  %v4937_v16 = vld [vmem:[#allocation10 + $0x98] ss:$12 sps:$4 sm:$0xff]  }
  0x89   :  { %429 = vmatpush1.bf16.msra.mxu0 %v4932_v3  ;;  %4486 = vmatprep.subr.bf16.mxu1 %v5470_v4  ;;  %v4938_v17 = vld [vmem:[#allocation10 + $0x7c] ss:$12 sps:$4 sm:$0xff]   ;;  %v4940_v18 = vld [vmem:[#allocation10 + $0x78] ss:$12 sps:$4 sm:$0xff]   ;;  %v4941_v19 = vld [vmem:[#allocation10 + $0x80] ss:$12 sps:$4 sm:$0xff]  }
  0x8a   :  { %430 = vmatprep.subr.bf16.mxu0 %v4934_v14  ;;  %v4942_v20 = vld [vmem:[#allocation10 + $0x64] ss:$12 sps:$4 sm:$0xff]   ;;  %v4944_v21 = vld [vmem:[#allocation10 + $0x60] ss:$12 sps:$4 sm:$0xff]   ;;  %v4945_v22 = vld [vmem:[#allocation10 + $0x68] ss:$12 sps:$4 sm:$0xff]   ;;  %460 = vmatprep.mubr.bf16.mxu0 %v5471_v27 }
  0x8b   :  { %205 = vadd.xlane.f32.xlu0 %v200_v1  ;;  %v4946_v23 = vld [vmem:[#allocation10 + $0x4c] ss:$12 sps:$4 sm:$0xff]   ;;  %v4948_v24 = vld [vmem:[#allocation10 + $0x48] ss:$12 sps:$4 sm:$0xff]   ;;  %v4949_v25 = vld [vmem:[#allocation10 + $0x50] ss:$12 sps:$4 sm:$0xff]  }
  0x8c   :  { %4487 = vmatpush3.bf16.msra.mxu1 %v4937_v16  ;;  %v4950_v26 = vld [vmem:[#allocation10 + $0x34] ss:$12 sps:$4 sm:$0xff]   ;;  %vm5472_vm0 = vmmov 0   ;;  %v4952_v28 = vld [vmem:[#allocation10 + $0x30] ss:$12 sps:$4 sm:$0xff]   ;;  %v5662_v54 = vshrl.u32 %v285_v53, 7 }
  0x8d   :  { %431 = vmatpush1.bf16.msra.mxu0 %v4936_v15  ;;  %4488 = vmatprep.subr.bf16.mxu1 %v5470_v4  ;;  %v4953_v29 = vld [vmem:[#allocation10 + $0x38] ss:$12 sps:$4 sm:$0xff]   ;;  %v4954_v30 = vld [vmem:[#allocation10 + $0x1c] ss:$12 sps:$4 sm:$0xff]   ;;  %v4957_v32 = vld [vmem:[#allocation10 + $0x20] ss:$12 sps:$4 sm:$0xff]  }
  0x8e   :  { %432 = vmatprep.subr.bf16.mxu0 %v4938_v17  ;;  %4500 = vmatprep.mubr.msk.bf16.mxu1 %vm5472_vm0, %v5470_v4  ;;  %v4956_v31 = vld [vmem:[#allocation10 + $0x18] ss:$12 sps:$4 sm:$0xff]   ;;  %v4960_v34 = vld [vmem:[#allocation10] ss:$12 sps:$4 sm:$0xff]   ;;  %v4961_v35 = vld [vmem:[#allocation10 + $0x8] ss:$12 sps:$4 sm:$0xff]  }
  0x8f   :  { %v4958_v33 = vld [vmem:[#allocation10 + $0x4] ss:$12 sps:$4 sm:$0xff]   ;;  %v4114_v44 = vld [vmem:[#allocation7] ss:$0 sm:$0xff]  ;;  %v4115_v48 = vld [vmem:[#allocation8] ss:$0 sm:$0xff] }
  0x90   :  { %4489 = vmatpush3.bf16.msra.mxu1 %v4941_v19  ;;  %v5665_v55 = vsub.s32 1, %v5662_v54  ;;  %v5668_v56 = vsub.s32 0, %v5662_v54  ;;  %v282_v57 = vld [vmem:[%s6153_s5] sm:$0x7]  ;;  %v295_v58 = vsub.s32 2, %v5662_v54  ;;  %vm644_vm1 = vcmask 261120  }
  0x91   :  { %433 = vmatpush1.bf16.msra.mxu0 %v4940_v18  ;;  %4490 = vmatprep.subr.bf16.mxu1 %v5470_v4  ;;  %s5473_s24 = smov 96   ;;  %s5474_s1 = smov 32   ;;  %vm1113_vm2 = vcmask 1043456   ;;  %vm1013_vm3 = vcmask 64512   ;;  %vm1505_vm4 = vcmask 523264   ;;  %vm1508_vm5 = vcmask 785408  }
  0x92   :  { %434 = vmatprep.subr.bf16.mxu0 %v4942_v20  ;;  %v292_v59 = vrot.slane %v282_v57, %v5665_v55  ;;  %v288_v62 = vrot.slane %v282_v57, %v5668_v56  ;;  %v296_v63 = vrot.slane %v282_v57, %v295_v58  ;;  %vm3887_vm6 = vcmask 1041409  }
  0x94   :  { %4491 = vmatpush3.bf16.msra.mxu1 %v4945_v22 }
  0x95   :  { %435 = vmatpush1.bf16.msra.mxu0 %v4944_v21  ;;  %4492 = vmatprep.subr.bf16.mxu1 %v5470_v4 }
  0x96   :  { %436 = vmatprep.subr.bf16.mxu0 %v4946_v23 }
  0x98   :  { %4493 = vmatpush3.bf16.msra.mxu1 %v4949_v25 }
  0x99   :  { %437 = vmatpush1.bf16.msra.mxu0 %v4948_v24  ;;  %4494 = vmatprep.subr.bf16.mxu1 %v5470_v4 }
  0x9a   :  { %438 = vmatprep.subr.bf16.mxu0 %v4950_v26 }
  0x9c   :  { %4495 = vmatpush3.bf16.msra.mxu1 %v4953_v29 }
  0x9d   :  { %439 = vmatpush1.bf16.msra.mxu0 %v4952_v28  ;;  %4496 = vmatprep.subr.bf16.mxu1 %v5470_v4 }
  0x9e   :  { %440 = vmatprep.subr.bf16.mxu0 %v4954_v30 }
  0xa0   :  { %4497 = vmatpush3.bf16.msra.mxu1 %v4957_v32 }
  0xa1   :  { %441 = vmatpush1.bf16.msra.mxu0 %v4956_v31  ;;  %4498 = vmatprep.subr.bf16.mxu1 %v5470_v4 }
  0xa2   :  { %442 = vmatprep.subr.bf16.mxu0 %v4958_v33 }
  0xa4   :  { %4499 = vmatpush3.bf16.msra.mxu1 %v4961_v35 }
  0xa5   :  { %443 = vmatpush1.bf16.msra.mxu0 %v4960_v34  ;;  %4504 = vmatprep.subr.bf16.mxu1 %v5470_v4 }
  0xa6   :  { %4528 = vmatprep.subr.bf16.mxu0 %v5470_v4 }
 0x110   :  { %v204_v6 = vpop.xlane.xlu0 %203 }
 0x111   :  { %v208_v7 = vmul.f32 0.0078125, %v204_v6 }
 0x113   :  { %v5631_v8 = vsub.f32 %v199_v0, %v208_v7 }
 0x114   :  { %v206_v9 = vpop.xlane.xlu0 %205 }
 0x115   :  { %v209_v10 = vmul.f32 0.0078125, %v206_v9  ;;  %v212_v11 = vmul.f32 %v5631_v8, %v5631_v8 }
 0x117   :  { %v5635_v12 = vsub.f32 %v200_v1, %v209_v10  ;;  %214 = vadd.xlane.f32.xlu1 %v212_v11 }
 0x119   :  { %v213_v13 = vmul.f32 %v5635_v12, %v5635_v12 }
 0x11b   :  { %216 = vadd.xlane.f32.xlu1 %v213_v13 }
 0x1a0   :  { %v215_v36 = vpop.xlane.xlu1 %214 }
 0x1a1   :  { %v218_v37 = vmul.f32 0.0078125, %v215_v36 }
 0x1a3   :  { %v220_v38 = vadd.f32 1e-12, %v218_v37 }
 0x1a4   :  { %v217_v39 = vpop.xlane.xlu1 %216 }
 0x1a5   :  { %5106 = vrsqrt.f32 %v220_v38  ;;  %v219_v40 = vmul.f32 0.0078125, %v217_v39 }
 0x1a7   :  { %v221_v41 = vadd.f32 1e-12, %v219_v40 }
 0x1a9   :  { %5108 = vrsqrt.f32 %v221_v41 }
 0x1b2   :  { %v5107_v42 = vpop.eup %5106 }
 0x1b3   :  { %v224_v43 = vmul.f32 %v5107_v42, %v5631_v8 }
 0x1b5   :  { %v232_v47 = vmul.f32 %v4114_v44, %v224_v43 }
 0x1b6   :  { %v5109_v45 = vpop.eup %5108 }
 0x1b7   :  { %v225_v46 = vmul.f32 %v5109_v45, %v5635_v12  ;;  %v5652_v50 = vadd.f32 %v4115_v48, %v232_v47 }
 0x1b9   :  { %v233_v49 = vmul.f32 %v4114_v44, %v225_v46 }
 0x1bb   :  { %v5654_v51 = vadd.f32 %v4115_v48, %v233_v49 }
 0x1bd   :  { %v283_v52 = vpack.c.bf16 %v5654_v51, %v5652_v50 }
 0x1bf   :  { %461 = vmatmul.mubr.bf16.vlgmr.msra.gmra.mxu0 %v283_v52  ;;  %4501 = vmatmul.mubr.bf16.vlgmr.msra.gmra.mxu1 %v283_v52 }
 0x1c0   :  { %4506 = vmatprep.mubr.msk.bf16.mxu1 %vm5472_vm0, %v5470_v4  ;;  %4530 = vmatprep.mubr.msk.bf16.mxu0 %vm5472_vm0, %v5470_v4 }
 0x27f   :  { %v462_v60 = vpop.f32.mrf.mxu0  ;;  %v505_v61 = vpop.f32.mrf.mxu1 }
 0x280   :  { %v463_v6 = vadd.f32 %v462_v60, %v288_v62  ;;  %v5681_v10 = vadd.f32 %v505_v61, %v296_v63 }
 0x281   :  { %v464_v0 = vpop.f32.mrf.mxu0  ;;  %v4502_v1 = vpop.f32.mrf.mxu1 }
 0x282   :  { %v465_v2 = vadd.f32 %v464_v0, %v292_v59  ;;  %v532_v19 = vpack.c.bf16 %v463_v6, %v463_v6 }
 0x283   :  { %v466_v3 = vpop.f32.mrf.mxu0  ;;  %v508_v5 = vpop.f32.mrf.mxu1 }
 0x284   :  { %v467_v7 = vadd.f32 %v466_v3, %v288_v62  ;;  %v5678_v8 = vadd.f32 %v508_v5, %v296_v63  ;;  %542 = vrot.lane.b32.xlu0 %v465_v2, %s5473_s24  ;;  %v560_v9 = vpack.c.bf16 %v465_v2, %v465_v2  ;;  %v588_v63 = vpack.c.bf16 %v5681_v10, %v5681_v10 }
 0x285   :  { %v468_v11 = vpop.f32.mrf.mxu0  ;;  %v4503_v12 = vpop.f32.mrf.mxu1 }
 0x286   :  { %v469_v13 = vadd.f32 %v468_v11, %v292_v59  ;;  %v649_v14 = vsel %vm644_vm1, %v560_v9, 0  ;;  %v4830_v15 = vpack.i.bf16 %v467_v7, %v463_v6  ;;  %v5686_v16 = vpack.i.bf16 %v5678_v8, %v5681_v10 }
 0x287   :  { %4505 = vmatpush3.bf16.xpose.msra.mxu1 %v649_v14  ;;  %v533_v22 = vpack.c.bf16 %v467_v7, %v467_v7  ;;  %v589_v0 = vpack.c.bf16 %v5678_v8, %v5678_v8  ;;  %v1115_v3 = vsel %vm1113_vm2, %v588_v63, 0 }
 0x288   :  { %4831 = vrot.lane.b32.xlu0 %v4830_v15, %s6181_s22  ;;  %v4820_v17 = vpack.i.bf16 %v469_v13, %v463_v6  ;;  %4510 = vmatprep.subr.bf16.mxu1 %v5470_v4  ;;  %v561_v18 = vpack.c.bf16 %v469_v13, %v469_v13  ;;  %v4825_v21 = vpack.i.bf16 %v469_v13, %v465_v2  ;;  %v4140_v6 = vld [vmem:[#allocation5] ss:$0 sm:$0xff]  ;;  %v4141_v13 = vld [vmem:[#allocation5 + $0x1] ss:$0 sm:$0xff] }
 0x289   :  { %v1161_v5 = vsel %vm1113_vm2, %v589_v0, 0 }
 0x28a   :  { %4821 = vrot.lane.b32.xlu1 %v4820_v17, %s5473_s24  ;;  %v695_v20 = vsel %vm644_vm1, %v561_v18, 0 }
 0x28c   :  { %4841 = vrot.lane.b32.xlu0 %v4830_v15, %s5474_s1 }
 0x28e   :  { %516 = vrot.lane.b32.xlu1 %v467_v7, %s5473_s24  ;;  %4507 = vmatmul.mubr.msk.bf16.vlgmr.msra.gmra.mxu1 %vm644_vm1, %v532_v19 }
 0x28f   :  { %4511 = vmatpush3.bf16.xpose.msra.mxu1 %v695_v20  ;;  %4512 = vmatprep.mubr.msk.bf16.mxu1 %vm5472_vm0, %v5470_v4 }
 0x290   :  { %4516 = vmatprep.subr.bf16.mxu1 %v5470_v4 }
 0x292   :  { %4826 = vrot.lane.b32.xlu1 %v4825_v21, %s6181_s22 }
 0x296   :  { %4836 = vrot.lane.b32.xlu1 %v4825_v21, %s5474_s1  ;;  %4513 = vmatmul.mubr.msk.bf16.vlgmr.msra.gmra.mxu1 %vm644_vm1, %v533_v22  ;;  %v4142_v21 = vld [vmem:[#allocation5 + $0x2] ss:$0 sm:$0xff] }
 0x297   :  { %4518 = vmatprep.mubr.msk.bf16.mxu1 %vm5472_vm0, %v5470_v4 }
 0x2f6   :  { %v543_v23 = vpop.permute.xlu0 %542 }
 0x2f7   :  { %v562_v24 = vpack.c.bf16 %v543_v23, %v543_v23 }
 0x2f9   :  { %v741_v25 = vsel %vm644_vm1, %v562_v24, 0 }
 0x2fa   :  { %4517 = vmatpush3.bf16.xpose.msra.mxu1 %v741_v25  ;;  %v4832_v40 = vpop.permute.xlu0 %4831 }
 0x2fb   :  { %4522 = vmatprep.subr.bf16.mxu1 %v5470_v4  ;;  %v4834_v46 = vunpack.i.h.bf16 %v4832_v40  ;;  %v4833_v47 = vunpack.i.l.bf16 %v4832_v40 }
 0x2fc   :  { %v4822_v26 = vpop.permute.xlu1 %4821 }
 0x2fd   :  { %v4824_v28 = vunpack.i.h.bf16 %v4822_v26  ;;  %v4823_v29 = vunpack.i.l.bf16 %v4822_v26  ;;  %v537_v52 = vpack.c.bf16 %v4834_v46, %v4834_v46  ;;  %v536_v53 = vpack.c.bf16 %v4833_v47, %v4833_v47 }
 0x2fe   :  { %v4842_v57 = vpop.permute.xlu0 %4841 }
 0x2ff   :  { %v563_v30 = vpack.c.bf16 %v4824_v28, %v4824_v28  ;;  %v534_v31 = vpack.c.bf16 %v4823_v29, %v4823_v29  ;;  %v4844_v61 = vunpack.i.h.bf16 %v4842_v57  ;;  %v4843_v62 = vunpack.i.l.bf16 %v4842_v57  ;;  %v4143_v29 = vld [vmem:[#allocation5 + $0x3] ss:$0 sm:$0xff] }
 0x300   :  { %v517_v32 = vpop.permute.xlu1 %516 }
 0x301   :  { %4519 = vmatmul.mubr.msk.bf16.vlgmr.msra.gmra.mxu1 %vm644_vm1, %v534_v31  ;;  %v787_v33 = vsel %vm644_vm1, %v563_v30, 0  ;;  %v535_v37 = vpack.c.bf16 %v517_v32, %v517_v32  ;;  %v539_v1 = vpack.c.bf16 %v4844_v61, %v4844_v61  ;;  %v538_v2 = vpack.c.bf16 %v4843_v62, %v4843_v62 }
 0x302   :  { %4523 = vmatpush3.bf16.xpose.msra.mxu1 %v787_v33  ;;  %4524 = vmatprep.mubr.msk.bf16.mxu1 %vm5472_vm0, %v5470_v4 }
 0x303   :  { %4534 = vmatprep.subr.bf16.mxu1 %v5470_v4 }
 0x304   :  { %v4827_v34 = vpop.permute.xlu1 %4826 }
 0x305   :  { %v4829_v35 = vunpack.i.h.bf16 %v4827_v34  ;;  %v4828_v36 = vunpack.i.l.bf16 %v4827_v34 }
 0x307   :  { %v565_v38 = vpack.c.bf16 %v4829_v35, %v4829_v35  ;;  %v564_v39 = vpack.c.bf16 %v4828_v36, %v4828_v36  ;;  %v4144_v36 = vld [vmem:[#allocation5 + $0x4] ss:$0 sm:$0xff] }
 0x308   :  { %v4837_v41 = vpop.permute.xlu1 %4836 }
 0x309   :  { %v4839_v42 = vunpack.i.h.bf16 %v4837_v41  ;;  %v4838_v43 = vunpack.i.l.bf16 %v4837_v41  ;;  %4525 = vmatmul.mubr.msk.bf16.vlgmr.msra.gmra.mxu1 %vm644_vm1, %v535_v37  ;;  %v833_v44 = vsel %vm644_vm1, %v564_v39, 0  ;;  %v879_v45 = vsel %vm644_vm1, %v565_v38, 0  ;;  %v4145_v37 = vld [vmem:[#allocation5 + $0x5] ss:$0 sm:$0xff] }
 0x30a   :  { %4529 = vmatpush3.bf16.xpose.msra.mxu0 %v833_v44  ;;  %4535 = vmatpush3.bf16.xpose.msra.mxu1 %v879_v45 }
 0x30b   :  { %4536 = vmatprep.mubr.msk.bf16.mxu1 %vm5472_vm0, %v5470_v4  ;;  %4540 = vmatprep.subr.bf16.mxu0 %v5470_v4  ;;  %v567_v48 = vpack.c.bf16 %v4839_v42, %v4839_v42  ;;  %v566_v49 = vpack.c.bf16 %v4838_v43, %v4838_v43 }
 0x30c   :  { %4546 = vmatprep.subr.bf16.mxu1 %v5470_v4 }
 0x30d   :  { %v925_v59 = vsel %vm644_vm1, %v566_v49, 0  ;;  %v971_v60 = vsel %vm644_vm1, %v567_v48, 0 }
 0x311   :  { %4531 = vmatmul.mubr.msk.bf16.vlgmr.msra.gmra.mxu0 %vm644_vm1, %v536_v53  ;;  %4537 = vmatmul.mubr.msk.bf16.vlgmr.msra.gmra.mxu1 %vm644_vm1, %v537_v52  ;;  %v4146_v52 = vld [vmem:[#allocation5 + $0x6] ss:$0 sm:$0xff]  ;;  %v4147_v53 = vld [vmem:[#allocation5 + $0x7] ss:$0 sm:$0xff] }
 0x312   :  { %4541 = vmatpush3.bf16.xpose.msra.mxu0 %v925_v59  ;;  %4547 = vmatpush3.bf16.xpose.msra.mxu1 %v971_v60 }
 0x313   :  { %4542 = vmatprep.mubr.msk.bf16.mxu0 %vm5472_vm0, %v5470_v4  ;;  %4548 = vmatprep.mubr.msk.bf16.mxu1 %vm5472_vm0, %v5470_v4 }
 0x314   :  { %4552 = vmatprep.subr.bf16.mxu0 %v5470_v4  ;;  %4558 = vmatprep.subr.bf16.mxu1 %v5470_v4 }
 0x319   :  { %4543 = vmatmul.mubr.msk.bf16.vlgmr.msra.gmra.mxu0 %vm644_vm1, %v538_v2  ;;  %4549 = vmatmul.mubr.msk.bf16.vlgmr.msra.gmra.mxu1 %vm644_vm1, %v539_v1 }
 0x31a   :  { %4553 = vmatpush3.bf16.msra.mxu0 %v1115_v3  ;;  %4559 = vmatpush3.bf16.msra.mxu1 %v1161_v5 }
 0x31b   :  { %4560 = vmatprep.mubr.msk.bf16.mxu1 %vm5472_vm0, %v5470_v4  ;;  %4570 = vmatprep.subr.bf16.mxu1 %v5470_v4 }
 0x31c   :  { %4554 = vmatprep.mubr.msk.bf16.mxu0 %vm5472_vm0, %v5470_v4  ;;  %4564 = vmatprep.subr.bf16.mxu0 %v5470_v4 }
 0x34e   :  { %v685_v7 = vpop.f32.mrf.mxu1 }
 0x34f   :  { %v5741_v8 = vadd.f32 %v4140_v6, %v685_v7 }
 0x350   :  { %v4508_v9 = vpop.f32.mrf.mxu1 }
 0x351   :  { %v1014_v10 = vsel %vm1013_vm3, %v5741_v8, -inf }
 0x352   :  { %1015 = vmax.xlane.f32.xlu1 %v1014_v10  ;;  %v688_v11 = vpop.f32.mrf.mxu1 }
 0x354   :  { %v4509_v12 = vpop.f32.mrf.mxu1 }
 0x356   :  { %v731_v14 = vpop.f32.mrf.mxu1 }
 0x357   :  { %v732_v15 = vadd.f32 %v4141_v13, %v731_v14 }
 0x358   :  { %v4514_v17 = vpop.f32.mrf.mxu1 }
 0x359   :  { %v1017_v18 = vsel %vm1013_vm3, %v732_v15, -inf }
 0x35a   :  { %1018 = vmax.xlane.f32.xlu0 %v1017_v18  ;;  %v734_v19 = vpop.f32.mrf.mxu1 }
 0x35c   :  { %v4515_v20 = vpop.f32.mrf.mxu1 }
 0x3c1   :  { %v777_v22 = vpop.f32.mrf.mxu1 }
 0x3c2   :  { %v5746_v23 = vadd.f32 %v4142_v21, %v777_v22 }
 0x3c3   :  { %v4520_v24 = vpop.f32.mrf.mxu1 }
 0x3c4   :  { %v1020_v25 = vsel %vm1013_vm3, %v5746_v23, -inf }
 0x3c5   :  { %1021 = vmax.xlane.f32.xlu0 %v1020_v25  ;;  %v780_v26 = vpop.f32.mrf.mxu1 }
 0x3c7   :  { %v4521_v28 = vpop.f32.mrf.mxu1 }
 0x3c9   :  { %v823_v30 = vpop.f32.mrf.mxu1 }
 0x3ca   :  { %v824_v31 = vadd.f32 %v4143_v29, %v823_v30 }
 0x3cb   :  { %v4526_v32 = vpop.f32.mrf.mxu1 }
 0x3cc   :  { %v1023_v33 = vsel %vm1013_vm3, %v824_v31, -inf }
 0x3cd   :  { %1024 = vmax.xlane.f32.xlu0 %v1023_v33  ;;  %v826_v34 = vpop.f32.mrf.mxu1 }
 0x3cf   :  { %v4527_v35 = vpop.f32.mrf.mxu1 }
 0x3d1   :  { %v869_v38 = vpop.f32.mrf.mxu0  ;;  %v915_v39 = vpop.f32.mrf.mxu1 }
 0x3d2   :  { %v870_v40 = vadd.f32 %v4144_v36, %v869_v38  ;;  %v916_v41 = vadd.f32 %v4145_v37, %v915_v39 }
 0x3d3   :  { %v4532_v42 = vpop.f32.mrf.mxu0  ;;  %v4538_v43 = vpop.f32.mrf.mxu1 }
 0x3d4   :  { %v1026_v44 = vsel %vm1013_vm3, %v870_v40, -inf  ;;  %v1029_v45 = vsel %vm1013_vm3, %v916_v41, -inf }
 0x3d5   :  { %v872_v46 = vpop.f32.mrf.mxu0  ;;  %1027 = vmax.xlane.f32.xlu1 %v1026_v44  ;;  %1030 = vmax.xlane.f32.xlu0 %v1029_v45  ;;  %v918_v47 = vpop.f32.mrf.mxu1 }
 0x3d7   :  { %v4533_v48 = vpop.f32.mrf.mxu0  ;;  %v4539_v49 = vpop.f32.mrf.mxu1 }
 0x3d9   :  { %v961_v57 = vpop.f32.mrf.mxu0  ;;  %v1007_v59 = vpop.f32.mrf.mxu1 }
 0x3da   :  { %v962_v60 = vadd.f32 %v4146_v52, %v961_v57  ;;  %v1008_v61 = vadd.f32 %v4147_v53, %v1007_v59 }
 0x3db   :  { %v4544_v62 = vpop.f32.mrf.mxu0  ;;  %v4550_v63 = vpop.f32.mrf.mxu1 }
 0x3dc   :  { %v1032_v0 = vsel %vm1013_vm3, %v962_v60, -inf  ;;  %v1035_v1 = vsel %vm1013_vm3, %v1008_v61, -inf  ;;  %v1016_v12 = vpop.xlane.xlu1 %1015 }
 0x3dd   :  { %v964_v2 = vpop.f32.mrf.mxu0  ;;  %1033 = vmax.xlane.f32.xlu1 %v1032_v0  ;;  %1036 = vmax.xlane.f32.xlu0 %v1035_v1  ;;  %v1010_v3 = vpop.f32.mrf.mxu1  ;;  %v1038_v14 = vsub.f32 %v5741_v8, %v1016_v12 }
 0x3df   :  { %v4545_v5 = vpop.f32.mrf.mxu0  ;;  %v4551_v6 = vpop.f32.mrf.mxu1  ;;  %v1046_v17 = vmul.f32 1.442695, %v1038_v14 }
 0x3e3   :  { %v1019_v7 = vpop.xlane.xlu0 %1018 }
 0x3e4   :  { %v1039_v9 = vsub.f32 %v732_v15, %v1019_v7 }
 0x3e6   :  { %v1048_v10 = vmul.f32 1.442695, %v1039_v9 }
 0x3e8   :  { %5110 = vpow2.f32 %v1048_v10 }
 0x3e9   :  { %5112 = vpow2.f32 %v1046_v17 }
 0x3ee   :  { %4846 = vrot.lane.b32.xlu1 %v5686_v16, %s5473_s24 }
 0x3f5   :  { %v5111_v11 = vpop.eup %5110 }
 0x3f6   :  { %v1065_v13 = vsel %vm1013_vm3, %v5111_v11, 0.0  ;;  %v5759_v18 = vpop.eup %5112 }
 0x3f7   :  { %1066 = vadd.xlane.f32.xlu0 %v1065_v13  ;;  %v1062_v19 = vsel %vm1013_vm3, %v5759_v18, 0.0 }
 0x412   :  { %1063 = vadd.xlane.f32.xlu1 %v1062_v19 }
 0x44e   :  { %v1022_v15 = vpop.xlane.xlu0 %1021 }
 0x44f   :  { %v1040_v20 = vsub.f32 %v5746_v23, %v1022_v15 }
 0x451   :  { %v1050_v21 = vmul.f32 1.442695, %v1040_v20 }
 0x453   :  { %5114 = vpow2.f32 %v1050_v21 }
 0x456   :  { %v1025_v22 = vpop.xlane.xlu0 %1024 }
 0x457   :  { %v1041_v24 = vsub.f32 %v824_v31, %v1025_v22 }
 0x459   :  { %v1052_v25 = vmul.f32 1.442695, %v1041_v24 }
 0x45b   :  { %5116 = vpow2.f32 %v1052_v25 }
 0x45e   :  { %v1028_v26 = vpop.xlane.xlu1 %1027  ;;  %v1031_v28 = vpop.xlane.xlu0 %1030 }
 0x45f   :  { %v1042_v8 = vsub.f32 %v870_v40, %v1028_v26  ;;  %v1043_v29 = vsub.f32 %v916_v41, %v1031_v28 }
 0x460   :  { %v5115_v30 = vpop.eup %5114 }
 0x461   :  { %v1054_v32 = vmul.f32 1.442695, %v1042_v8  ;;  %v1056_v33 = vmul.f32 1.442695, %v1043_v29  ;;  %v1068_v34 = vsel %vm1013_vm3, %v5115_v30, 0.0 }
 0x462   :  { %1069 = vadd.xlane.f32.xlu1 %v1068_v34 }
 0x463   :  { %5118 = vpow2.f32 %v1054_v32 }
 0x464   :  { %5120 = vpow2.f32 %v1056_v33 }
 0x466   :  { %v1034_v35 = vpop.xlane.xlu1 %1033  ;;  %v1037_v23 = vpop.xlane.xlu0 %1036 }
 0x467   :  { %v1044_v36 = vsub.f32 %v962_v60, %v1034_v35  ;;  %v1045_v37 = vsub.f32 %v1008_v61, %v1037_v23 }
 0x468   :  { %v5117_v38 = vpop.eup %5116 }
 0x469   :  { %v1058_v31 = vmul.f32 1.442695, %v1044_v36  ;;  %v1060_v39 = vmul.f32 1.442695, %v1045_v37  ;;  %v1071_v42 = vsel %vm1013_vm3, %v5117_v38, 0.0 }
 0x46a   :  { %1072 = vadd.xlane.f32.xlu0 %v1071_v42  ;;  %v4847_v52 = vpop.permute.xlu1 %4846 }
 0x46b   :  { %5122 = vpow2.f32 %v1058_v31  ;;  %v4849_v53 = vunpack.i.h.bf16 %v4847_v52  ;;  %v4848_v0 = vunpack.i.l.bf16 %v4847_v52 }
 0x46c   :  { %5124 = vpow2.f32 %v1060_v39 }
 0x46d   :  { %v591_v59 = vpack.c.bf16 %v4849_v53, %v4849_v53  ;;  %v590_v2 = vpack.c.bf16 %v4848_v0, %v4848_v0  ;;  %v4962_v53 = vld [vmem:[#allocation11 + $0x38] sm:$0xff]   ;;  %v4965_v0 = vld [vmem:[#allocation11 + $0x20] sm:$0xff]  }
 0x46f   :  { %v1253_v62 = vsel %vm1113_vm2, %v591_v59, 0 }
 0x470   :  { %v5766_v40 = vpop.eup %5118 }
 0x471   :  { %v5768_v41 = vpop.eup %5120  ;;  %v1074_v43 = vsel %vm1013_vm3, %v5766_v40, 0.0 }
 0x472   :  { %1075 = vadd.xlane.f32.xlu1 %v1074_v43  ;;  %v1077_v44 = vsel %vm1013_vm3, %v5768_v41, 0.0 }
 0x473   :  { %1078 = vadd.xlane.f32.xlu0 %v1077_v44 }
 0x478   :  { %v5774_v45 = vpop.eup %5122 }
 0x479   :  { %v5776_v46 = vpop.eup %5124  ;;  %v1080_v47 = vsel %vm1013_vm3, %v5774_v45, 0.0 }
 0x47a   :  { %1081 = vadd.xlane.f32.xlu1 %v1080_v47  ;;  %v1083_v48 = vsel %vm1013_vm3, %v5776_v46, 0.0 }
 0x47b   :  { %1084 = vadd.xlane.f32.xlu0 %v1083_v48 }
 0x480   :  { %v1067_v49 = vpop.xlane.xlu0 %1066 }
 0x481   :  { %5126 = vrcp.f32 %v1067_v49 }
 0x48b   :  { %4856 = vrot.lane.b32.xlu1 %v5686_v16, %s5474_s1 }
 0x48e   :  { %v5127_v57 = vpop.eup %5126 }
 0x48f   :  { %v1095_v60 = vmul.f32 %v5127_v57, %v5111_v11 }
 0x491   :  { %4851 = vrot.lane.b32.xlu0 %v5686_v16, %s6181_s22  ;;  %v1103_v61 = vpack.c.bf16 %v1095_v60, %v1095_v60  ;;  %v1207_v16 = vsel %vm1113_vm2, %v590_v2, 0 }
 0x493   :  { %4561 = vmatmul.mubr.msk.bf16.vlgmr.msra.gmra.mxu1 %vm1013_vm3, %v1103_v61 }
 0x494   :  { %4571 = vmatpush3.bf16.msra.mxu1 %v1253_v62  ;;  %4572 = vmatprep.mubr.msk.bf16.mxu1 %vm5472_vm0, %v5470_v4  ;;  %v4964_v62 = vld [vmem:[#allocation11 + $0x28] sm:$0xff]  }
 0x495   :  { %4582 = vmatprep.subr.bf16.mxu1 %v5470_v4 }
 0x49b   :  { %v1064_v63 = vpop.xlane.xlu1 %1063 }
 0x49c   :  { %5128 = vrcp.f32 %v1064_v63 }
 0x4a9   :  { %v5129_v1 = vpop.eup %5128 }
 0x4aa   :  { %v1094_v3 = vmul.f32 %v5129_v1, %v5759_v18 }
 0x4ac   :  { %v1102_v5 = vpack.c.bf16 %v1094_v3, %v1094_v3  ;;  %v4966_v3 = vld [vmem:[#allocation11 + $0x18] sm:$0xff]  }
 0x4ae   :  { %4555 = vmatmul.mubr.msk.bf16.vlgmr.msra.gmra.mxu0 %vm1013_vm3, %v1102_v5 }
 0x4af   :  { %4565 = vmatpush3.bf16.msra.mxu0 %v1207_v16  ;;  %4566 = vmatprep.mubr.msk.bf16.mxu0 %vm5472_vm0, %v5470_v4 }
 0x4b0   :  { %4576 = vmatprep.subr.bf16.mxu0 %v5470_v4 }
 0x4eb   :  { %v1070_v6 = vpop.xlane.xlu1 %1069 }
 0x4ec   :  { %5130 = vrcp.f32 %v1070_v6 }
 0x4f3   :  { %v1073_v7 = vpop.xlane.xlu0 %1072 }
 0x4f4   :  { %5132 = vrcp.f32 %v1073_v7 }
 0x4f9   :  { %v5131_v9 = vpop.eup %5130 }
 0x4fa   :  { %v1096_v10 = vmul.f32 %v5131_v9, %v5115_v30  ;;  %v4967_v9 = vld [vmem:[#allocation11 + $0x10] sm:$0xff]  }
 0x4fb   :  { %v1076_v11 = vpop.xlane.xlu1 %1075 }
 0x4fc   :  { %5134 = vrcp.f32 %v1076_v11  ;;  %v1079_v12 = vpop.xlane.xlu0 %1078  ;;  %v1104_v13 = vpack.c.bf16 %v1096_v10, %v1096_v10  ;;  %v4968_v11 = vld [vmem:[#allocation11 + $0x8] sm:$0xff]  }
 0x4fd   :  { %5136 = vrcp.f32 %v1079_v12 }
 0x4fe   :  { %4567 = vmatmul.mubr.msk.bf16.vlgmr.msra.gmra.mxu0 %vm1013_vm3, %v1104_v13 }
 0x4ff   :  { %4578 = vmatprep.mubr.msk.bf16.mxu0 %vm5472_vm0, %v5470_v4 }
 0x501   :  { %v5133_v14 = vpop.eup %5132 }
 0x502   :  { %v1097_v17 = vmul.f32 %v5133_v14, %v5117_v38 }
 0x503   :  { %v1082_v18 = vpop.xlane.xlu1 %1081 }
 0x504   :  { %5138 = vrcp.f32 %v1082_v18  ;;  %v1085_v19 = vpop.xlane.xlu0 %1084  ;;  %v1105_v15 = vpack.c.bf16 %v1097_v17, %v1097_v17  ;;  %v4969_v17 = vld [vmem:[#allocation11] sm:$0xff]  }
 0x505   :  { %5140 = vrcp.f32 %v1085_v19 }
 0x506   :  { %4573 = vmatmul.mubr.msk.bf16.vlgmr.msra.gmra.mxu1 %vm1013_vm3, %v1105_v15 }
 0x507   :  { %v4857_v20 = vpop.permute.xlu1 %4856  ;;  %4584 = vmatprep.mubr.msk.bf16.mxu1 %vm5472_vm0, %v5470_v4 }
 0x508   :  { %v4852_v21 = vpop.permute.xlu0 %4851  ;;  %v4859_v24 = vunpack.i.h.bf16 %v4857_v20  ;;  %v4858_v25 = vunpack.i.l.bf16 %v4857_v20 }
 0x509   :  { %v5135_v22 = vpop.eup %5134  ;;  %v4854_v26 = vunpack.i.h.bf16 %v4852_v21  ;;  %v4853_v28 = vunpack.i.l.bf16 %v4852_v21 }
 0x50a   :  { %v5137_v8 = vpop.eup %5136  ;;  %v1098_v32 = vmul.f32 %v5135_v22, %v5766_v40  ;;  %v595_v34 = vpack.c.bf16 %v4859_v24, %v4859_v24  ;;  %v594_v35 = vpack.c.bf16 %v4858_v25, %v4858_v25 }
 0x50b   :  { %v593_v29 = vpack.c.bf16 %v4854_v26, %v4854_v26  ;;  %v592_v30 = vpack.c.bf16 %v4853_v28, %v4853_v28  ;;  %v1099_v33 = vmul.f32 %v5137_v8, %v5768_v41 }
 0x50c   :  { %v1106_v37 = vpack.c.bf16 %v1098_v32, %v1098_v32  ;;  %v1391_v39 = vsel %vm1113_vm2, %v594_v35, 0  ;;  %v1437_v42 = vsel %vm1113_vm2, %v595_v34, 0 }
 0x50d   :  { %v1299_v23 = vsel %vm1113_vm2, %v592_v30, 0  ;;  %v1345_v36 = vsel %vm1113_vm2, %v593_v29, 0  ;;  %v1107_v38 = vpack.c.bf16 %v1099_v33, %v1099_v33 }
 0x50e   :  { %4577 = vmatpush3.bf16.msra.mxu0 %v1299_v23  ;;  %4583 = vmatpush3.bf16.msra.mxu1 %v1345_v36 }
 0x50f   :  { %4588 = vmatprep.subr.bf16.mxu0 %v5470_v4  ;;  %4594 = vmatprep.subr.bf16.mxu1 %v5470_v4 }
 0x511   :  { %v5139_v31 = vpop.eup %5138  ;;  %4579 = vmatmul.mubr.msk.bf16.vlgmr.msra.gmra.mxu0 %vm1013_vm3, %v1106_v37  ;;  %4585 = vmatmul.mubr.msk.bf16.vlgmr.msra.gmra.mxu1 %vm1013_vm3, %v1107_v38 }
 0x512   :  { %v5141_v40 = vpop.eup %5140  ;;  %4589 = vmatpush3.bf16.msra.mxu0 %v1391_v39  ;;  %4595 = vmatpush3.bf16.msra.mxu1 %v1437_v42  ;;  %v1100_v41 = vmul.f32 %v5139_v31, %v5774_v45 }
 0x513   :  { %4590 = vmatprep.mubr.msk.bf16.mxu0 %vm5472_vm0, %v5470_v4  ;;  %4596 = vmatprep.mubr.msk.bf16.mxu1 %vm5472_vm0, %v5470_v4  ;;  %v1101_v43 = vmul.f32 %v5141_v40, %v5776_v46  ;;  %v4963_v46 = vld [vmem:[#allocation11 + $0x30] sm:$0xff]  }
 0x514   :  { %4600 = vmatprep.subr.bf16.mxu0 %v5470_v4  ;;  %v1108_v44 = vpack.c.bf16 %v1100_v41, %v1100_v41 }
 0x515   :  { %v1109_v47 = vpack.c.bf16 %v1101_v43, %v1101_v43 }
 0x519   :  { %4591 = vmatmul.mubr.msk.bf16.vlgmr.msra.gmra.mxu0 %vm1013_vm3, %v1108_v44  ;;  %4597 = vmatmul.mubr.msk.bf16.vlgmr.msra.gmra.mxu1 %vm1013_vm3, %v1109_v47 }
 0x51a   :  { %4616 = vmatprep.mubr.msk.bf16.mxu0 %vm5472_vm0, %v5470_v4  ;;  %1807 = vmatprep.mubr.bf16.mxu1 %v5471_v27 }
 0x51b   :  { %4601 = vmatpush3.bf16.msra.mxu0 %v4962_v53  ;;  %v4164_v53 = vld [vmem:[%s6155_s7] ss:$0 sm:$0xff] }
 0x51c   :  { %4602 = vmatprep.subr.bf16.mxu0 %v5470_v4 }
 0x51f   :  { %4603 = vmatpush3.bf16.msra.mxu0 %v4963_v46 }
 0x520   :  { %4604 = vmatprep.subr.bf16.mxu0 %v5470_v4 }
 0x523   :  { %4605 = vmatpush3.bf16.msra.mxu0 %v4964_v62 }
 0x524   :  { %4606 = vmatprep.subr.bf16.mxu0 %v5470_v4 }
 0x527   :  { %4607 = vmatpush3.bf16.msra.mxu0 %v4965_v0  ;;  %v4970_v0 = vld [vmem:[#allocation13 + $0x70] ss:$8 sps:$4 sm:$0xff]  }
 0x528   :  { %4608 = vmatprep.subr.bf16.mxu0 %v5470_v4 }
 0x52b   :  { %4609 = vmatpush3.bf16.msra.mxu0 %v4966_v3 }
 0x52c   :  { %4610 = vmatprep.subr.bf16.mxu0 %v5470_v4 }
 0x52f   :  { %4611 = vmatpush3.bf16.msra.mxu0 %v4967_v9 }
 0x530   :  { %4612 = vmatprep.subr.bf16.mxu0 %v5470_v4 }
 0x533   :  { %4613 = vmatpush3.bf16.msra.mxu0 %v4968_v11  ;;  %v4973_v11 = vld [vmem:[#allocation13 + $0x60] ss:$8 sps:$4 sm:$0xff]  }
 0x534   :  { %4614 = vmatprep.subr.bf16.mxu0 %v5470_v4 }
 0x537   :  { %4615 = vmatpush3.bf16.msra.mxu0 %v4969_v17  ;;  %v4984_v17 = vld [vmem:[#allocation13 + $0x34] ss:$8 sps:$4 sm:$0xff]  }
 0x553   :  { %v5825_v48 = vpop.f32.mrf.mxu1 }
 0x555   :  { %v4562_v49 = vpop.f32.mrf.mxu1 }
 0x557   :  { %v1200_v52 = vpop.f32.mrf.mxu1 }
 0x559   :  { %v4563_v45 = vpop.f32.mrf.mxu1 }
 0x56e   :  { %v1151_v57 = vpop.f32.mrf.mxu0 }
 0x570   :  { %v4556_v59 = vpop.f32.mrf.mxu0 }
 0x572   :  { %v1154_v60 = vpop.f32.mrf.mxu0 }
 0x574   :  { %v4557_v61 = vpop.f32.mrf.mxu0 }
 0x5be   :  { %v1243_v63 = vpop.f32.mrf.mxu0 }
 0x5c0   :  { %v4568_v1 = vpop.f32.mrf.mxu0 }
 0x5c1   :  { %v4972_v1 = vld [vmem:[#allocation13 + $0x74] ss:$8 sps:$4 sm:$0xff]  }
 0x5c2   :  { %v1246_v2 = vpop.f32.mrf.mxu0  ;;  %1775 = vmatprep.subr.bf16.mxu1 %v4972_v1 }
 0x5c3   :  { %1776 = vmatpush1.bf16.msra.mxu1 %v4970_v0 }
 0x5c4   :  { %v4569_v5 = vpop.f32.mrf.mxu0 }
 0x5c6   :  { %v1289_v16 = vpop.f32.mrf.mxu1 }
 0x5c7   :  { %v4860_v6 = vpack.i.bf16 %v1289_v16, %v1243_v63 }
 0x5c8   :  { %v4574_v7 = vpop.f32.mrf.mxu1 }
 0x5c9   :  { %4861 = vrot.lane.b32.xlu1 %v4860_v6, %s5474_s1 }
 0x5ca   :  { %v1292_v10 = vpop.f32.mrf.mxu1 }
 0x5cb   :  { %v4975_v10 = vld [vmem:[#allocation13 + $0x64] ss:$8 sps:$4 sm:$0xff]  }
 0x5cc   :  { %v4575_v12 = vpop.f32.mrf.mxu1  ;;  %1777 = vmatprep.subr.bf16.mxu1 %v4975_v10 }
 0x5cd   :  { %1778 = vmatpush1.bf16.msra.mxu1 %v4973_v11  ;;  %v4976_v12 = vld [vmem:[#allocation13 + $0x50] ss:$8 sps:$4 sm:$0xff]  }
 0x5d1   :  { %v1335_v13 = vpop.f32.mrf.mxu0  ;;  %v1381_v14 = vpop.f32.mrf.mxu1 }
 0x5d2   :  { %v4865_v18 = vpack.i.bf16 %v1381_v14, %v1335_v13  ;;  %v4981_v13 = vld [vmem:[#allocation13 + $0x44] ss:$8 sps:$4 sm:$0xff]   ;;  %v4979_v14 = vld [vmem:[#allocation13 + $0x40] ss:$8 sps:$4 sm:$0xff]  }
 0x5d3   :  { %v4580_v19 = vpop.f32.mrf.mxu0  ;;  %v4586_v15 = vpop.f32.mrf.mxu1 }
 0x5d4   :  { %4866 = vrot.lane.b32.xlu1 %v4865_v18, %s6181_s22  ;;  %v4982_v18 = vld [vmem:[#allocation13 + $0x30] ss:$8 sps:$4 sm:$0xff]   ;;  %v4987_v19 = vld [vmem:[#allocation13 + $0x24] ss:$8 sps:$4 sm:$0xff]   ;;  %v4985_v15 = vld [vmem:[#allocation13 + $0x20] ss:$8 sps:$4 sm:$0xff]  }
 0x5d5   :  { %v1338_v20 = vpop.f32.mrf.mxu0  ;;  %v1384_v21 = vpop.f32.mrf.mxu1 }
 0x5d6   :  { %v4990_v20 = vld [vmem:[#allocation13 + $0x14] ss:$8 sps:$4 sm:$0xff]   ;;  %v4988_v21 = vld [vmem:[#allocation13 + $0x10] ss:$8 sps:$4 sm:$0xff]  }
 0x5d7   :  { %v4581_v22 = vpop.f32.mrf.mxu0  ;;  %v4587_v24 = vpop.f32.mrf.mxu1 }
 0x5d8   :  { %v4993_v22 = vld [vmem:[#allocation13 + $0x4] ss:$8 sps:$4 sm:$0xff]   ;;  %v4991_v24 = vld [vmem:[#allocation13] ss:$8 sps:$4 sm:$0xff]  }
 0x5d9   :  { %v1427_v25 = vpop.f32.mrf.mxu0  ;;  %v1473_v26 = vpop.f32.mrf.mxu1 }
 0x5da   :  { %v4870_v28 = vpack.i.bf16 %v1473_v26, %v1427_v25 }
 0x5db   :  { %v4592_v8 = vpop.f32.mrf.mxu0  ;;  %v4598_v29 = vpop.f32.mrf.mxu1 }
 0x5dc   :  { %4871 = vrot.lane.b32.xlu0 %v4870_v28, %s5473_s24 }
 0x5dd   :  { %v1430_v30 = vpop.f32.mrf.mxu0  ;;  %v1476_v32 = vpop.f32.mrf.mxu1 }
 0x5df   :  { %v4593_v33 = vpop.f32.mrf.mxu0  ;;  %v4599_v34 = vpop.f32.mrf.mxu1 }
 0x5e0   :  { %v4173_v34 = vld [vmem:[%s6156_s8] ss:$0 sm:$0xff] }
 0x63b   :  { %v4862_v35 = vpop.permute.xlu1 %4861 }
 0x63c   :  { %v4864_v36 = vunpack.i.h.bf16 %v4862_v35  ;;  %v4863_v37 = vunpack.i.l.bf16 %v4862_v35 }
 0x63e   :  { %v1504_v42 = vsel %vm644_vm1, %v5825_v48, %v4864_v36  ;;  %v1503_v40 = vsel %vm644_vm1, %v1151_v57, %v4863_v37  ;;  %v4174_v37 = vld [vmem:[%s6157_s9] ss:$0 sm:$0xff] }
 0x646   :  { %v4867_v23 = vpop.permute.xlu1 %4866 }
 0x647   :  { %v4869_v38 = vunpack.i.h.bf16 %v4867_v23  ;;  %v4868_v31 = vunpack.i.l.bf16 %v4867_v23 }
 0x649   :  { %v1507_v44 = vsel %vm1505_vm4, %v1504_v42, %v4869_v38  ;;  %v1506_v47 = vsel %vm1505_vm4, %v1503_v40, %v4868_v31  ;;  %v4994_v40 = vld [vmem:[#allocation14 + $0x78] sm:$0xff]  }
 0x64a   :  { %4372 = vmatprep.subr.bf16.mxu0 %v4994_v40 }
 0x64e   :  { %v4872_v39 = vpop.permute.xlu0 %4871 }
 0x64f   :  { %v4874_v41 = vunpack.i.h.bf16 %v4872_v39  ;;  %v4873_v43 = vunpack.i.l.bf16 %v4872_v39 }
 0x651   :  { %v1510_v49 = vsel %vm1508_vm5, %v1507_v44, %v4874_v41  ;;  %v1509_v52 = vsel %vm1508_vm5, %v1506_v47, %v4873_v43  ;;  %v4995_v41 = vld [vmem:[#allocation14 + $0x38] sm:$0xff]   ;;  %v4996_v43 = vld [vmem:[#allocation14 + $0x70] sm:$0xff]   ;;  %v4998_v47 = vld [vmem:[#allocation14 + $0x68] sm:$0xff]  }
 0x652   :  { %v1528_v45 = vpack.c.bf16 %v1510_v49, %v1509_v52  ;;  %v4997_v44 = vld [vmem:[#allocation14 + $0x30] sm:$0xff]   ;;  %v4999_v49 = vld [vmem:[#allocation14 + $0x28] sm:$0xff]   ;;  %v5000_v52 = vld [vmem:[#allocation14 + $0x60] sm:$0xff]  }
 0x654   :  { %4617 = vmatmul.mubr.bf16.vlgmr.msra.gmra.mxu0 %v1528_v45  ;;  %v5001_v45 = vld [vmem:[#allocation14 + $0x20] sm:$0xff]  }
 0x655   :  { %4373 = vmatpush3.bf16.msra.mxu0 %v4995_v41 }
 0x656   :  { %4374 = vmatprep.subr.bf16.mxu0 %v4996_v43 }
 0x659   :  { %4375 = vmatpush3.bf16.msra.mxu0 %v4997_v44 }
 0x65a   :  { %4376 = vmatprep.subr.bf16.mxu0 %v4998_v47 }
 0x65d   :  { %4377 = vmatpush3.bf16.msra.mxu0 %v4999_v49 }
 0x65e   :  { %4378 = vmatprep.subr.bf16.mxu0 %v5000_v52 }
 0x661   :  { %4379 = vmatpush3.bf16.msra.mxu0 %v5001_v45 }
 0x714   :  { %v1617_v46 = vpop.f32.mrf.mxu0 }
 0x715   :  { %v1618_v48 = vadd.f32 %v4164_v53, %v1617_v46  ;;  %v5003_v46 = vld [vmem:[#allocation14 + $0x18] sm:$0xff]  }
 0x716   :  { %v4618_v59 = vpop.f32.mrf.mxu0 }
 0x717   :  { %v1624_v57 = vadd.f32 %v1618_v48, %v5652_v50  ;;  %v5004_v48 = vld [vmem:[#allocation14 + $0x50] sm:$0xff]  }
 0x718   :  { %v1620_v60 = vpop.f32.mrf.mxu0  ;;  %v5005_v59 = vld [vmem:[#allocation14 + $0x10] sm:$0xff]  }
 0x719   :  { %v1621_v61 = vadd.f32 %v4164_v53, %v1620_v60  ;;  %1628 = vadd.xlane.f32.xlu1 %v1624_v57  ;;  %v5002_v53 = vld [vmem:[#allocation14 + $0x58] sm:$0xff]   ;;  %v5007_v60 = vld [vmem:[#allocation14 + $0x8] sm:$0xff]  }
 0x71a   :  { %v4619_v62 = vpop.f32.mrf.mxu0  ;;  %4380 = vmatprep.subr.bf16.mxu0 %v5002_v53 }
 0x71b   :  { %v1625_v63 = vadd.f32 %v1621_v61, %v5654_v51  ;;  %v4978_v51 = vld [vmem:[#allocation13 + $0x54] ss:$8 sps:$4 sm:$0xff]   ;;  %4381 = vmatpush3.bf16.msra.mxu0 %v5003_v46  ;;  %v5008_v61 = vld [vmem:[#allocation14 + $0x40] sm:$0xff]  }
 0x71c   :  { %1779 = vmatprep.subr.bf16.mxu1 %v4978_v51  ;;  %4382 = vmatprep.subr.bf16.mxu0 %v5004_v48  ;;  %v5009_v62 = vld [vmem:[#allocation14] sm:$0xff]  }
 0x71d   :  { %1630 = vadd.xlane.f32.xlu0 %v1625_v63  ;;  %1780 = vmatpush1.bf16.msra.mxu1 %v4976_v12  ;;  %v4191_v48 = vld [vmem:[%s6161_s13] ss:$0 sm:$0xff] }
 0x71e   :  { %1781 = vmatprep.subr.bf16.mxu1 %v4981_v13 }
 0x71f   :  { %4383 = vmatpush3.bf16.msra.mxu0 %v5005_v59 }
 0x721   :  { %1782 = vmatpush1.bf16.msra.mxu1 %v4979_v14 }
 0x722   :  { %1783 = vmatprep.subr.bf16.mxu1 %v4984_v17 }
 0x725   :  { %1784 = vmatpush1.bf16.msra.mxu1 %v4982_v18 }
 0x726   :  { %1785 = vmatprep.subr.bf16.mxu1 %v4987_v19 }
 0x729   :  { %1786 = vmatpush1.bf16.msra.mxu1 %v4985_v15 }
 0x72a   :  { %1787 = vmatprep.subr.bf16.mxu1 %v4990_v20 }
 0x72d   :  { %1788 = vmatpush1.bf16.msra.mxu1 %v4988_v21 }
 0x72e   :  { %1789 = vmatprep.subr.bf16.mxu1 %v4993_v22 }
 0x731   :  { %1790 = vmatpush1.bf16.msra.mxu1 %v4991_v24 }
 0x7a2   :  { %v1629_v2 = vpop.xlane.xlu1 %1628 }
 0x7a3   :  { %v1632_v3 = vmul.f32 0.0078125, %v1629_v2 }
 0x7a5   :  { %v1634_v5 = vsub.f32 %v1624_v57, %v1632_v3  ;;  %v5006_v57 = vld [vmem:[#allocation14 + $0x48] sm:$0xff]  }
 0x7a6   :  { %v1631_v16 = vpop.xlane.xlu0 %1630  ;;  %4384 = vmatprep.subr.bf16.mxu0 %v5006_v57 }
 0x7a7   :  { %v1633_v6 = vmul.f32 0.0078125, %v1631_v16  ;;  %v1636_v7 = vmul.f32 %v1634_v5, %v1634_v5  ;;  %4385 = vmatpush3.bf16.msra.mxu0 %v5007_v60 }
 0x7a8   :  { %4386 = vmatprep.subr.bf16.mxu0 %v5008_v61 }
 0x7a9   :  { %v1635_v9 = vsub.f32 %v1625_v63, %v1633_v6  ;;  %1638 = vadd.xlane.f32.xlu0 %v1636_v7  ;;  %v1682_v63 = vld [vmem:[%s6159_s11] sm:$0x3] }
 0x7aa   :  { %v1688_v0 = vrot.slane %v1682_v63, %v5668_v56  ;;  %v1692_v1 = vrot.slane %v1682_v63, %v5665_v55 }
 0x7ab   :  { %v1637_v50 = vmul.f32 %v1635_v9, %v1635_v9  ;;  %4387 = vmatpush3.bf16.msra.mxu0 %v5009_v62 }
 0x7ac   :  { %4620 = vmatprep.subr.bf16.mxu0 %v5470_v4 }
 0x7ad   :  { %1640 = vadd.xlane.f32.xlu0 %v1637_v50 }
 0x832   :  { %v1639_v25 = vpop.xlane.xlu0 %1638 }
 0x833   :  { %v1642_v26 = vmul.f32 0.0078125, %v1639_v25 }
 0x835   :  { %v1644_v28 = vadd.f32 1e-12, %v1642_v26 }
 0x836   :  { %v1641_v8 = vpop.xlane.xlu0 %1640 }
 0x837   :  { %5142 = vrsqrt.f32 %v1644_v28  ;;  %v1643_v29 = vmul.f32 0.0078125, %v1641_v8 }
 0x839   :  { %v1645_v30 = vadd.f32 1e-12, %v1643_v29 }
 0x83b   :  { %5144 = vrsqrt.f32 %v1645_v30 }
 0x844   :  { %v5143_v32 = vpop.eup %5142 }
 0x845   :  { %v1648_v33 = vmul.f32 %v5143_v32, %v1634_v5 }
 0x847   :  { %v1656_v36 = vmul.f32 %v4173_v34, %v1648_v33 }
 0x848   :  { %v5145_v35 = vpop.eup %5144 }
 0x849   :  { %v1649_v23 = vmul.f32 %v5145_v35, %v1635_v9  ;;  %v5855_v31 = vadd.f32 %v4174_v37, %v1656_v36 }
 0x84b   :  { %v1657_v38 = vmul.f32 %v4173_v34, %v1649_v23 }
 0x84d   :  { %v5857_v39 = vadd.f32 %v4174_v37, %v1657_v38 }
 0x84f   :  { %v1683_v42 = vpack.c.bf16 %v5857_v39, %v5855_v31 }
 0x851   :  { %1808 = vmatmul.mubr.bf16.vlgmr.msra.gmra.mxu1 %v1683_v42 }
 0x852   :  { %2286 = vmatprep.mubr.bf16.mxu1 %v5471_v27 }
 0x911   :  { %v1809_v2 = vpop.f32.mrf.mxu1 }
 0x912   :  { %v1810_v3 = vadd.f32 %v1809_v2, %v1688_v0 }
 0x913   :  { %v1811_v5 = vpop.f32.mrf.mxu1 }
 0x914   :  { %v1822_v16 = vmul.f32 0.044715, %v1810_v3  ;;  %v1812_v6 = vadd.f32 %v1811_v5, %v1692_v1  ;;  %v1818_v43 = vmul.f32 0.5, %v1810_v3  ;;  %v5012_v5 = vld [vmem:[#allocation10 + $0x16c] ss:$12 sps:$4 sm:$0xff]  }
 0x915   :  { %v1813_v7 = vpop.f32.mrf.mxu1  ;;  %2254 = vmatprep.subr.bf16.mxu1 %v5012_v5 }
 0x916   :  { %v1826_v9 = vmul.f32 %v1822_v16, %v1810_v3  ;;  %v1823_v50 = vmul.f32 0.044715, %v1812_v6  ;;  %v1814_v10 = vadd.f32 %v1813_v7, %v1688_v0  ;;  %v1819_v42 = vmul.f32 0.5, %v1812_v6  ;;  %v5013_v16 = vld [vmem:[#allocation10 + $0x170] ss:$12 sps:$4 sm:$0xff]  }
 0x917   :  { %v1815_v11 = vpop.f32.mrf.mxu1 }
 0x918   :  { %v1830_v51 = vmul.f32 %v1826_v9, %v1810_v3  ;;  %v1827_v12 = vmul.f32 %v1823_v50, %v1812_v6  ;;  %v1824_v13 = vmul.f32 0.044715, %v1814_v10  ;;  %v1816_v14 = vadd.f32 %v1815_v11, %v1692_v1 }
 0x919   :  { %v1820_v37 = vmul.f32 0.5, %v1814_v10 }
 0x91a   :  { %v1834_v17 = vadd.f32 %v1830_v51, %v1810_v3  ;;  %v1831_v18 = vmul.f32 %v1827_v12, %v1812_v6  ;;  %v1828_v19 = vmul.f32 %v1824_v13, %v1814_v10  ;;  %v1825_v15 = vmul.f32 0.044715, %v1816_v14  ;;  %v5010_v3 = vld [vmem:[#allocation10 + $0x168] ss:$12 sps:$4 sm:$0xff]   ;;  %v5014_v12 = vld [vmem:[#allocation10 + $0x150] ss:$12 sps:$4 sm:$0xff]  }
 0x91b   :  { %v1821_v40 = vmul.f32 0.5, %v1816_v14  ;;  %2255 = vmatpush1.bf16.msra.mxu1 %v5010_v3  ;;  %v5016_v51 = vld [vmem:[#allocation10 + $0x154] ss:$12 sps:$4 sm:$0xff]   ;;  %v5017_v13 = vld [vmem:[#allocation10 + $0x158] ss:$12 sps:$4 sm:$0xff]  }
 0x91c   :  { %v1832_v20 = vmul.f32 %v1828_v19, %v1814_v10  ;;  %v1829_v21 = vmul.f32 %v1825_v15, %v1816_v14  ;;  %v1835_v22 = vadd.f32 %v1831_v18, %v1812_v6  ;;  %v1838_v24 = vmul.f32 0.7978846, %v1834_v17  ;;  %2256 = vmatprep.subr.bf16.mxu1 %v5016_v51  ;;  %v5018_v17 = vld [vmem:[#allocation10 + $0x138] ss:$12 sps:$4 sm:$0xff]   ;;  %v5021_v18 = vld [vmem:[#allocation10 + $0x140] ss:$12 sps:$4 sm:$0xff]  }
 0x91d   :  { %v5024_v19 = vld [vmem:[#allocation10 + $0x124] ss:$12 sps:$4 sm:$0xff]   ;;  %v5022_v15 = vld [vmem:[#allocation10 + $0x120] ss:$12 sps:$4 sm:$0xff]  }
 0x91e   :  { %v1836_v25 = vadd.f32 %v1832_v20, %v1814_v10  ;;  %v1833_v26 = vmul.f32 %v1829_v21, %v1816_v14  ;;  %v1839_v28 = vmul.f32 0.7978846, %v1835_v22  ;;  %v5025_v20 = vld [vmem:[#allocation10 + $0x128] ss:$12 sps:$4 sm:$0xff]   ;;  %v5028_v21 = vld [vmem:[#allocation10 + $0x10c] ss:$12 sps:$4 sm:$0xff]  }
 0x91f   :  { %2257 = vmatpush1.bf16.msra.mxu1 %v5014_v12  ;;  %v5026_v22 = vld [vmem:[#allocation10 + $0x108] ss:$12 sps:$4 sm:$0xff]  }
 0x920   :  { %v1840_v8 = vmul.f32 0.7978846, %v1836_v25  ;;  %v1837_v29 = vadd.f32 %v1833_v26, %v1816_v14  ;;  %5146 = vtanh.f32 %v1839_v28  ;;  %v5020_v14 = vld [vmem:[#allocation10 + $0x13c] ss:$12 sps:$4 sm:$0xff]   ;;  %v5032_v25 = vld [vmem:[#allocation10 + $0xf4] ss:$12 sps:$4 sm:$0xff]  }
 0x921   :  { %5148 = vtanh.f32 %v1838_v24  ;;  %2258 = vmatprep.subr.bf16.mxu1 %v5020_v14  ;;  %v5029_v24 = vld [vmem:[#allocation10 + $0x110] ss:$12 sps:$4 sm:$0xff]   ;;  %v5033_v28 = vld [vmem:[#allocation10 + $0xf8] ss:$12 sps:$4 sm:$0xff]  }
 0x922   :  { %5150 = vtanh.f32 %v1840_v8  ;;  %v1841_v30 = vmul.f32 0.7978846, %v1837_v29  ;;  %v5030_v26 = vld [vmem:[#allocation10 + $0xf0] ss:$12 sps:$4 sm:$0xff]   ;;  %v5034_v29 = vld [vmem:[#allocation10 + $0xd8] ss:$12 sps:$4 sm:$0xff]  }
 0x923   :  { %2259 = vmatpush1.bf16.msra.mxu1 %v5018_v17  ;;  %v5036_v8 = vld [vmem:[#allocation10 + $0xdc] ss:$12 sps:$4 sm:$0xff]  }
 0x924   :  { %5152 = vtanh.f32 %v1841_v30  ;;  %2260 = vmatprep.subr.bf16.mxu1 %v5024_v19  ;;  %v5037_v30 = vld [vmem:[#allocation10 + $0xe0] ss:$12 sps:$4 sm:$0xff]  }
 0x927   :  { %2261 = vmatpush1.bf16.msra.mxu1 %v5022_v15 }
 0x928   :  { %2262 = vmatprep.subr.bf16.mxu1 %v5028_v21 }
 0x92b   :  { %2263 = vmatpush1.bf16.msra.mxu1 %v5026_v22 }
 0x92c   :  { %2264 = vmatprep.subr.bf16.mxu1 %v5032_v25 }
 0x92d   :  { %v5147_v32 = vpop.eup %5146 }
 0x92e   :  { %v5149_v33 = vpop.eup %5148  ;;  %v1847_v35 = vadd.f32 1.0, %v5147_v32  ;;  %v5040_v32 = vld [vmem:[#allocation10 + $0xc4] ss:$12 sps:$4 sm:$0xff]  }
 0x92f   :  { %v5151_v34 = vpop.eup %5150  ;;  %v1846_v38 = vadd.f32 1.0, %v5149_v33  ;;  %2265 = vmatpush1.bf16.msra.mxu1 %v5030_v26  ;;  %v5038_v33 = vld [vmem:[#allocation10 + $0xc0] ss:$12 sps:$4 sm:$0xff]  }
 0x930   :  { %v1848_v23 = vadd.f32 1.0, %v5151_v34  ;;  %v1851_v47 = vmul.f32 %v1847_v35, %v1819_v42  ;;  %2266 = vmatprep.subr.bf16.mxu1 %v5036_v8  ;;  %v5041_v34 = vld [vmem:[#allocation10 + $0xc8] ss:$12 sps:$4 sm:$0xff]  }
 0x931   :  { %v5153_v36 = vpop.eup %5152  ;;  %v1850_v52 = vmul.f32 %v1846_v38, %v1818_v43  ;;  %v4208_v43 = vld [vmem:[%s6162_s14] ss:$0 sm:$0xff] }
 0x932   :  { %v1849_v41 = vadd.f32 1.0, %v5153_v36  ;;  %v1852_v44 = vmul.f32 %v1848_v23, %v1820_v37 }
 0x933   :  { %2267 = vmatpush1.bf16.msra.mxu1 %v5034_v29 }
 0x934   :  { %v1853_v49 = vmul.f32 %v1849_v41, %v1821_v40  ;;  %v1887_v53 = vpack.c.bf16 %v1852_v44, %v1850_v52  ;;  %2268 = vmatprep.subr.bf16.mxu1 %v5040_v32  ;;  %v4209_v52 = vld [vmem:[%s6163_s15] ss:$0 sm:$0xff] }
 0x936   :  { %v1888_v45 = vpack.c.bf16 %v1853_v49, %v1851_v47 }
 0x937   :  { %2269 = vmatpush1.bf16.msra.mxu1 %v5038_v33 }
 0x938   :  { %2023 = vmatprep.mubr.bf16.mxu0 %v1888_v45  ;;  %4640 = vmatprep.subr.bf16.mxu1 %v5470_v4 }
 0x939   :  { %2024 = vmatmul.mubr.bf16.vlgmr.msra.gmra.mxu0 %v1887_v53 }
 0x93a   :  { %4636 = vmatprep.mubr.msk.bf16.mxu0 %vm5472_vm0, %v5470_v4  ;;  %4621 = vmatpush3.bf16.msra.mxu0 %v5013_v16 }
 0x93b   :  { %4622 = vmatprep.subr.bf16.mxu0 %v5470_v4 }
 0x93e   :  { %4623 = vmatpush3.bf16.msra.mxu0 %v5017_v13 }
 0x93f   :  { %4624 = vmatprep.subr.bf16.mxu0 %v5470_v4 }
 0x942   :  { %4625 = vmatpush3.bf16.msra.mxu0 %v5021_v18 }
 0x943   :  { %4626 = vmatprep.subr.bf16.mxu0 %v5470_v4 }
 0x946   :  { %4627 = vmatpush3.bf16.msra.mxu0 %v5025_v20 }
 0x947   :  { %4628 = vmatprep.subr.bf16.mxu0 %v5470_v4 }
 0x94a   :  { %4629 = vmatpush3.bf16.msra.mxu0 %v5029_v24 }
 0x94b   :  { %4630 = vmatprep.subr.bf16.mxu0 %v5470_v4 }
 0x94e   :  { %4631 = vmatpush3.bf16.msra.mxu0 %v5033_v28 }
 0x94f   :  { %4632 = vmatprep.subr.bf16.mxu0 %v5470_v4 }
 0x952   :  { %4633 = vmatpush3.bf16.msra.mxu0 %v5037_v30 }
 0x953   :  { %4634 = vmatprep.subr.bf16.mxu0 %v5470_v4 }
 0x956   :  { %4635 = vmatpush3.bf16.msra.mxu0 %v5041_v34 }
 0x957   :  { %4664 = vmatprep.subr.bf16.mxu0 %v5470_v4 }
 0x9f9   :  { %v4388_v46 = vpop.f32.mrf.mxu0 }
 0x9fb   :  { %v4389_v59 = vpop.f32.mrf.mxu0 }
 0x9fc   :  { %v4390_v57 = vadd.f32 %v4389_v59, %v4388_v46  ;;  %v4210_v59 = vld [vmem:[%s6153_s5 + $0x3] sm:$0x7] }
 0x9fd   :  { %v4391_v60 = vpop.f32.mrf.mxu0 }
 0x9fe   :  { %v2026_v61 = vadd.f32 %v4390_v57, %v4191_v48  ;;  %v2118_v57 = vrot.slane %v4210_v59, %v5665_v55 }
 0x9ff   :  { %v4392_v62 = vpop.f32.mrf.mxu0 }
 0xa00   :  { %v4393_v63 = vadd.f32 %v4392_v62, %v4391_v60  ;;  %v2032_v0 = vadd.f32 %v2026_v61, %v5855_v31  ;;  %v2122_v62 = vrot.slane %v4210_v59, %v295_v58 }
 0xa02   :  { %v2029_v1 = vadd.f32 %v4393_v63, %v4191_v48  ;;  %2036 = vadd.xlane.f32.xlu1 %v2032_v0 }
 0xa04   :  { %v2033_v2 = vadd.f32 %v2029_v1, %v5857_v39  ;;  %v2114_v1 = vrot.slane %v4210_v59, %v5668_v56 }
 0xa06   :  { %2038 = vadd.xlane.f32.xlu0 %v2033_v2 }
 0xa8b   :  { %v2037_v6 = vpop.xlane.xlu1 %2036 }
 0xa8c   :  { %v2040_v7 = vmul.f32 0.0078125, %v2037_v6 }
 0xa8e   :  { %v5876_v9 = vsub.f32 %v2032_v0, %v2040_v7 }
 0xa8f   :  { %v2039_v50 = vpop.xlane.xlu0 %2038 }
 0xa90   :  { %v2041_v10 = vmul.f32 0.0078125, %v2039_v50  ;;  %v2044_v31 = vmul.f32 %v5876_v9, %v5876_v9 }
 0xa92   :  { %v5880_v11 = vsub.f32 %v2033_v2, %v2041_v10  ;;  %2046 = vadd.xlane.f32.xlu1 %v2044_v31 }
 0xa94   :  { %v2045_v39 = vmul.f32 %v5880_v11, %v5880_v11 }
 0xa96   :  { %2048 = vadd.xlane.f32.xlu0 %v2045_v39 }
 0xb1b   :  { %v2047_v35 = vpop.xlane.xlu1 %2046 }
 0xb1c   :  { %v2050_v23 = vmul.f32 0.0078125, %v2047_v35 }
 0xb1e   :  { %v2052_v36 = vadd.f32 1e-12, %v2050_v23 }
 0xb1f   :  { %v2049_v37 = vpop.xlane.xlu0 %2048 }
 0xb20   :  { %5154 = vrsqrt.f32 %v2052_v36  ;;  %v2051_v38 = vmul.f32 0.0078125, %v2049_v37 }
 0xb22   :  { %v2053_v42 = vadd.f32 1e-12, %v2051_v38 }
 0xb24   :  { %5156 = vrsqrt.f32 %v2053_v42 }
 0xb2d   :  { %v5155_v40 = vpop.eup %5154 }
 0xb2e   :  { %v2056_v41 = vmul.f32 %v5155_v40, %v5876_v9 }
 0xb30   :  { %v2064_v49 = vmul.f32 %v4208_v43, %v2056_v41 }
 0xb31   :  { %v5157_v44 = vpop.eup %5156 }
 0xb32   :  { %v2057_v47 = vmul.f32 %v5157_v44, %v5880_v11  ;;  %v5900_v53 = vadd.f32 %v4209_v52, %v2064_v49 }
 0xb34   :  { %v2065_v45 = vmul.f32 %v4208_v43, %v2057_v47 }
 0xb36   :  { %v5902_v46 = vadd.f32 %v4209_v52, %v2065_v45 }
 0xb38   :  { %v2109_v48 = vpack.c.bf16 %v5902_v46, %v5900_v53 }
 0xb3a   :  { %2287 = vmatmul.mubr.bf16.vlgmr.msra.gmra.mxu1 %v2109_v48  ;;  %4637 = vmatmul.mubr.bf16.vlgmr.msra.gmra.mxu0 %v2109_v48 }
 0xb3b   :  { %4642 = vmatprep.mubr.msk.bf16.mxu1 %vm5472_vm0, %v5470_v4  ;;  %4666 = vmatprep.mubr.msk.bf16.mxu0 %vm5472_vm0, %v5470_v4 }
 0xbfa   :  { %v2288_v60 = vpop.f32.mrf.mxu1  ;;  %v2331_v61 = vpop.f32.mrf.mxu0 }
 0xbfb   :  { %v5920_v7 = vadd.f32 %v2331_v61, %v2122_v62  ;;  %v2289_v10 = vadd.f32 %v2288_v60, %v2114_v1 }
 0xbfc   :  { %v2290_v63 = vpop.f32.mrf.mxu1  ;;  %v4638_v0 = vpop.f32.mrf.mxu0 }
 0xbfd   :  { %v2291_v2 = vadd.f32 %v2290_v63, %v2118_v57  ;;  %v2358_v13 = vpack.c.bf16 %v2289_v10, %v2289_v10 }
 0xbfe   :  { %v2292_v3 = vpop.f32.mrf.mxu1  ;;  %v2334_v5 = vpop.f32.mrf.mxu0 }
 0xbff   :  { %v5917_v16 = vadd.f32 %v2334_v5, %v2122_v62  ;;  %2368 = vrot.lane.b32.xlu1 %v2291_v2, %s5473_s24  ;;  %v2386_v6 = vpack.c.bf16 %v2291_v2, %v2291_v2  ;;  %v2293_v31 = vadd.f32 %v2292_v3, %v2114_v1  ;;  %v5210_v5 = vld [vmem:[#allocation5] ss:$0 sm:$0xff] }
 0xc00   :  { %v2294_v9 = vpop.f32.mrf.mxu1  ;;  %v4639_v50 = vpop.f32.mrf.mxu0 }
 0xc01   :  { %v2295_v54 = vadd.f32 %v2294_v9, %v2118_v57  ;;  %v2426_v58 = vsel %vm644_vm1, %v2386_v6, 0  ;;  %v5925_v11 = vpack.i.bf16 %v5917_v16, %v5920_v7  ;;  %v4885_v17 = vpack.i.bf16 %v2293_v31, %v2289_v10 }
 0xc02   :  { %4641 = vmatpush3.bf16.xpose.msra.mxu1 %v2426_v58  ;;  %v2359_v18 = vpack.c.bf16 %v2293_v31, %v2293_v31  ;;  %v2414_v57 = vpack.c.bf16 %v5920_v7, %v5920_v7  ;;  %v2415_v0 = vpack.c.bf16 %v5917_v16, %v5917_v16 }
 0xc03   :  { %2342 = vrot.lane.b32.xlu1 %v2293_v31, %s5473_s24  ;;  %v4875_v39 = vpack.i.bf16 %v2295_v54, %v2289_v10  ;;  %4646 = vmatprep.subr.bf16.mxu1 %v5470_v4  ;;  %v4880_v51 = vpack.i.bf16 %v2295_v54, %v2291_v2  ;;  %v2387_v12 = vpack.c.bf16 %v2295_v54, %v2295_v54  ;;  %v5211_v31 = vld [vmem:[#allocation5 + $0x1] ss:$0 sm:$0xff] }
 0xc04   :  { %v2890_v63 = vsel %vm1113_vm2, %v2414_v57, 0  ;;  %v2936_v2 = vsel %vm1113_vm2, %v2415_v0, 0 }
 0xc05   :  { %4876 = vrot.lane.b32.xlu0 %v4875_v39, %s5473_s24  ;;  %v2472_v14 = vsel %vm644_vm1, %v2387_v12, 0 }
 0xc07   :  { %4881 = vrot.lane.b32.xlu1 %v4880_v51, %s6181_s22 }
 0xc09   :  { %4891 = vrot.lane.b32.xlu0 %v4880_v51, %s5474_s1  ;;  %4643 = vmatmul.mubr.msk.bf16.vlgmr.msra.gmra.mxu1 %vm644_vm1, %v2358_v13 }
 0xc0a   :  { %4647 = vmatpush3.bf16.xpose.msra.mxu1 %v2472_v14  ;;  %4648 = vmatprep.mubr.msk.bf16.mxu1 %vm5472_vm0, %v5470_v4  ;;  %v5212_v14 = vld [vmem:[#allocation5 + $0x2] ss:$0 sm:$0xff] }
 0xc0b   :  { %4886 = vrot.lane.b32.xlu1 %v4885_v17, %s6181_s22  ;;  %4652 = vmatprep.subr.bf16.mxu1 %v5470_v4 }
 0xc0f   :  { %4896 = vrot.lane.b32.xlu1 %v4885_v17, %s5474_s1 }
 0xc11   :  { %4649 = vmatmul.mubr.msk.bf16.vlgmr.msra.gmra.mxu1 %vm644_vm1, %v2359_v18 }
 0xc12   :  { %4654 = vmatprep.mubr.msk.bf16.mxu1 %vm5472_vm0, %v5470_v4 }
 0xc71   :  { %v2369_v19 = vpop.permute.xlu1 %2368 }
 0xc72   :  { %v2388_v15 = vpack.c.bf16 %v2369_v19, %v2369_v19 }
 0xc74   :  { %v2518_v20 = vsel %vm644_vm1, %v2388_v15, 0 }
 0xc75   :  { %v2343_v21 = vpop.permute.xlu1 %2342  ;;  %4653 = vmatpush3.bf16.xpose.msra.mxu1 %v2518_v20 }
 0xc76   :  { %4658 = vmatprep.subr.bf16.mxu1 %v5470_v4  ;;  %v2361_v42 = vpack.c.bf16 %v2343_v21, %v2343_v21 }
 0xc77   :  { %v4877_v22 = vpop.permute.xlu0 %4876 }
 0xc78   :  { %v4879_v24 = vunpack.i.h.bf16 %v4877_v22  ;;  %v4878_v25 = vunpack.i.l.bf16 %v4877_v22  ;;  %v5213_v22 = vld [vmem:[#allocation5 + $0x3] ss:$0 sm:$0xff] }
 0xc79   :  { %v4882_v26 = vpop.permute.xlu1 %4881 }
 0xc7a   :  { %v2389_v28 = vpack.c.bf16 %v4879_v24, %v4879_v24  ;;  %v2360_v8 = vpack.c.bf16 %v4878_v25, %v4878_v25  ;;  %v4883_v29 = vunpack.i.l.bf16 %v4882_v26  ;;  %v4884_v33 = vunpack.i.h.bf16 %v4882_v26 }
 0xc7b   :  { %v4892_v32 = vpop.permute.xlu0 %4891 }
 0xc7c   :  { %v2390_v30 = vpack.c.bf16 %v4883_v29, %v4883_v29  ;;  %4655 = vmatmul.mubr.msk.bf16.vlgmr.msra.gmra.mxu1 %vm644_vm1, %v2360_v8  ;;  %v2564_v34 = vsel %vm644_vm1, %v2389_v28, 0  ;;  %v4893_v23 = vunpack.i.l.bf16 %v4892_v32  ;;  %v2391_v37 = vpack.c.bf16 %v4884_v33, %v4884_v33  ;;  %v5214_v28 = vld [vmem:[#allocation5 + $0x4] ss:$0 sm:$0xff] }
 0xc7d   :  { %4660 = vmatprep.mubr.msk.bf16.mxu1 %vm5472_vm0, %v5470_v4  ;;  %v4887_v35 = vpop.permute.xlu1 %4886  ;;  %4659 = vmatpush3.bf16.xpose.msra.mxu1 %v2564_v34  ;;  %v4894_v41 = vunpack.i.h.bf16 %v4892_v32 }
 0xc7e   :  { %v2610_v36 = vsel %vm644_vm1, %v2390_v30, 0  ;;  %4670 = vmatprep.subr.bf16.mxu1 %v5470_v4  ;;  %v4888_v38 = vunpack.i.l.bf16 %v4887_v35  ;;  %v2392_v40 = vpack.c.bf16 %v4893_v23, %v4893_v23  ;;  %v2656_v44 = vsel %vm644_vm1, %v2391_v37, 0  ;;  %v5215_v37 = vld [vmem:[#allocation5 + $0x5] ss:$0 sm:$0xff] }
 0xc7f   :  { %4665 = vmatpush3.bf16.xpose.msra.mxu0 %v2610_v36  ;;  %v4889_v49 = vunpack.i.h.bf16 %v4887_v35  ;;  %v2393_v45 = vpack.c.bf16 %v4894_v41, %v4894_v41  ;;  %v5216_v41 = vld [vmem:[#allocation5 + $0x6] ss:$0 sm:$0xff] }
 0xc80   :  { %4676 = vmatprep.subr.bf16.mxu0 %v5470_v4  ;;  %v2362_v43 = vpack.c.bf16 %v4888_v38, %v4888_v38  ;;  %v2702_v52 = vsel %vm644_vm1, %v2392_v40, 0 }
 0xc81   :  { %v4897_v47 = vpop.permute.xlu1 %4896  ;;  %v2363_v59 = vpack.c.bf16 %v4889_v49, %v4889_v49  ;;  %v2748_v61 = vsel %vm644_vm1, %v2393_v45, 0 }
 0xc82   :  { %v4898_v48 = vunpack.i.l.bf16 %v4897_v47  ;;  %v4899_v62 = vunpack.i.h.bf16 %v4897_v47 }
 0xc84   :  { %4661 = vmatmul.mubr.msk.bf16.vlgmr.msra.gmra.mxu1 %vm644_vm1, %v2361_v42  ;;  %v2364_v60 = vpack.c.bf16 %v4898_v48, %v4898_v48  ;;  %v2365_v1 = vpack.c.bf16 %v4899_v62, %v4899_v62 }
 0xc85   :  { %4671 = vmatpush3.bf16.xpose.msra.mxu1 %v2656_v44  ;;  %4672 = vmatprep.mubr.msk.bf16.mxu1 %vm5472_vm0, %v5470_v4 }
 0xc86   :  { %4667 = vmatmul.mubr.msk.bf16.vlgmr.msra.gmra.mxu0 %vm644_vm1, %v2362_v43  ;;  %4682 = vmatprep.subr.bf16.mxu1 %v5470_v4 }
 0xc87   :  { %4677 = vmatpush3.bf16.xpose.msra.mxu0 %v2702_v52  ;;  %4678 = vmatprep.mubr.msk.bf16.mxu0 %vm5472_vm0, %v5470_v4 }
 0xc88   :  { %4688 = vmatprep.subr.bf16.mxu0 %v5470_v4 }
 0xc8c   :  { %4673 = vmatmul.mubr.msk.bf16.vlgmr.msra.gmra.mxu1 %vm644_vm1, %v2363_v59 }
 0xc8d   :  { %4683 = vmatpush3.bf16.xpose.msra.mxu1 %v2748_v61  ;;  %4684 = vmatprep.mubr.msk.bf16.mxu1 %vm5472_vm0, %v5470_v4 }
 0xc8e   :  { %4679 = vmatmul.mubr.msk.bf16.vlgmr.msra.gmra.mxu0 %vm644_vm1, %v2364_v60  ;;  %4694 = vmatprep.subr.bf16.mxu1 %v5470_v4  ;;  %v5217_v60 = vld [vmem:[#allocation5 + $0x7] ss:$0 sm:$0xff] }
 0xc8f   :  { %4689 = vmatpush3.bf16.msra.mxu0 %v2890_v63  ;;  %4690 = vmatprep.mubr.msk.bf16.mxu0 %vm5472_vm0, %v5470_v4 }
 0xc90   :  { %4700 = vmatprep.subr.bf16.mxu0 %v5470_v4 }
 0xc94   :  { %4685 = vmatmul.mubr.msk.bf16.vlgmr.msra.gmra.mxu1 %vm644_vm1, %v2365_v1 }
 0xc95   :  { %4695 = vmatpush3.bf16.msra.mxu1 %v2936_v2  ;;  %4696 = vmatprep.mubr.msk.bf16.mxu1 %vm5472_vm0, %v5470_v4 }
 0xc96   :  { %4706 = vmatprep.subr.bf16.mxu1 %v5470_v4 }
 0xcc9   :  { %v2462_v3 = vpop.f32.mrf.mxu1 }
 0xcca   :  { %v2463_v6 = vadd.f32 %v5210_v5, %v2462_v3 }
 0xccb   :  { %v4644_v7 = vpop.f32.mrf.mxu1 }
 0xccc   :  { %v2790_v9 = vsel %vm1013_vm3, %v2463_v6, -inf }
 0xccd   :  { %2791 = vmax.xlane.f32.xlu0 %v2790_v9  ;;  %v2465_v16 = vpop.f32.mrf.mxu1 }
 0xccf   :  { %v4645_v50 = vpop.f32.mrf.mxu1 }
 0xcd1   :  { %v2508_v10 = vpop.f32.mrf.mxu1 }
 0xcd2   :  { %v2509_v54 = vadd.f32 %v5211_v31, %v2508_v10 }
 0xcd3   :  { %v4650_v58 = vpop.f32.mrf.mxu1 }
 0xcd4   :  { %v2793_v39 = vsel %vm1013_vm3, %v2509_v54, -inf }
 0xcd5   :  { %2794 = vmax.xlane.f32.xlu1 %v2793_v39  ;;  %v2511_v51 = vpop.f32.mrf.mxu1 }
 0xcd7   :  { %v4651_v12 = vpop.f32.mrf.mxu1 }
 0xd3c   :  { %v2554_v13 = vpop.f32.mrf.mxu1 }
 0xd3d   :  { %v2555_v17 = vadd.f32 %v5212_v14, %v2554_v13 }
 0xd3e   :  { %v4656_v18 = vpop.f32.mrf.mxu1 }
 0xd3f   :  { %v2796_v19 = vsel %vm1013_vm3, %v2555_v17, -inf }
 0xd40   :  { %2797 = vmax.xlane.f32.xlu0 %v2796_v19  ;;  %v2557_v15 = vpop.f32.mrf.mxu1 }
 0xd42   :  { %v4657_v20 = vpop.f32.mrf.mxu1 }
 0xd44   :  { %v2600_v21 = vpop.f32.mrf.mxu1 }
 0xd45   :  { %v2601_v24 = vadd.f32 %v5213_v22, %v2600_v21 }
 0xd46   :  { %v4662_v25 = vpop.f32.mrf.mxu1  ;;  %v2646_v26 = vpop.f32.mrf.mxu0 }
 0xd47   :  { %v2647_v8 = vadd.f32 %v5214_v28, %v2646_v26  ;;  %v2799_v29 = vsel %vm1013_vm3, %v2601_v24, -inf }
 0xd48   :  { %v4668_v30 = vpop.f32.mrf.mxu0  ;;  %2800 = vmax.xlane.f32.xlu0 %v2799_v29  ;;  %v2603_v32 = vpop.f32.mrf.mxu1 }
 0xd49   :  { %v2802_v35 = vsel %vm1013_vm3, %v2647_v8, -inf }
 0xd4a   :  { %v4663_v33 = vpop.f32.mrf.mxu1  ;;  %v2649_v34 = vpop.f32.mrf.mxu0 }
 0xd4c   :  { %v4669_v23 = vpop.f32.mrf.mxu0  ;;  %2803 = vmax.xlane.f32.xlu0 %v2802_v35  ;;  %v2692_v36 = vpop.f32.mrf.mxu1 }
 0xd4d   :  { %v5985_v38 = vadd.f32 %v5215_v37, %v2692_v36 }
 0xd4e   :  { %v4674_v42 = vpop.f32.mrf.mxu1  ;;  %v2738_v40 = vpop.f32.mrf.mxu0 }
 0xd4f   :  { %v2739_v43 = vadd.f32 %v5216_v41, %v2738_v40  ;;  %v2805_v44 = vsel %vm1013_vm3, %v5985_v38, -inf }
 0xd50   :  { %v4680_v47 = vpop.f32.mrf.mxu0  ;;  %2806 = vmax.xlane.f32.xlu1 %v2805_v44  ;;  %v2695_v49 = vpop.f32.mrf.mxu1 }
 0xd51   :  { %v2808_v52 = vsel %vm1013_vm3, %v2739_v43, -inf }
 0xd52   :  { %v2741_v45 = vpop.f32.mrf.mxu0  ;;  %2809 = vmax.xlane.f32.xlu0 %v2808_v52  ;;  %v4675_v48 = vpop.f32.mrf.mxu1 }
 0xd54   :  { %v4681_v59 = vpop.f32.mrf.mxu0  ;;  %v2784_v57 = vpop.f32.mrf.mxu1 }
 0xd55   :  { %v5990_v61 = vadd.f32 %v5217_v60, %v2784_v57 }
 0xd56   :  { %v2792_v62 = vpop.xlane.xlu0 %2791  ;;  %v4686_v0 = vpop.f32.mrf.mxu1 }
 0xd57   :  { %v2814_v63 = vsub.f32 %v2463_v6, %v2792_v62  ;;  %v2811_v1 = vsel %vm1013_vm3, %v5990_v61, -inf }
 0xd58   :  { %2812 = vmax.xlane.f32.xlu1 %v2811_v1  ;;  %v2787_v3 = vpop.f32.mrf.mxu1 }
 0xd59   :  { %v2822_v2 = vmul.f32 1.442695, %v2814_v63 }
 0xd5a   :  { %v4687_v5 = vpop.f32.mrf.mxu1 }
 0xd5b   :  { %5158 = vpow2.f32 %v2822_v2 }
 0xd5e   :  { %v2795_v7 = vpop.xlane.xlu1 %2794 }
 0xd5f   :  { %v2815_v9 = vsub.f32 %v2509_v54, %v2795_v7 }
 0xd61   :  { %v2824_v16 = vmul.f32 1.442695, %v2815_v9 }
 0xd63   :  { %5160 = vpow2.f32 %v2824_v16 }
 0xd68   :  { %v5159_v50 = vpop.eup %5158 }
 0xd69   :  { %v2838_v10 = vsel %vm1013_vm3, %v5159_v50, 0.0 }
 0xd6a   :  { %2839 = vadd.xlane.f32.xlu0 %v2838_v10 }
 0xd70   :  { %v5161_v31 = vpop.eup %5160 }
 0xd71   :  { %v2841_v6 = vsel %vm1013_vm3, %v5161_v31, 0.0 }
 0xd72   :  { %2842 = vadd.xlane.f32.xlu1 %v2841_v6 }
 0xdc9   :  { %v2798_v58 = vpop.xlane.xlu0 %2797 }
 0xdca   :  { %v2816_v39 = vsub.f32 %v2555_v17, %v2798_v58 }
 0xdcc   :  { %v2826_v51 = vmul.f32 1.442695, %v2816_v39 }
 0xdce   :  { %5162 = vpow2.f32 %v2826_v51 }
 0xdd1   :  { %v2801_v12 = vpop.xlane.xlu0 %2800 }
 0xdd2   :  { %v2817_v13 = vsub.f32 %v2601_v24, %v2801_v12 }
 0xdd4   :  { %v2828_v14 = vmul.f32 1.442695, %v2817_v13 }
 0xdd5   :  { %v2804_v18 = vpop.xlane.xlu0 %2803 }
 0xdd6   :  { %5164 = vpow2.f32 %v2828_v14  ;;  %v2818_v54 = vsub.f32 %v2647_v8, %v2804_v18 }
 0xdd8   :  { %v2830_v19 = vmul.f32 1.442695, %v2818_v54 }
 0xdd9   :  { %v2807_v30 = vpop.xlane.xlu1 %2806 }
 0xdda   :  { %5166 = vpow2.f32 %v2830_v19  ;;  %v2819_v23 = vsub.f32 %v5985_v38, %v2807_v30 }
 0xddb   :  { %v5996_v15 = vpop.eup %5162  ;;  %v2810_v20 = vpop.xlane.xlu0 %2809 }
 0xddc   :  { %v2844_v21 = vsel %vm1013_vm3, %v5996_v15, 0.0  ;;  %v2820_v22 = vsub.f32 %v2739_v43, %v2810_v20  ;;  %v2832_v42 = vmul.f32 1.442695, %v2819_v23 }
 0xddd   :  { %2845 = vadd.xlane.f32.xlu0 %v2844_v21 }
 0xdde   :  { %v2834_v25 = vmul.f32 1.442695, %v2820_v22 }
 0xde0   :  { %5168 = vpow2.f32 %v2834_v25 }
 0xde1   :  { %v2813_v33 = vpop.xlane.xlu1 %2812 }
 0xde2   :  { %v2821_v40 = vsub.f32 %v5990_v61, %v2813_v33 }
 0xde3   :  { %v5165_v17 = vpop.eup %5164 }
 0xde4   :  { %v2847_v26 = vsel %vm1013_vm3, %v5165_v17, 0.0  ;;  %v2836_v43 = vmul.f32 1.442695, %v2821_v40 }
 0xde5   :  { %2848 = vadd.xlane.f32.xlu1 %v2847_v26 }
 0xde7   :  { %v6001_v24 = vpop.eup %5166 }
 0xde8   :  { %v2850_v28 = vsel %vm1013_vm3, %v6001_v24, 0.0 }
 0xde9   :  { %2851 = vadd.xlane.f32.xlu0 %v2850_v28 }
 0xded   :  { %v6005_v8 = vpop.eup %5168 }
 0xdee   :  { %v2856_v29 = vsel %vm1013_vm3, %v6005_v8, 0.0 }
 0xdef   :  { %2857 = vadd.xlane.f32.xlu0 %v2856_v29 }
 0xdf3   :  { %v2840_v32 = vpop.xlane.xlu0 %2839 }
 0xdf4   :  { %5170 = vrcp.f32 %v2840_v32 }
 0xdf6   :  { %4906 = vrot.lane.b32.xlu1 %v5925_v11, %s6181_s22 }
 0xdfb   :  { %v2843_v34 = vpop.xlane.xlu1 %2842 }
 0xdfc   :  { %5172 = vrcp.f32 %v2843_v34 }
 0xdfd   :  { %5174 = vpow2.f32 %v2832_v42 }
 0xdfe   :  { %5176 = vpow2.f32 %v2836_v43 }
 0xe01   :  { %v5171_v35 = vpop.eup %5170 }
 0xe02   :  { %v2870_v36 = vmul.f32 %v5171_v35, %v5159_v50 }
 0xe04   :  { %v2878_v37 = vpack.c.bf16 %v2870_v36, %v2870_v36 }
 0xe05   :  { %4901 = vrot.lane.b32.xlu0 %v5925_v11, %s5473_s24 }
 0xe06   :  { %4691 = vmatmul.mubr.msk.bf16.vlgmr.msra.gmra.mxu0 %vm1013_vm3, %v2878_v37 }
 0xe07   :  { %4702 = vmatprep.mubr.msk.bf16.mxu0 %vm5472_vm0, %v5470_v4 }
 0xe09   :  { %v5173_v41 = vpop.eup %5172 }
 0xe0a   :  { %v2871_v44 = vmul.f32 %v5173_v41, %v5161_v31  ;;  %v6021_v38 = vpop.eup %5174 }
 0xe0b   :  { %v2853_v49 = vsel %vm1013_vm3, %v6021_v38, 0.0  ;;  %v6025_v52 = vpop.eup %5176 }
 0xe0c   :  { %v2879_v47 = vpack.c.bf16 %v2871_v44, %v2871_v44  ;;  %v2859_v45 = vsel %vm1013_vm3, %v6025_v52, 0.0 }
 0xe0e   :  { %4697 = vmatmul.mubr.msk.bf16.vlgmr.msra.gmra.mxu1 %vm1013_vm3, %v2879_v47  ;;  %v5042_v47 = vld [vmem:[#allocation11 + $0x78] sm:$0xff]  }
 0xe0f   :  { %4708 = vmatprep.mubr.msk.bf16.mxu1 %vm5472_vm0, %v5470_v4 }
 0xe1a   :  { %2854 = vadd.xlane.f32.xlu1 %v2853_v49  ;;  %v5044_v49 = vld [vmem:[#allocation11 + $0x68] sm:$0xff]  }
 0xe1e   :  { %2860 = vadd.xlane.f32.xlu1 %v2859_v45 }
 0xe2f   :  { %4911 = vrot.lane.b32.xlu1 %v5925_v11, %s5474_s1 }
 0xe66   :  { %v2846_v48 = vpop.xlane.xlu0 %2845 }
 0xe67   :  { %5178 = vrcp.f32 %v2846_v48 }
 0xe6e   :  { %v2849_v59 = vpop.xlane.xlu1 %2848 }
 0xe6f   :  { %5180 = vrcp.f32 %v2849_v59 }
 0xe72   :  { %v2852_v57 = vpop.xlane.xlu0 %2851  ;;  %v4907_v61 = vpop.permute.xlu1 %4906 }
 0xe73   :  { %5182 = vrcp.f32 %v2852_v57  ;;  %v4909_v1 = vunpack.i.h.bf16 %v4907_v61  ;;  %v4908_v2 = vunpack.i.l.bf16 %v4907_v61  ;;  %v5045_v57 = vld [vmem:[#allocation11 + $0x60] sm:$0xff]  }
 0xe74   :  { %v5179_v62 = vpop.eup %5178 }
 0xe75   :  { %v2872_v16 = vmul.f32 %v5179_v62, %v5996_v15  ;;  %v2419_v50 = vpack.c.bf16 %v4909_v1, %v4909_v1  ;;  %v2418_v10 = vpack.c.bf16 %v4908_v2, %v4908_v2 }
 0xe77   :  { %v2880_v58 = vpack.c.bf16 %v2872_v16, %v2872_v16  ;;  %v3074_v12 = vsel %vm1113_vm2, %v2418_v10, 0  ;;  %v3120_v13 = vsel %vm1113_vm2, %v2419_v50, 0  ;;  %v5049_v10 = vld [vmem:[#allocation11 + $0x40] sm:$0xff]  }
 0xe78   :  { %v2858_v60 = vpop.xlane.xlu0 %2857 }
 0xe79   :  { %5184 = vrcp.f32 %v2858_v60 }
 0xe7c   :  { %v5181_v63 = vpop.eup %5180  ;;  %v4902_v0 = vpop.permute.xlu0 %4901 }
 0xe7d   :  { %v4904_v3 = vunpack.i.h.bf16 %v4902_v0  ;;  %v4903_v5 = vunpack.i.l.bf16 %v4902_v0  ;;  %v2873_v11 = vmul.f32 %v5181_v63, %v5165_v17  ;;  %v5046_v0 = vld [vmem:[#allocation11 + $0x58] sm:$0xff]  }
 0xe7f   :  { %v2417_v7 = vpack.c.bf16 %v4904_v3, %v4904_v3  ;;  %v2416_v9 = vpack.c.bf16 %v4903_v5, %v4903_v5  ;;  %v2881_v39 = vpack.c.bf16 %v2873_v11, %v2873_v11 }
 0xe80   :  { %v5183_v51 = vpop.eup %5182 }
 0xe81   :  { %v2982_v31 = vsel %vm1113_vm2, %v2416_v9, 0  ;;  %v3028_v6 = vsel %vm1113_vm2, %v2417_v7, 0  ;;  %v2874_v14 = vmul.f32 %v5183_v51, %v6001_v24  ;;  %v5047_v7 = vld [vmem:[#allocation11 + $0x50] sm:$0xff]   ;;  %v5048_v9 = vld [vmem:[#allocation11 + $0x48] sm:$0xff]  }
 0xe82   :  { %4701 = vmatpush3.bf16.msra.mxu0 %v2982_v31  ;;  %4707 = vmatpush3.bf16.msra.mxu1 %v3028_v6 }
 0xe83   :  { %4712 = vmatprep.subr.bf16.mxu0 %v5470_v4  ;;  %4718 = vmatprep.subr.bf16.mxu1 %v5470_v4  ;;  %v2882_v18 = vpack.c.bf16 %v2874_v14, %v2874_v14 }
 0xe85   :  { %4703 = vmatmul.mubr.msk.bf16.vlgmr.msra.gmra.mxu0 %vm1013_vm3, %v2880_v58  ;;  %4709 = vmatmul.mubr.msk.bf16.vlgmr.msra.gmra.mxu1 %vm1013_vm3, %v2881_v39 }
 0xe86   :  { %4713 = vmatpush3.bf16.msra.mxu0 %v3074_v12  ;;  %4719 = vmatpush3.bf16.msra.mxu1 %v3120_v13  ;;  %v5185_v15 = vpop.eup %5184 }
 0xe87   :  { %4714 = vmatprep.mubr.msk.bf16.mxu0 %vm5472_vm0, %v5470_v4  ;;  %4724 = vmatprep.subr.bf16.mxu0 %v5470_v4  ;;  %v2876_v17 = vmul.f32 %v5185_v15, %v6005_v8 }
 0xe88   :  { %4720 = vmatprep.mubr.msk.bf16.mxu1 %vm5472_vm0, %v5470_v4  ;;  %4730 = vmatprep.subr.bf16.mxu1 %v5470_v4 }
 0xe89   :  { %v2884_v29 = vpack.c.bf16 %v2876_v17, %v2876_v17 }
 0xe8d   :  { %4715 = vmatmul.mubr.msk.bf16.vlgmr.msra.gmra.mxu0 %vm1013_vm3, %v2882_v18 }
 0xe8e   :  { %4726 = vmatprep.mubr.msk.bf16.mxu0 %vm5472_vm0, %v5470_v4 }
 0xea3   :  { %v2855_v54 = vpop.xlane.xlu1 %2854 }
 0xea4   :  { %5186 = vrcp.f32 %v2855_v54 }
 0xea7   :  { %v2861_v19 = vpop.xlane.xlu1 %2860 }
 0xea8   :  { %5188 = vrcp.f32 %v2861_v19 }
 0xeab   :  { %v4912_v20 = vpop.permute.xlu1 %4911 }
 0xeac   :  { %v4913_v21 = vunpack.i.l.bf16 %v4912_v20  ;;  %v4914_v22 = vunpack.i.h.bf16 %v4912_v20 }
 0xeae   :  { %v2420_v25 = vpack.c.bf16 %v4913_v21, %v4913_v21  ;;  %v2421_v28 = vpack.c.bf16 %v4914_v22, %v4914_v22 }
 0xeb0   :  { %v3166_v26 = vsel %vm1113_vm2, %v2420_v25, 0  ;;  %v3212_v8 = vsel %vm1113_vm2, %v2421_v28, 0 }
 0xeb1   :  { %v5187_v24 = vpop.eup %5186  ;;  %4725 = vmatpush3.bf16.msra.mxu0 %v3166_v26 }
 0xeb2   :  { %v2875_v30 = vmul.f32 %v5187_v24, %v6021_v38  ;;  %4736 = vmatprep.subr.bf16.mxu0 %v5470_v4  ;;  %v5043_v38 = vld [vmem:[#allocation11 + $0x70] sm:$0xff]  }
 0xeb4   :  { %4727 = vmatmul.mubr.msk.bf16.vlgmr.msra.gmra.mxu0 %vm1013_vm3, %v2884_v29  ;;  %v2883_v32 = vpack.c.bf16 %v2875_v30, %v2875_v30 }
 0xeb5   :  { %v5189_v33 = vpop.eup %5188  ;;  %4752 = vmatprep.mubr.msk.bf16.mxu0 %vm5472_vm0, %v5470_v4  ;;  %4737 = vmatpush3.bf16.msra.mxu0 %v5042_v47 }
 0xeb6   :  { %4721 = vmatmul.mubr.msk.bf16.vlgmr.msra.gmra.mxu1 %vm1013_vm3, %v2883_v32  ;;  %v2877_v34 = vmul.f32 %v5189_v33, %v6025_v52  ;;  %4738 = vmatprep.subr.bf16.mxu0 %v5470_v4 }
 0xeb7   :  { %4731 = vmatpush3.bf16.msra.mxu1 %v3212_v8  ;;  %4732 = vmatprep.mubr.msk.bf16.mxu1 %vm5472_vm0, %v5470_v4 }
 0xeb8   :  { %v2885_v35 = vpack.c.bf16 %v2877_v34, %v2877_v34 }
 0xeb9   :  { %4739 = vmatpush3.bf16.msra.mxu0 %v5043_v38  ;;  %v5050_v38 = vld [vmem:[#allocation13 + $0xf0] ss:$8 sps:$4 sm:$0xff]  }
 0xeba   :  { %4740 = vmatprep.subr.bf16.mxu0 %v5470_v4 }
 0xebd   :  { %4741 = vmatpush3.bf16.msra.mxu0 %v5044_v49  ;;  %v5052_v49 = vld [vmem:[#allocation13 + $0xf4] ss:$8 sps:$4 sm:$0xff]  }
 0xebe   :  { %4733 = vmatmul.mubr.msk.bf16.vlgmr.msra.gmra.mxu1 %vm1013_vm3, %v2885_v35  ;;  %4742 = vmatprep.subr.bf16.mxu0 %v5470_v4 }
 0xebf   :  { %3586 = vmatprep.mubr.bf16.mxu1 %v5471_v27  ;;  %3554 = vmatprep.subr.bf16.mxu1 %v5052_v49 }
 0xec0   :  { %3555 = vmatpush1.bf16.msra.mxu1 %v5050_v38 }
 0xec1   :  { %4743 = vmatpush3.bf16.msra.mxu0 %v5045_v57 }
 0xec2   :  { %4744 = vmatprep.subr.bf16.mxu0 %v5470_v4 }
 0xec5   :  { %4745 = vmatpush3.bf16.msra.mxu0 %v5046_v0  ;;  %v5061_v0 = vld [vmem:[#allocation13 + $0xc4] ss:$8 sps:$4 sm:$0xff]  }
 0xec6   :  { %v6064_v23 = vpop.f32.mrf.mxu0  ;;  %4746 = vmatprep.subr.bf16.mxu0 %v5470_v4 }
 0xec8   :  { %v4692_v36 = vpop.f32.mrf.mxu0 }
 0xec9   :  { %4747 = vmatpush3.bf16.msra.mxu0 %v5047_v7  ;;  %v4252_v36 = vld [vmem:[%s6155_s7 + $0x1] ss:$0 sm:$0xff]  ;;  %v5065_v7 = vld [vmem:[#allocation13 + $0xa0] ss:$8 sps:$4 sm:$0xff]  }
 0xeca   :  { %v2929_v37 = vpop.f32.mrf.mxu0  ;;  %4748 = vmatprep.subr.bf16.mxu0 %v5470_v4 }
 0xecc   :  { %v4693_v42 = vpop.f32.mrf.mxu0 }
 0xecd   :  { %4749 = vmatpush3.bf16.msra.mxu0 %v5048_v9  ;;  %v5070_v9 = vld [vmem:[#allocation13 + $0x94] ss:$8 sps:$4 sm:$0xff]  }
 0xece   :  { %v6066_v40 = vpop.f32.mrf.mxu1  ;;  %4750 = vmatprep.subr.bf16.mxu0 %v5470_v4 }
 0xed0   :  { %v4698_v41 = vpop.f32.mrf.mxu1 }
 0xed1   :  { %4751 = vmatpush3.bf16.msra.mxu0 %v5049_v10 }
 0xed2   :  { %v2975_v43 = vpop.f32.mrf.mxu1 }
 0xed4   :  { %v4699_v44 = vpop.f32.mrf.mxu1 }
 0xf45   :  { %v3018_v27 = vpop.f32.mrf.mxu0  ;;  %v3064_v52 = vpop.f32.mrf.mxu1 }
 0xf46   :  { %v4915_v45 = vpack.i.bf16 %v3064_v52, %v3018_v27 }
 0xf47   :  { %v4704_v48 = vpop.f32.mrf.mxu0  ;;  %v4710_v59 = vpop.f32.mrf.mxu1 }
 0xf48   :  { %4916 = vrot.lane.b32.xlu1 %v4915_v45, %s5474_s1 }
 0xf49   :  { %v3021_v60 = vpop.f32.mrf.mxu0  ;;  %v3067_v61 = vpop.f32.mrf.mxu1 }
 0xf4a   :  { %v5055_v61 = vld [vmem:[#allocation13 + $0xe4] ss:$8 sps:$4 sm:$0xff]  }
 0xf4b   :  { %v4705_v62 = vpop.f32.mrf.mxu0  ;;  %v4711_v63 = vpop.f32.mrf.mxu1  ;;  %3556 = vmatprep.subr.bf16.mxu1 %v5055_v61 }
 0xf4c   :  { %v5053_v62 = vld [vmem:[#allocation13 + $0xe0] ss:$8 sps:$4 sm:$0xff]   ;;  %v5056_v63 = vld [vmem:[#allocation13 + $0xd0] ss:$8 sps:$4 sm:$0xff]  }
 0xf4d   :  { %v3110_v1 = vpop.f32.mrf.mxu0  ;;  %3557 = vmatpush1.bf16.msra.mxu1 %v5053_v62 }
 0xf4f   :  { %v4716_v2 = vpop.f32.mrf.mxu0 }
 0xf50   :  { %v5064_v2 = vld [vmem:[#allocation13 + $0xb4] ss:$8 sps:$4 sm:$0xff]  }
 0xf51   :  { %v3113_v3 = vpop.f32.mrf.mxu0 }
 0xf52   :  { %v5062_v3 = vld [vmem:[#allocation13 + $0xb0] ss:$8 sps:$4 sm:$0xff]  }
 0xf53   :  { %v4717_v5 = vpop.f32.mrf.mxu0 }
 0xf54   :  { %v5067_v5 = vld [vmem:[#allocation13 + $0xa4] ss:$8 sps:$4 sm:$0xff]  }
 0xf74   :  { %v3202_v16 = vpop.f32.mrf.mxu0 }
 0xf76   :  { %v3156_v11 = vpop.f32.mrf.mxu1  ;;  %v4728_v50 = vpop.f32.mrf.mxu0 }
 0xf77   :  { %v4920_v31 = vpack.i.bf16 %v3156_v11, %v3110_v1  ;;  %v5059_v1 = vld [vmem:[#allocation13 + $0xc0] ss:$8 sps:$4 sm:$0xff]   ;;  %v5073_v11 = vld [vmem:[#allocation13 + $0x84] ss:$8 sps:$4 sm:$0xff]  }
 0xf78   :  { %v4722_v6 = vpop.f32.mrf.mxu1  ;;  %v3205_v58 = vpop.f32.mrf.mxu0  ;;  %v5071_v50 = vld [vmem:[#allocation13 + $0x80] ss:$8 sps:$4 sm:$0xff]  }
 0xf79   :  { %4921 = vrot.lane.b32.xlu0 %v4920_v31, %s6181_s22 }
 0xf7a   :  { %v3159_v39 = vpop.f32.mrf.mxu1  ;;  %v4729_v51 = vpop.f32.mrf.mxu0 }
 0xf7c   :  { %v4723_v12 = vpop.f32.mrf.mxu1 }
 0xf7e   :  { %v3248_v13 = vpop.f32.mrf.mxu1 }
 0xf7f   :  { %v4925_v14 = vpack.i.bf16 %v3248_v13, %v3202_v16  ;;  %v5068_v16 = vld [vmem:[#allocation13 + $0x90] ss:$8 sps:$4 sm:$0xff]  }
 0xf80   :  { %v4734_v18 = vpop.f32.mrf.mxu1 }
 0xf81   :  { %4926 = vrot.lane.b32.xlu1 %v4925_v14, %s5473_s24  ;;  %v4263_v14 = vld [vmem:[%s6156_s8 + $0x1] ss:$0 sm:$0xff] }
 0xf82   :  { %v3251_v54 = vpop.f32.mrf.mxu1 }
 0xf84   :  { %v4735_v19 = vpop.f32.mrf.mxu1 }
 0xfba   :  { %v4917_v15 = vpop.permute.xlu1 %4916 }
 0xfbb   :  { %v4919_v21 = vunpack.i.h.bf16 %v4917_v15  ;;  %v4918_v22 = vunpack.i.l.bf16 %v4917_v15  ;;  %v4264_v15 = vld [vmem:[%s6157_s9 + $0x1] ss:$0 sm:$0xff] }
 0xfbd   :  { %v3279_v24 = vsel %vm644_vm1, %v6066_v40, %v4919_v21  ;;  %v3278_v28 = vsel %vm644_vm1, %v6064_v23, %v4918_v22 }
 0xfeb   :  { %v4922_v20 = vpop.permute.xlu0 %4921 }
 0xfec   :  { %v4924_v25 = vunpack.i.h.bf16 %v4922_v20  ;;  %v4923_v17 = vunpack.i.l.bf16 %v4922_v20 }
 0xfee   :  { %v3281_v32 = vsel %vm1505_vm4, %v3279_v24, %v4924_v25  ;;  %v3280_v33 = vsel %vm1505_vm4, %v3278_v28, %v4923_v17  ;;  %v5074_v17 = vld [vmem:[#allocation14 + $0xf8] sm:$0xff]   ;;  %v5076_v24 = vld [vmem:[#allocation14 + $0xf0] sm:$0xff]  }
 0xfef   :  { %4444 = vmatprep.subr.bf16.mxu0 %v5074_v17  ;;  %v5077_v28 = vld [vmem:[#allocation14 + $0xb0] sm:$0xff]  }
 0xff3   :  { %v4927_v26 = vpop.permute.xlu1 %4926 }
 0xff4   :  { %v4929_v29 = vunpack.i.h.bf16 %v4927_v26  ;;  %v4928_v30 = vunpack.i.l.bf16 %v4927_v26  ;;  %v5075_v26 = vld [vmem:[#allocation14 + $0xb8] sm:$0xff]  }
 0xff6   :  { %v3283_v8 = vsel %vm1508_vm5, %v3281_v32, %v4929_v29  ;;  %v3282_v34 = vsel %vm1508_vm5, %v3280_v33, %v4928_v30  ;;  %v5078_v29 = vld [vmem:[#allocation14 + $0xe8] sm:$0xff]   ;;  %v5080_v32 = vld [vmem:[#allocation14 + $0xe0] sm:$0xff]  }
 0xff7   :  { %v3303_v35 = vpack.c.bf16 %v3283_v8, %v3282_v34  ;;  %v5079_v30 = vld [vmem:[#allocation14 + $0xa8] sm:$0xff]   ;;  %v5081_v33 = vld [vmem:[#allocation14 + $0xa0] sm:$0xff]   ;;  %v5082_v8 = vld [vmem:[#allocation14 + $0xd8] sm:$0xff]  }
 0xff8   :  { %v5083_v34 = vld [vmem:[#allocation14 + $0x98] sm:$0xff]  }
 0xff9   :  { %4753 = vmatmul.mubr.bf16.vlgmr.msra.gmra.mxu0 %v3303_v35  ;;  %v5084_v35 = vld [vmem:[#allocation14 + $0xd0] sm:$0xff]  }
 0xffa   :  { %4445 = vmatpush3.bf16.msra.mxu0 %v5075_v26 }
 0xffb   :  { %4446 = vmatprep.subr.bf16.mxu0 %v5076_v24 }
 0xffe   :  { %4447 = vmatpush3.bf16.msra.mxu0 %v5077_v28 }
 0xfff   :  { %4448 = vmatprep.subr.bf16.mxu0 %v5078_v29 }
0x1002   :  { %4449 = vmatpush3.bf16.msra.mxu0 %v5079_v30  ;;  %v4283_v30 = vld [vmem:[%s6161_s13 + $0x1] ss:$0 sm:$0xff] }
0x1003   :  { %4450 = vmatprep.subr.bf16.mxu0 %v5080_v32 }
0x1006   :  { %4451 = vmatpush3.bf16.msra.mxu0 %v5081_v33 }
0x1007   :  { %4452 = vmatprep.subr.bf16.mxu0 %v5082_v8 }
0x100a   :  { %4453 = vmatpush3.bf16.msra.mxu0 %v5083_v34 }
0x100b   :  { %4454 = vmatprep.subr.bf16.mxu0 %v5084_v35 }
0x10b9   :  { %v3392_v37 = vpop.f32.mrf.mxu0 }
0x10ba   :  { %v3393_v42 = vadd.f32 %v4252_v36, %v3392_v37  ;;  %v5086_v37 = vld [vmem:[#allocation14 + $0xc8] sm:$0xff]  }
0x10bb   :  { %v4754_v40 = vpop.f32.mrf.mxu0 }
0x10bc   :  { %v3399_v23 = vadd.f32 %v3393_v42, %v5900_v53  ;;  %v5087_v42 = vld [vmem:[#allocation14 + $0x88] sm:$0xff]   ;;  %v5088_v40 = vld [vmem:[#allocation14 + $0xc0] sm:$0xff]  }
0x10bd   :  { %v3395_v41 = vpop.f32.mrf.mxu0 }
0x10be   :  { %v3396_v43 = vadd.f32 %v4252_v36, %v3395_v41  ;;  %3405 = vadd.xlane.f32.xlu0 %v3399_v23  ;;  %v5085_v36 = vld [vmem:[#allocation14 + $0x90] sm:$0xff]   ;;  %v4265_v41 = vld [vmem:[%s6159_s11 + $0x2] sm:$0x3] }
0x10bf   :  { %v4755_v44 = vpop.f32.mrf.mxu0  ;;  %4455 = vmatpush3.bf16.msra.mxu0 %v5085_v36 }
0x10c0   :  { %v3400_v47 = vadd.f32 %v3396_v43, %v5902_v46  ;;  %v5058_v46 = vld [vmem:[#allocation13 + $0xd4] ss:$8 sps:$4 sm:$0xff]   ;;  %4456 = vmatprep.subr.bf16.mxu0 %v5086_v37  ;;  %v3467_v43 = vrot.slane %v4265_v41, %v5668_v56  ;;  %v3471_v44 = vrot.slane %v4265_v41, %v5665_v55 }
0x10c1   :  { %3558 = vmatprep.subr.bf16.mxu1 %v5058_v46 }
0x10c2   :  { %3407 = vadd.xlane.f32.xlu1 %v3400_v47  ;;  %3559 = vmatpush1.bf16.msra.mxu1 %v5056_v63 }
0x10c3   :  { %3560 = vmatprep.subr.bf16.mxu1 %v5061_v0  ;;  %4457 = vmatpush3.bf16.msra.mxu0 %v5087_v42 }
0x10c4   :  { %4458 = vmatprep.subr.bf16.mxu0 %v5088_v40 }
0x10c6   :  { %3561 = vmatpush1.bf16.msra.mxu1 %v5059_v1 }
0x10c7   :  { %3562 = vmatprep.subr.bf16.mxu1 %v5064_v2 }
0x10ca   :  { %3563 = vmatpush1.bf16.msra.mxu1 %v5062_v3 }
0x10cb   :  { %3564 = vmatprep.subr.bf16.mxu1 %v5067_v5 }
0x10ce   :  { %3565 = vmatpush1.bf16.msra.mxu1 %v5065_v7 }
0x10cf   :  { %3566 = vmatprep.subr.bf16.mxu1 %v5070_v9 }
0x10d2   :  { %3567 = vmatpush1.bf16.msra.mxu1 %v5068_v16 }
0x10d3   :  { %3568 = vmatprep.subr.bf16.mxu1 %v5073_v11 }
0x10d6   :  { %3569 = vmatpush1.bf16.msra.mxu1 %v5071_v50 }
0x10d7   :  { %4756 = vmatprep.subr.bf16.mxu1 %v5470_v4 }
0x1147   :  { %v3406_v27 = vpop.xlane.xlu0 %3405 }
0x1148   :  { %v3409_v52 = vmul.f32 0.0078125, %v3406_v27 }
0x114a   :  { %v3411_v45 = vsub.f32 %v3399_v23, %v3409_v52  ;;  %v5089_v23 = vld [vmem:[#allocation14 + $0x80] sm:$0xff]  }
0x114b   :  { %v3408_v48 = vpop.xlane.xlu1 %3407  ;;  %4459 = vmatpush3.bf16.msra.mxu0 %v5089_v23 }
0x114c   :  { %v3410_v59 = vmul.f32 0.0078125, %v3408_v48  ;;  %v3413_v57 = vmul.f32 %v3411_v45, %v3411_v45  ;;  %4776 = vmatprep.subr.bf16.mxu0 %v5470_v4 }
0x114e   :  { %v3412_v60 = vsub.f32 %v3400_v47, %v3410_v59  ;;  %3415 = vadd.xlane.f32.xlu0 %v3413_v57 }
0x1150   :  { %v3414_v53 = vmul.f32 %v3412_v60, %v3412_v60 }
0x1152   :  { %3417 = vadd.xlane.f32.xlu0 %v3414_v53 }
0x11d7   :  { %v3416_v10 = vpop.xlane.xlu0 %3415 }
0x11d8   :  { %v3419_v31 = vmul.f32 0.0078125, %v3416_v10 }
0x11da   :  { %v3421_v6 = vadd.f32 1e-12, %v3419_v31 }
0x11db   :  { %v3418_v58 = vpop.xlane.xlu0 %3417 }
0x11dc   :  { %5190 = vrsqrt.f32 %v3421_v6  ;;  %v3420_v39 = vmul.f32 0.0078125, %v3418_v58 }
0x11de   :  { %v3422_v51 = vadd.f32 1e-12, %v3420_v39 }
0x11e0   :  { %5192 = vrsqrt.f32 %v3422_v51 }
0x11e9   :  { %v5191_v12 = vpop.eup %5190 }
0x11ea   :  { %v3425_v13 = vmul.f32 %v5191_v12, %v3411_v45 }
0x11ec   :  { %v3433_v19 = vmul.f32 %v4263_v14, %v3425_v13 }
0x11ed   :  { %v5193_v18 = vpop.eup %5192 }
0x11ee   :  { %v3426_v54 = vmul.f32 %v5193_v18, %v3412_v60  ;;  %v6098_v21 = vadd.f32 %v4264_v15, %v3433_v19 }
0x11f0   :  { %v3434_v20 = vmul.f32 %v4263_v14, %v3426_v54 }
0x11f2   :  { %v6100_v22 = vadd.f32 %v4264_v15, %v3434_v20 }
0x11f4   :  { %v3462_v25 = vpack.c.bf16 %v6100_v22, %v6098_v21 }
0x11f6   :  { %3587 = vmatmul.mubr.bf16.vlgmr.msra.gmra.mxu1 %v3462_v25 }
0x11f7   :  { %4772 = vmatprep.mubr.msk.bf16.mxu1 %vm5472_vm0, %v5470_v4 }
0x12b6   :  { %v3588_v47 = vpop.f32.mrf.mxu1 }
0x12b7   :  { %v3589_v38 = vadd.f32 %v3588_v47, %v3467_v43 }
0x12b8   :  { %v3590_v49 = vpop.f32.mrf.mxu1 }
0x12b9   :  { %v3601_v27 = vmul.f32 0.044715, %v3589_v38  ;;  %v3591_v52 = vadd.f32 %v3590_v49, %v3471_v44  ;;  %v3597_v15 = vmul.f32 0.5, %v3589_v38 }
0x12ba   :  { %v3592_v45 = vpop.f32.mrf.mxu1 }
0x12bb   :  { %v3605_v48 = vmul.f32 %v3601_v27, %v3589_v38  ;;  %v3602_v59 = vmul.f32 0.044715, %v3591_v52  ;;  %v3593_v57 = vadd.f32 %v3592_v45, %v3467_v43  ;;  %v3598_v18 = vmul.f32 0.5, %v3591_v52  ;;  %v5093_v45 = vld [vmem:[#allocation16 + $0x20] sm:$0xff]  }
0x12bc   :  { %v3594_v60 = vpop.f32.mrf.mxu1 }
0x12bd   :  { %v3609_v53 = vmul.f32 %v3605_v48, %v3589_v38  ;;  %v3606_v61 = vmul.f32 %v3602_v59, %v3591_v52  ;;  %v3603_v62 = vmul.f32 0.044715, %v3593_v57  ;;  %v3595_v46 = vadd.f32 %v3594_v60, %v3471_v44  ;;  %v5094_v48 = vld [vmem:[#allocation16 + $0x18] sm:$0xff]   ;;  %v5095_v59 = vld [vmem:[#allocation16 + $0x10] sm:$0xff]   ;;  %v5097_v60 = vld [vmem:[#allocation16] sm:$0xff]  }
0x12be   :  { %v3599_v13 = vmul.f32 0.5, %v3593_v57 }
0x12bf   :  { %v3613_v63 = vadd.f32 %v3609_v53, %v3589_v38  ;;  %v3610_v0 = vmul.f32 %v3606_v61, %v3591_v52  ;;  %v3607_v1 = vmul.f32 %v3603_v62, %v3593_v57  ;;  %v3604_v56 = vmul.f32 0.044715, %v3595_v46  ;;  %v5098_v53 = vld [vmem:[#allocation17 + $0x38] sm:$0xff]   ;;  %v5099_v61 = vld [vmem:[#allocation17 + $0x30] sm:$0xff]   ;;  %v5100_v62 = vld [vmem:[#allocation17 + $0x28] sm:$0xff]  }
0x12c0   :  { %v3600_v54 = vmul.f32 0.5, %v3595_v46 }
0x12c1   :  { %v3611_v2 = vmul.f32 %v3607_v1, %v3593_v57  ;;  %v3608_v55 = vmul.f32 %v3604_v56, %v3595_v46  ;;  %v3614_v3 = vadd.f32 %v3610_v0, %v3591_v52  ;;  %v3617_v5 = vmul.f32 0.7978846, %v3613_v63  ;;  %v5090_v52 = vld [vmem:[#allocation16 + $0x38] sm:$0xff]  }
0x12c2   :  { %4757 = vmatpush3.bf16.msra.mxu1 %v5090_v52 }
0x12c3   :  { %v3615_v7 = vadd.f32 %v3611_v2, %v3593_v57  ;;  %v3612_v9 = vmul.f32 %v3608_v55, %v3595_v46  ;;  %v3618_v16 = vmul.f32 0.7978846, %v3614_v3  ;;  %4758 = vmatprep.subr.bf16.mxu1 %v5470_v4  ;;  %v5096_v57 = vld [vmem:[#allocation16 + $0x8] sm:$0xff]   ;;  %v4302_v3 = vld [vmem:[%s6162_s14 + $0x1] ss:$0 sm:$0xff] }
0x12c5   :  { %v3619_v11 = vmul.f32 0.7978846, %v3615_v7  ;;  %v3616_v50 = vadd.f32 %v3612_v9, %v3595_v46  ;;  %5194 = vtanh.f32 %v3618_v16  ;;  %v4303_v16 = vld [vmem:[%s6163_s15 + $0x1] ss:$0 sm:$0xff] }
0x12c6   :  { %5196 = vtanh.f32 %v3617_v5 }
0x12c7   :  { %5198 = vtanh.f32 %v3619_v11  ;;  %v3620_v10 = vmul.f32 0.7978846, %v3616_v50 }
0x12c9   :  { %5200 = vtanh.f32 %v3620_v10 }
0x12d2   :  { %v5195_v31 = vpop.eup %5194 }
0x12d3   :  { %v5197_v6 = vpop.eup %5196  ;;  %v3626_v39 = vadd.f32 1.0, %v5195_v31 }
0x12d4   :  { %v5199_v58 = vpop.eup %5198  ;;  %v3625_v14 = vadd.f32 1.0, %v5197_v6 }
0x12d5   :  { %v3627_v51 = vadd.f32 1.0, %v5199_v58  ;;  %v3630_v25 = vmul.f32 %v3626_v39, %v3598_v18  ;;  %v5101_v18 = vld [vmem:[#allocation17 + $0x20] sm:$0xff]  }
0x12d6   :  { %v5201_v12 = vpop.eup %5200  ;;  %v3629_v26 = vmul.f32 %v3625_v14, %v3597_v15  ;;  %v5104_v15 = vld [vmem:[#allocation17 + $0x8] sm:$0xff]  }
0x12d7   :  { %v3628_v19 = vadd.f32 1.0, %v5201_v12  ;;  %v3631_v20 = vmul.f32 %v3627_v51, %v3599_v13 }
0x12d9   :  { %v3632_v17 = vmul.f32 %v3628_v19, %v3600_v54  ;;  %v3668_v28 = vpack.c.bf16 %v3631_v20, %v3629_v26  ;;  %v5102_v54 = vld [vmem:[#allocation17 + $0x18] sm:$0xff]   ;;  %v5103_v19 = vld [vmem:[#allocation17 + $0x10] sm:$0xff]   ;;  %v5105_v20 = vld [vmem:[#allocation17] sm:$0xff]  }
0x12db   :  { %v3669_v24 = vpack.c.bf16 %v3632_v17, %v3630_v25  ;;  %v4304_v25 = vld [vmem:[%s6165_s17] ss:$0 sm:$0xff]  ;;  %s5475_s17 = smov [#allocation19]  }
0x12dc   :  { %s4100_s6 = sshll.u32 %s5475_s17, 4  ;;  %s4101_s6 = int_to_ptr.vmem [resolvable:$true] %s4100_s6 }
0x12dd   :  { %3804 = vmatprep.mubr.bf16.mxu0 %v3669_v24  ;;  %s5418_s27 = scalar_lea.vmem %s4101_s6, 32  ;;  %p5423_p9 = scmp.lt.s32.totalorder %s4101_s6, %s4101_s6 }
0x12de   :  { %3805 = vmatmul.mubr.bf16.vlgmr.msra.gmra.mxu0 %v3668_v28  ;;  %p5419_p8 = scmp.ne.s32.totalorder %s4101_s6, %s5418_s27  ;;  %p5424_p10 = scmp.lt.s32.totalorder %s5418_s27, %s5418_s27 }
0x12df   :  { %4792 = vmatprep.mubr.msk.bf16.mxu0 %vm5472_vm0, %v5470_v4  ;;  %4777 = vmatpush3.bf16.msra.mxu0 %v5098_v53 }
0x12e0   :  { %4778 = vmatprep.subr.bf16.mxu0 %v5470_v4  ;;  %p5425_p11 = por %p5424_p10, %p5423_p9 }
0x12e2   :  { %p5426_p12 = pnand %p5425_p11, %p5419_p8 }
0x12e3   :  { %4779 = vmatpush3.bf16.msra.mxu0 %v5099_v61 }
0x12e4   :  { %4780 = vmatprep.subr.bf16.mxu0 %v5470_v4 }
0x12e7   :  { %4781 = vmatpush3.bf16.msra.mxu0 %v5100_v62 }
0x12e8   :  { %4782 = vmatprep.subr.bf16.mxu0 %v5470_v4 }
0x12eb   :  { %4783 = vmatpush3.bf16.msra.mxu0 %v5101_v18 }
0x12ec   :  { %4784 = vmatprep.subr.bf16.mxu0 %v5470_v4 }
0x12ef   :  { %4785 = vmatpush3.bf16.msra.mxu0 %v5102_v54 }
0x12f0   :  { %4786 = vmatprep.subr.bf16.mxu0 %v5470_v4 }
0x12f3   :  { %4787 = vmatpush3.bf16.msra.mxu0 %v5103_v19 }
0x12f4   :  { %4788 = vmatprep.subr.bf16.mxu0 %v5470_v4 }
0x12f7   :  { %4789 = vmatpush3.bf16.msra.mxu0 %v5104_v15 }
0x12f8   :  { %4790 = vmatprep.subr.bf16.mxu0 %v5470_v4 }
0x12fb   :  { %4791 = vmatpush3.bf16.msra.mxu0 %v5105_v20 }
0x139e   :  { %v4460_v29 = vpop.f32.mrf.mxu0 }
0x13a0   :  { %v4461_v32 = vpop.f32.mrf.mxu0 }
0x13a1   :  { %v4462_v33 = vadd.f32 %v4461_v32, %v4460_v29 }
0x13a2   :  { %v4463_v8 = vpop.f32.mrf.mxu0 }
0x13a3   :  { %v3807_v34 = vadd.f32 %v4462_v33, %v4283_v30  ;;  %v4313_v33 = vld [vmem:[%s6167_s19] ss:$0 sm:$0xff] }
0x13a4   :  { %v4464_v35 = vpop.f32.mrf.mxu0 }
0x13a5   :  { %v4465_v36 = vadd.f32 %v4464_v35, %v4463_v8  ;;  %v3813_v37 = vadd.f32 %v3807_v34, %v6098_v21  ;;  %v5091_v21 = vld [vmem:[#allocation16 + $0x30] sm:$0xff]  }
0x13a6   :  { %4759 = vmatpush3.bf16.msra.mxu1 %v5091_v21 }
0x13a7   :  { %v3810_v42 = vadd.f32 %v4465_v36, %v4283_v30  ;;  %3819 = vadd.xlane.f32.xlu1 %v3813_v37  ;;  %4760 = vmatprep.subr.bf16.mxu1 %v5470_v4 }
0x13a9   :  { %v3814_v40 = vadd.f32 %v3810_v42, %v6100_v22  ;;  %v5092_v22 = vld [vmem:[#allocation16 + $0x28] sm:$0xff]  }
0x13aa   :  { %4761 = vmatpush3.bf16.msra.mxu1 %v5092_v22 }
0x13ab   :  { %3821 = vadd.xlane.f32.xlu0 %v3814_v40  ;;  %4762 = vmatprep.subr.bf16.mxu1 %v5470_v4 }
0x13ae   :  { %4763 = vmatpush3.bf16.msra.mxu1 %v5093_v45 }
0x13af   :  { %4764 = vmatprep.subr.bf16.mxu1 %v5470_v4 }
0x13b2   :  { %4765 = vmatpush3.bf16.msra.mxu1 %v5094_v48 }
0x13b3   :  { %4766 = vmatprep.subr.bf16.mxu1 %v5470_v4 }
0x13b6   :  { %4767 = vmatpush3.bf16.msra.mxu1 %v5095_v59 }
0x13b7   :  { %4768 = vmatprep.subr.bf16.mxu1 %v5470_v4 }
0x13ba   :  { %4769 = vmatpush3.bf16.msra.mxu1 %v5096_v57 }
0x13bb   :  { %4770 = vmatprep.subr.bf16.mxu1 %v5470_v4 }
0x13be   :  { %4771 = vmatpush3.bf16.msra.mxu1 %v5097_v60 }
0x1430   :  { %v3820_v23 = vpop.xlane.xlu1 %3819 }
0x1431   :  { %v3823_v41 = vmul.f32 0.0078125, %v3820_v23 }
0x1433   :  { %v3825_v43 = vsub.f32 %v3813_v37, %v3823_v41 }
0x1434   :  { %v3822_v44 = vpop.xlane.xlu0 %3821 }
0x1435   :  { %v3824_v47 = vmul.f32 0.0078125, %v3822_v44  ;;  %v3827_v38 = vmul.f32 %v3825_v43, %v3825_v43 }
0x1437   :  { %v3826_v49 = vsub.f32 %v3814_v40, %v3824_v47  ;;  %3829 = vadd.xlane.f32.xlu1 %v3827_v38 }
0x1439   :  { %v3828_v27 = vmul.f32 %v3826_v49, %v3826_v49 }
0x143b   :  { %3831 = vadd.xlane.f32.xlu0 %v3828_v27 }
0x14c0   :  { %v3830_v46 = vpop.xlane.xlu1 %3829 }
0x14c1   :  { %v3833_v63 = vmul.f32 0.0078125, %v3830_v46 }
0x14c3   :  { %v3835_v0 = vadd.f32 1e-12, %v3833_v63 }
0x14c4   :  { %v3832_v1 = vpop.xlane.xlu0 %3831 }
0x14c5   :  { %5202 = vrsqrt.f32 %v3835_v0  ;;  %v3834_v56 = vmul.f32 0.0078125, %v3832_v1 }
0x14c7   :  { %v3836_v2 = vadd.f32 1e-12, %v3834_v56 }
0x14c9   :  { %5204 = vrsqrt.f32 %v3836_v2 }
0x14d2   :  { %v5203_v55 = vpop.eup %5202 }
0x14d3   :  { %v3839_v5 = vmul.f32 %v5203_v55, %v3825_v43 }
0x14d5   :  { %v3847_v7 = vmul.f32 %v4302_v3, %v3839_v5 }
0x14d6   :  { %v5205_v9 = vpop.eup %5204 }
0x14d7   :  { %v3840_v11 = vmul.f32 %v5205_v9, %v3826_v49  ;;  %v3855_v10 = vadd.f32 %v4303_v16, %v3847_v7 }
0x14d9   :  { %v3848_v50 = vmul.f32 %v4302_v3, %v3840_v11  ;;  %v3874_v6 = vpack.c.bf16 %v3855_v10, %v3855_v10 }
0x14db   :  { %v3856_v31 = vadd.f32 %v4303_v16, %v3848_v50  ;;  %v3884_v51 = vunpack.c.l.b16 %v3874_v6 }
0x14dd   :  { %v3875_v58 = vpack.c.bf16 %v3856_v31, %v3856_v31 }
0x14df   :  { %v3885_v39 = vunpack.c.l.b16 %v3875_v58 }
0x14e1   :  { %v3886_v12 = vrot.slane %v3885_v39, 7 }
0x14e3   :  { %v3888_v13 = vsel %vm3887_vm6, %v3886_v12, %v3884_v51 }
0x14e4   :  { %v3889_v14 = vpack.c.b16 %v3888_v13, %v3888_v13 }
0x14e6   :  { %4773 = vmatmul.mubr.bf16.vlgmr.msra.gmra.mxu1 %v3889_v14 }
0x15a6   :  { %v3973_v17 = vpop.f32.mrf.mxu1 }
0x15a7   :  { %v3974_v26 = vadd.f32 %v4304_v25, %v3973_v17 }
0x15a8   :  { %v4774_v24 = vpop.f32.mrf.mxu1 }
0x15a9   :  { %5206 = vtanh.f32 %v3974_v26 }
0x15aa   :  { %v3976_v28 = vpop.f32.mrf.mxu1 }
0x15ac   :  { %v4775_v29 = vpop.f32.mrf.mxu1 }
0x15b6   :  { %v5207_v30 = vpop.eup %5206 }
0x15b7   :  { %v3997_v32 = vpack.c.bf16 %v5207_v30, %v5207_v30 }
0x15b9   :  { %4793 = vmatmul.mubr.bf16.vlgmr.msra.gmra.mxu0 %v3997_v32 }
0x1679   :  { %v4086_v4 = vpop.f32.mrf.mxu0 }
0x167a   :  { %v4087_v8 = vadd.f32 %v4313_v33, %v4086_v4 }
0x167b   :  { %v4794_v34 = vpop.f32.mrf.mxu0 }
0x167c   :  { %5208 = vtanh.f32 %v4087_v8 }
0x167d   :  { %v4089_v35 = vpop.f32.mrf.mxu0 }
0x167f   :  { %v4795_v36 = vpop.f32.mrf.mxu0 }
0x1689   :  { %v5209_v37 = vpop.eup %5208 }
0x168a   :  { %4093 = vst [vmem:[#allocation19] sm:$0x3] %v5209_v37 }
0x168b   :  { %5429 = shalt.err (!%p5426_p12)
}
0x168c   :  { %4103 = dma.vmem_to_hbm [thread:$0]  %s4101_s6, 32, %s6168_s20, [#allocation4]  }
0x168d   :  { %5450 = dma.done.wait [#allocation4], 32  }
0x168e   :  { %5451 = vsyncadd [#allocation4], 4294967264 }
0x168f   :  { %4107 = vsyncpa [#allocation3], 1 }
0x1690   :  { %4108 = vsyncpa [#allocation6], 1 }
0x1691   :  { %4109 = vsyncpa [#allocation9], 1 }
0x1692   :  { %4110 = vsyncpa [#allocation12], 1 }
0x1693   :  { %4111 = vsyncpa [#allocation15], 1 }
0x1694   :  { %4112 = vsyncpa [#allocation18], 1 }
0x1695   :  { %4113 = vsyncpa [#allocation4], 1 }

</bundles_post_ra>
